<compile_context>
chip_gen: v7x
topology: tpu7x:2x2x1
jax: 0.10.0
libtpu: 0.0.40
codegen_flags: <defaults>
</compile_context>

<pallas_src>
import functools

import numpy as np

import jax
import jax.numpy as jnp
from jax.experimental import pallas as pl
from jax.experimental.pallas import tpu as pltpu

_CPAD = 8  # pad 3 channels -> 8 so every tensor is sublane-aligned.


# ------------------------------ fused kernel ---------------------------------


def _fused_kernel(x_ref,
                  w1, w2, w3, w4, w5, w6, w7,
                  mf_ref, mh_ref, mq_ref,
                  af_ref, ah_ref, aq_ref,
                  p1_ref, p2_ref, up_ref,
                  mixed_ref, xup_ref, y_ref,
                  *, H, W, alpha):
    f32, bf16 = jnp.float32, jnp.bfloat16
    H2, W2, H4, W4 = H // 2, W // 2, H // 4, W // 4

    # Per-resolution constants: loaded once per grid step, reused by every conv
    # at that resolution (DMA'd only once thanks to the constant index_maps).
    m_full, m_half, m_quart = mf_ref[...], mh_ref[...], mq_ref[...]
    a_full, a_half, a_quart = af_ref[...], ah_ref[...], aq_ref[...]

    def conv3x3_relu(x, w_ref, W_img, masks, aux):
        """Tap-concat 3x3 "same" conv with folded bias, then ReLU.

        x:     (Cin, HW)            f32
        w_ref: (Cout, 9*Cin + 8)    bf16  (bias in column 9*Cin)
        masks: (9, HW)              f32   edge-validity per tap (row 4 unused)
        aux:   (8, HW)              f32   row 0 = ones (bias lane), rows 1..7 = 0
        """
        Cin, HW = x.shape
        pieces = []
        for dy in range(3):
            for dx in range(3):
                tap = dy * 3 + dx
                delta = (dy - 1) * W_img + (dx - 1)          # flat source offset
                if delta == 0:
                    shifted = x
                else:
                    # shifted[i] = x[(i + delta) % HW]; the wrap-around is removed
                    # by the edge mask, reproducing zero padding exactly.  The
                    # roll runs on the XLU slot and overlaps the MXU work.
                    shifted = pltpu.roll(x, shift=(-delta) % HW, axis=1)
                if tap != 4:                                  # center tap: no mask
                    shifted = shifted * masks[tap:tap + 1, :]
                pieces.append(shifted)
        pieces.append(aux)
        # One MXU push per layer with K = 9*Cin + 8 instead of 9 tiny K=Cin dots.
        x_cat = jnp.concatenate(pieces, axis=0).astype(bf16)
        acc = jnp.dot(w_ref[...], x_cat, preferred_element_type=f32)
        return jnp.maximum(acc, 0.0)

    x = x_ref[0].astype(f32)                                            # (8, H*W)

    h = conv3x3_relu(x, w1, W, m_full, a_full)                          # (32, H*W)
    h = conv3x3_relu(h, w2, W, m_full, a_full)                          # (32, H*W)
    h = jnp.dot(h.astype(bf16), p1_ref[...],
                preferred_element_type=f32)                             # avg-pool -> (32, H2*W2)
    h = conv3x3_relu(h, w3, W2, m_half, a_half)                         # (32, H2*W2)
    h = conv3x3_relu(h, w4, W2, m_half, a_half)                         # (32, H2*W2)
    h = jnp.dot(h.astype(bf16), p2_ref[...],
                preferred_element_type=f32)                             # avg-pool -> (32, H4*W4)
    h = conv3x3_relu(h, w5, W4, m_quart, a_quart)                       # (8, H4*W4)

    x_up = jnp.dot(h.astype(bf16), up_ref[...],
                   preferred_element_type=f32)                          # bilinear -> (8, H*W)
    y = conv3x3_relu(x_up, w6, W, m_full, a_full)                       # (8, H*W)
    y = conv3x3_relu(y, w7, W, m_full, a_full)                          # (8, H*W)
    mixed = alpha * x_up + (1.0 - alpha) * y                            # VPU filler under MXU

    mixed_ref[0] = mixed.astype(mixed_ref.dtype)
    xup_ref[0] = x_up.astype(xup_ref.dtype)
    y_ref[0] = y.astype(y_ref.dtype)


# -------------------- wrapper-side constants (numpy, baked) -------------------


def _tap_masks(H, W):
    """(9, H*W) f32; masks[dy*3+dx, h*W+w] == 1 iff source pixel
    (h+dy-1, w+dx-1) lies inside the image (zero padding otherwise)."""
    idx = np.arange(H * W)
    row, col = idx // W, idx % W
    masks = np.ones((9, H * W), np.float32)
    for dy in range(3):
        for dx in range(3):
            m = np.ones(H * W, bool)
            if dy == 0:
                m &= row >= 1
            if dy == 2:
                m &= row <= H - 2
            if dx == 0:
                m &= col >= 1
            if dx == 2:
                m &= col <= W - 2
            masks[dy * 3 + dx] = m
    return masks


def _bias_block(HW):
    """(8, HW) f32 aux block: row 0 = ones (multiplies the folded bias column)."""
    a = np.zeros((8, HW), np.float32)
    a[0] = 1.0
    return a


def _avgpool2_matrix(H, W):
    """pooled = x_flat @ P ; P[h*W+w, (h//2)*Wo + (w//2)] = 0.25."""
    Ho, Wo = H // 2, W // 2
    P = np.zeros((H * W, Ho * Wo), np.float32)
    i = np.arange(H * W)
    h, w = i // W, i % W
    P[i, (h // 2) * Wo + (w // 2)] = 0.25
    return P


def _bilinear_axis(out_size, in_size):
    # Matches torch F.interpolate(mode='bilinear', align_corners=False).
    scale = in_size / out_size
    o = np.arange(out_size, dtype=np.float64)
    src = np.maximum((o + 0.5) * scale - 0.5, 0.0)
    i0 = np.minimum(np.floor(src).astype(np.int64), in_size - 1)
    i1 = np.minimum(i0 + 1, in_size - 1)
    frac = (src - i0).astype(np.float32)
    m = np.zeros((out_size, in_size), np.float32)
    m[np.arange(out_size), i0] += 1.0 - frac
    m[np.arange(out_size), i1] += frac
    return m


def _bilinear_flat_matrix(Hout, Wout, Hin, Win):
    """x_up_flat = x_flat @ M ; M[(ih*Win+iw), (oh*Wout+ow)] = ah[oh,ih]*aw[ow,iw]."""
    ah = _bilinear_axis(Hout, Hin)                       # (Hout, Hin)
    aw = _bilinear_axis(Wout, Win)                       # (Wout, Win)
    m = np.einsum("oi,pj->ijop", ah, aw)                 # (Hin, Win, Hout, Wout)
    return m.reshape(Hin * Win, Hout * Wout)


def _prep_conv2d(w, b, cin_pad, cout_pad):
    """(Cout,Cin,3,3) torch-layout weight + (Cout,) bias -> (Cout_pad, 9*Cin_pad+8) bf16.

    Column tap*Cin_pad + ci holds weight[co, ci, dy, dx] with tap = dy*3+dx; the
    bias sits in column 9*Cin_pad (multiplied by the ones row of the aux block)."""
    cout, cin = w.shape[0], w.shape[1]
    w = jnp.pad(w, ((0, cout_pad - cout), (0, cin_pad - cin), (0, 0), (0, 0)))
    b = jnp.pad(b, (0, cout_pad - cout))
    w2d = jnp.transpose(w, (0, 2, 3, 1)).reshape(cout_pad, 9 * cin_pad)
    bias_cols = jnp.zeros((cout_pad, 8), jnp.float32).at[:, 0].set(b)
    return jnp.concatenate([w2d, bias_cols], axis=1).astype(jnp.bfloat16)


# --------------------------------- forward ------------------------------------


def estimation_direct_forward(x_nchw, params, alpha=0.8):
    """Mirrors Estimation_direct.forward; returns (mixed, x, y) in NCHW."""
    N, C, H, W = x_nchw.shape
    assert C == 3, "Estimation_direct expects 3 input channels"
    assert H % 4 == 0 and W % 4 == 0, "spatial dims must be divisible by 4"
    HW, HW2, HW4 = H * W, (H // 2) * (W // 2), (H // 4) * (W // 4)

    # Pad channels 3 -> 8 (sublane alignment) and flatten spatial onto lanes.
    x_flat = jnp.pad(x_nchw, ((0, 0), (0, _CPAD - C), (0, 0), (0, 0))).reshape(N, _CPAD, HW)

    cfg = (("conv1", _CPAD, 32), ("conv2", 32, 32), ("conv3", 32, 32),
           ("conv4", 32, 32), ("conv5", 32, _CPAD), ("conv6", _CPAD, _CPAD),
           ("conv7", _CPAD, _CPAD))
    w2ds = [_prep_conv2d(params[name][0], params[name][1], cin_pad, cout_pad)
            for name, cin_pad, cout_pad in cfg]

    mf = jnp.asarray(_tap_masks(H, W))
    mh = jnp.asarray(_tap_masks(H // 2, W // 2))
    mq = jnp.asarray(_tap_masks(H // 4, W // 4))
    af = jnp.asarray(_bias_block(HW))
    ah = jnp.asarray(_bias_block(HW2))
    aq = jnp.asarray(_bias_block(HW4))
    p1 = jnp.asarray(_avgpool2_matrix(H, W), jnp.bfloat16)
    p2 = jnp.asarray(_avgpool2_matrix(H // 2, W // 2), jnp.bfloat16)
    up = jnp.asarray(_bilinear_flat_matrix(H, W, H // 4, W // 4), jnp.bfloat16)

    def const_spec(shape):
        nd = len(shape)
        return pl.BlockSpec(shape, lambda n, _nd=nd: (0,) * _nd)

    consts = [*w2ds, mf, mh, mq, af, ah, aq, p1, p2, up]
    img_spec = pl.BlockSpec((1, _CPAD, HW), lambda n: (n, 0, 0))
    in_specs = [img_spec] + [const_spec(a.shape) for a in consts]

    out_shape = jax.ShapeDtypeStruct((N, _CPAD, HW), x_nchw.dtype)
    out_spec = pl.BlockSpec((1, _CPAD, HW), lambda n: (n, 0, 0))

    kernel = functools.partial(_fused_kernel, H=H, W=W, alpha=float(alpha))

    mixed, x_up, y = pl.pallas_call(
        kernel,
        out_shape=(out_shape, out_shape, out_shape),
        grid=(N,),
        in_specs=in_specs,
        out_specs=(out_spec, out_spec, out_spec),
        compiler_params=pltpu.CompilerParams(
            dimension_semantics=("parallel",),
            vmem_limit_bytes=32 * 1024 * 1024),
    )(x_flat, *consts)

    unflat = lambda a: a[:, :C].reshape(N, C, H, W)
    return unflat(mixed), unflat(x_up), unflat(y)


# --------------------------------- params -------------------------------------


def init_conv_params(key, cin, cout):
    # Synthetic PyTorch-Conv2d-like uniform init; weight kept in torch layout
    # (Cout, Cin, 3, 3) — the wrapper reshapes it to the tap-concat 2D form.
    kw_, kb_ = jax.random.split(key)
    bound = 1.0 / ((cin * 9) ** 0.5)
    w = jax.random.uniform(kw_, (cout, cin, 3, 3), jnp.float32, -bound, bound)
    b = jax.random.uniform(kb_, (cout,), jnp.float32, -bound, bound)
    return w, b


def init_params(key):
    shapes = {
        "conv1": (3, 32), "conv2": (32, 32), "conv3": (32, 32), "conv4": (32, 32),
        "conv5": (32, 3), "conv6": (3, 3), "conv7": (3, 3),
    }
    keys = jax.random.split(key, len(shapes))
    return {name: init_conv_params(k, cin, cout)
            for k, (name, (cin, cout)) in zip(keys, shapes.items())}


if __name__ == "__main__":
    key = jax.random.PRNGKey(0)
    k_x, k_p = jax.random.split(key)

    # Small NCHW input consistent with the module (3 channels, /4-divisible spatial).
    # Use batch >= 2 so v7x megacore gets work on both TensorCores.
    x = jax.random.normal(k_x, (2, 3, 16, 16), dtype=jnp.float32)
    params = init_params(k_p)

    fwd = jax.jit(lambda xx, pp: estimation_direct_forward(xx, pp, alpha=0.8))
    mixed, x_out, y_out = fwd(x, params)
    jax.block_until_ready((mixed, x_out, y_out))

    assert mixed.shape == (2, 3, 16, 16)
    assert x_out.shape == (2, 3, 16, 16)
    assert y_out.shape == (2, 3, 16, 16)
    # mixed must be the alpha-blend of the two returned tensors (holds by construction).
    assert bool(jnp.allclose(mixed, 0.8 * x_out + 0.2 * y_out, atol=1e-5))
    assert bool(jnp.isfinite(mixed).all())
    assert bool(jnp.isfinite(x_out).all()) and bool(jnp.isfinite(y_out).all())
    print("KERNEL_OK")
</pallas_src>

<mosaic_0001>
module attributes {stable_mosaic.version = 11 : i64} {
  func.func @_fused_kernel(%arg0: i32, %arg1: memref<1x8x256xf32, #tpu.memory_space<vmem>>, %arg2: memref<32x80xbf16, #tpu.memory_space<vmem>>, %arg3: memref<32x296xbf16, #tpu.memory_space<vmem>>, %arg4: memref<32x296xbf16, #tpu.memory_space<vmem>>, %arg5: memref<32x296xbf16, #tpu.memory_space<vmem>>, %arg6: memref<8x296xbf16, #tpu.memory_space<vmem>>, %arg7: memref<8x80xbf16, #tpu.memory_space<vmem>>, %arg8: memref<8x80xbf16, #tpu.memory_space<vmem>>, %arg9: memref<9x256xf32, #tpu.memory_space<vmem>>, %arg10: memref<9x64xf32, #tpu.memory_space<vmem>>, %arg11: memref<9x16xf32, #tpu.memory_space<vmem>>, %arg12: memref<8x256xf32, #tpu.memory_space<vmem>>, %arg13: memref<8x64xf32, #tpu.memory_space<vmem>>, %arg14: memref<8x16xf32, #tpu.memory_space<vmem>>, %arg15: memref<256x64xbf16, #tpu.memory_space<vmem>>, %arg16: memref<64x16xbf16, #tpu.memory_space<vmem>>, %arg17: memref<16x256xbf16, #tpu.memory_space<vmem>>, %arg18: memref<1x8x256xf32, #tpu.memory_space<vmem>>, %arg19: memref<1x8x256xf32, #tpu.memory_space<vmem>>, %arg20: memref<1x8x256xf32, #tpu.memory_space<vmem>>) attributes {dimension_semantics = [#tpu.dimension_semantics<parallel>], iteration_bounds = array<i64: 2>, scalar_prefetch = 0 : i64, scratch_operands = 0 : i64, tpu.core_type = #tpu.core_type<tc>, window_params = [{transform_indices = @transform_0, window_bounds = array<i64: 1, 8, 256>}, {pipeline_mode = #tpu.pipeline_mode<synchronous>, transform_indices = @transform_1, window_bounds = array<i64: 32, 80>}, {pipeline_mode = #tpu.pipeline_mode<synchronous>, transform_indices = @transform_2, window_bounds = array<i64: 32, 296>}, {pipeline_mode = #tpu.pipeline_mode<synchronous>, transform_indices = @transform_3, window_bounds = array<i64: 32, 296>}, {pipeline_mode = #tpu.pipeline_mode<synchronous>, transform_indices = @transform_4, window_bounds = array<i64: 32, 296>}, {pipeline_mode = #tpu.pipeline_mode<synchronous>, transform_indices = @transform_5, window_bounds = array<i64: 8, 296>}, {pipeline_mode = #tpu.pipeline_mode<synchronous>, transform_indices = @transform_6, window_bounds = array<i64: 8, 80>}, {pipeline_mode = #tpu.pipeline_mode<synchronous>, transform_indices = @transform_7, window_bounds = array<i64: 8, 80>}, {pipeline_mode = #tpu.pipeline_mode<synchronous>, transform_indices = @transform_8, window_bounds = array<i64: 9, 256>}, {pipeline_mode = #tpu.pipeline_mode<synchronous>, transform_indices = @transform_9, window_bounds = array<i64: 9, 64>}, {pipeline_mode = #tpu.pipeline_mode<synchronous>, transform_indices = @transform_10, window_bounds = array<i64: 9, 16>}, {pipeline_mode = #tpu.pipeline_mode<synchronous>, transform_indices = @transform_11, window_bounds = array<i64: 8, 256>}, {pipeline_mode = #tpu.pipeline_mode<synchronous>, transform_indices = @transform_12, window_bounds = array<i64: 8, 64>}, {pipeline_mode = #tpu.pipeline_mode<synchronous>, transform_indices = @transform_13, window_bounds = array<i64: 8, 16>}, {pipeline_mode = #tpu.pipeline_mode<synchronous>, transform_indices = @transform_14, window_bounds = array<i64: 256, 64>}, {pipeline_mode = #tpu.pipeline_mode<synchronous>, transform_indices = @transform_15, window_bounds = array<i64: 64, 16>}, {pipeline_mode = #tpu.pipeline_mode<synchronous>, transform_indices = @transform_16, window_bounds = array<i64: 16, 256>}, {transform_indices = @transform_17, window_bounds = array<i64: 1, 8, 256>}, {transform_indices = @transform_18, window_bounds = array<i64: 1, 8, 256>}, {transform_indices = @transform_19, window_bounds = array<i64: 1, 8, 256>}]} {
    %c0 = arith.constant 0 : index
    %c0_0 = arith.constant 0 : index
    %0 = vector.load %arg9[%c0, %c0_0] : memref<9x256xf32, #tpu.memory_space<vmem>>, vector<9x256xf32>
    %c0_1 = arith.constant 0 : index
    %c0_2 = arith.constant 0 : index
    %1 = vector.load %arg10[%c0_1, %c0_2] : memref<9x64xf32, #tpu.memory_space<vmem>>, vector<9x64xf32>
    %c0_3 = arith.constant 0 : index
    %c0_4 = arith.constant 0 : index
    %2 = vector.load %arg11[%c0_3, %c0_4] : memref<9x16xf32, #tpu.memory_space<vmem>>, vector<9x16xf32>
    %c0_5 = arith.constant 0 : index
    %c0_6 = arith.constant 0 : index
    %3 = vector.load %arg12[%c0_5, %c0_6] : memref<8x256xf32, #tpu.memory_space<vmem>>, vector<8x256xf32>
    %c0_7 = arith.constant 0 : index
    %c0_8 = arith.constant 0 : index
    %4 = vector.load %arg13[%c0_7, %c0_8] : memref<8x64xf32, #tpu.memory_space<vmem>>, vector<8x64xf32>
    %c0_9 = arith.constant 0 : index
    %c0_10 = arith.constant 0 : index
    %5 = vector.load %arg14[%c0_9, %c0_10] : memref<8x16xf32, #tpu.memory_space<vmem>>, vector<8x16xf32>
    %c0_11 = arith.constant 0 : index
    %c0_12 = arith.constant 0 : index
    %c0_13 = arith.constant 0 : index
    %6 = vector.load %arg1[%c0_11, %c0_12, %c0_13] : memref<1x8x256xf32, #tpu.memory_space<vmem>>, vector<1x8x256xf32>
    %7 = vector.shape_cast %6 : vector<1x8x256xf32> to vector<8x256xf32>
    %c17_i32 = arith.constant 17 : i32
    %8 = tpu.dynamic_rotate %7 by %c17_i32 dim 1 : vector<8x256xf32>, i32 -> vector<8x256xf32>
    %9 = vector.extract_strided_slice %0 {offsets = [0, 0], sizes = [1, 256], strides = [1, 1]} : vector<9x256xf32> to vector<1x256xf32>
    %10 = vector.broadcast %9 : vector<1x256xf32> to vector<8x256xf32>
    %11 = arith.mulf %8, %10 : vector<8x256xf32>
    %c16_i32 = arith.constant 16 : i32
    %12 = tpu.dynamic_rotate %7 by %c16_i32 dim 1 : vector<8x256xf32>, i32 -> vector<8x256xf32>
    %13 = vector.extract_strided_slice %0 {offsets = [1, 0], sizes = [1, 256], strides = [1, 1]} : vector<9x256xf32> to vector<1x256xf32>
    %14 = vector.broadcast %13 : vector<1x256xf32> to vector<8x256xf32>
    %15 = arith.mulf %12, %14 : vector<8x256xf32>
    %c15_i32 = arith.constant 15 : i32
    %16 = tpu.dynamic_rotate %7 by %c15_i32 dim 1 : vector<8x256xf32>, i32 -> vector<8x256xf32>
    %17 = vector.extract_strided_slice %0 {offsets = [2, 0], sizes = [1, 256], strides = [1, 1]} : vector<9x256xf32> to vector<1x256xf32>
    %18 = vector.broadcast %17 : vector<1x256xf32> to vector<8x256xf32>
    %19 = arith.mulf %16, %18 : vector<8x256xf32>
    %c1_i32 = arith.constant 1 : i32
    %20 = tpu.dynamic_rotate %7 by %c1_i32 dim 1 : vector<8x256xf32>, i32 -> vector<8x256xf32>
    %21 = vector.extract_strided_slice %0 {offsets = [3, 0], sizes = [1, 256], strides = [1, 1]} : vector<9x256xf32> to vector<1x256xf32>
    %22 = vector.broadcast %21 : vector<1x256xf32> to vector<8x256xf32>
    %23 = arith.mulf %20, %22 : vector<8x256xf32>
    %c255_i32 = arith.constant 255 : i32
    %24 = tpu.dynamic_rotate %7 by %c255_i32 dim 1 : vector<8x256xf32>, i32 -> vector<8x256xf32>
    %25 = vector.extract_strided_slice %0 {offsets = [5, 0], sizes = [1, 256], strides = [1, 1]} : vector<9x256xf32> to vector<1x256xf32>
    %26 = vector.broadcast %25 : vector<1x256xf32> to vector<8x256xf32>
    %27 = arith.mulf %24, %26 : vector<8x256xf32>
    %c241_i32 = arith.constant 241 : i32
    %28 = tpu.dynamic_rotate %7 by %c241_i32 dim 1 : vector<8x256xf32>, i32 -> vector<8x256xf32>
    %29 = vector.extract_strided_slice %0 {offsets = [6, 0], sizes = [1, 256], strides = [1, 1]} : vector<9x256xf32> to vector<1x256xf32>
    %30 = vector.broadcast %29 : vector<1x256xf32> to vector<8x256xf32>
    %31 = arith.mulf %28, %30 : vector<8x256xf32>
    %c240_i32 = arith.constant 240 : i32
    %32 = tpu.dynamic_rotate %7 by %c240_i32 dim 1 : vector<8x256xf32>, i32 -> vector<8x256xf32>
    %33 = vector.extract_strided_slice %0 {offsets = [7, 0], sizes = [1, 256], strides = [1, 1]} : vector<9x256xf32> to vector<1x256xf32>
    %34 = vector.broadcast %33 : vector<1x256xf32> to vector<8x256xf32>
    %35 = arith.mulf %32, %34 : vector<8x256xf32>
    %c239_i32 = arith.constant 239 : i32
    %36 = tpu.dynamic_rotate %7 by %c239_i32 dim 1 : vector<8x256xf32>, i32 -> vector<8x256xf32>
    %37 = vector.extract_strided_slice %0 {offsets = [8, 0], sizes = [1, 256], strides = [1, 1]} : vector<9x256xf32> to vector<1x256xf32>
    %38 = vector.broadcast %37 : vector<1x256xf32> to vector<8x256xf32>
    %39 = arith.mulf %36, %38 : vector<8x256xf32>
    %40 = tpu.concatenate %11, %15, %19, %23, %7, %27, %31, %35, %39, %3 in 0 : vector<8x256xf32>, vector<8x256xf32>, vector<8x256xf32>, vector<8x256xf32>, vector<8x256xf32>, vector<8x256xf32>, vector<8x256xf32>, vector<8x256xf32>, vector<8x256xf32>, vector<8x256xf32> -> vector<80x256xf32>
    %41 = arith.truncf %40 : vector<80x256xf32> to vector<80x256xbf16>
    %c0_14 = arith.constant 0 : index
    %c0_15 = arith.constant 0 : index
    %42 = vector.load %arg2[%c0_14, %c0_15] : memref<32x80xbf16, #tpu.memory_space<vmem>>, vector<32x80xbf16>
    %cst = arith.constant dense<0.000000e+00> : vector<32x256xf32>
    %43 = tpu.matmul %42, %41, %cst {dimension_numbers = #tpu.dot_dimension_numbers<[1], [0], [0], [1], [0, 0, 1, 1], [], []>} : vector<32x80xbf16>, vector<80x256xbf16>, vector<32x256xf32> -> vector<32x256xf32>
    %cst_16 = arith.constant 0.000000e+00 : f32
    %44 = vector.broadcast %cst_16 : f32 to vector<32x256xf32>
    %45 = arith.maximumf %43, %44 : vector<32x256xf32>
    %c17_i32_17 = arith.constant 17 : i32
    %46 = tpu.dynamic_rotate %45 by %c17_i32_17 dim 1 : vector<32x256xf32>, i32 -> vector<32x256xf32>
    %47 = vector.extract_strided_slice %0 {offsets = [0, 0], sizes = [1, 256], strides = [1, 1]} : vector<9x256xf32> to vector<1x256xf32>
    %48 = vector.broadcast %47 : vector<1x256xf32> to vector<32x256xf32>
    %49 = arith.mulf %46, %48 : vector<32x256xf32>
    %c16_i32_18 = arith.constant 16 : i32
    %50 = tpu.dynamic_rotate %45 by %c16_i32_18 dim 1 : vector<32x256xf32>, i32 -> vector<32x256xf32>
    %51 = vector.extract_strided_slice %0 {offsets = [1, 0], sizes = [1, 256], strides = [1, 1]} : vector<9x256xf32> to vector<1x256xf32>
    %52 = vector.broadcast %51 : vector<1x256xf32> to vector<32x256xf32>
    %53 = arith.mulf %50, %52 : vector<32x256xf32>
    %c15_i32_19 = arith.constant 15 : i32
    %54 = tpu.dynamic_rotate %45 by %c15_i32_19 dim 1 : vector<32x256xf32>, i32 -> vector<32x256xf32>
    %55 = vector.extract_strided_slice %0 {offsets = [2, 0], sizes = [1, 256], strides = [1, 1]} : vector<9x256xf32> to vector<1x256xf32>
    %56 = vector.broadcast %55 : vector<1x256xf32> to vector<32x256xf32>
    %57 = arith.mulf %54, %56 : vector<32x256xf32>
    %c1_i32_20 = arith.constant 1 : i32
    %58 = tpu.dynamic_rotate %45 by %c1_i32_20 dim 1 : vector<32x256xf32>, i32 -> vector<32x256xf32>
    %59 = vector.extract_strided_slice %0 {offsets = [3, 0], sizes = [1, 256], strides = [1, 1]} : vector<9x256xf32> to vector<1x256xf32>
    %60 = vector.broadcast %59 : vector<1x256xf32> to vector<32x256xf32>
    %61 = arith.mulf %58, %60 : vector<32x256xf32>
    %c255_i32_21 = arith.constant 255 : i32
    %62 = tpu.dynamic_rotate %45 by %c255_i32_21 dim 1 : vector<32x256xf32>, i32 -> vector<32x256xf32>
    %63 = vector.extract_strided_slice %0 {offsets = [5, 0], sizes = [1, 256], strides = [1, 1]} : vector<9x256xf32> to vector<1x256xf32>
    %64 = vector.broadcast %63 : vector<1x256xf32> to vector<32x256xf32>
    %65 = arith.mulf %62, %64 : vector<32x256xf32>
    %c241_i32_22 = arith.constant 241 : i32
    %66 = tpu.dynamic_rotate %45 by %c241_i32_22 dim 1 : vector<32x256xf32>, i32 -> vector<32x256xf32>
    %67 = vector.extract_strided_slice %0 {offsets = [6, 0], sizes = [1, 256], strides = [1, 1]} : vector<9x256xf32> to vector<1x256xf32>
    %68 = vector.broadcast %67 : vector<1x256xf32> to vector<32x256xf32>
    %69 = arith.mulf %66, %68 : vector<32x256xf32>
    %c240_i32_23 = arith.constant 240 : i32
    %70 = tpu.dynamic_rotate %45 by %c240_i32_23 dim 1 : vector<32x256xf32>, i32 -> vector<32x256xf32>
    %71 = vector.extract_strided_slice %0 {offsets = [7, 0], sizes = [1, 256], strides = [1, 1]} : vector<9x256xf32> to vector<1x256xf32>
    %72 = vector.broadcast %71 : vector<1x256xf32> to vector<32x256xf32>
    %73 = arith.mulf %70, %72 : vector<32x256xf32>
    %c239_i32_24 = arith.constant 239 : i32
    %74 = tpu.dynamic_rotate %45 by %c239_i32_24 dim 1 : vector<32x256xf32>, i32 -> vector<32x256xf32>
    %75 = vector.extract_strided_slice %0 {offsets = [8, 0], sizes = [1, 256], strides = [1, 1]} : vector<9x256xf32> to vector<1x256xf32>
    %76 = vector.broadcast %75 : vector<1x256xf32> to vector<32x256xf32>
    %77 = arith.mulf %74, %76 : vector<32x256xf32>
    %78 = tpu.concatenate %49, %53, %57, %61, %45, %65, %69, %73, %77, %3 in 0 : vector<32x256xf32>, vector<32x256xf32>, vector<32x256xf32>, vector<32x256xf32>, vector<32x256xf32>, vector<32x256xf32>, vector<32x256xf32>, vector<32x256xf32>, vector<32x256xf32>, vector<8x256xf32> -> vector<296x256xf32>
    %79 = arith.truncf %78 : vector<296x256xf32> to vector<296x256xbf16>
    %c0_25 = arith.constant 0 : index
    %c0_26 = arith.constant 0 : index
    %80 = vector.load %arg3[%c0_25, %c0_26] : memref<32x296xbf16, #tpu.memory_space<vmem>>, vector<32x296xbf16>
    %cst_27 = arith.constant dense<0.000000e+00> : vector<32x256xf32>
    %81 = tpu.matmul %80, %79, %cst_27 {dimension_numbers = #tpu.dot_dimension_numbers<[1], [0], [0], [1], [0, 0, 1, 1], [], []>} : vector<32x296xbf16>, vector<296x256xbf16>, vector<32x256xf32> -> vector<32x256xf32>
    %cst_28 = arith.constant 0.000000e+00 : f32
    %82 = vector.broadcast %cst_28 : f32 to vector<32x256xf32>
    %83 = arith.maximumf %81, %82 : vector<32x256xf32>
    %84 = arith.truncf %83 : vector<32x256xf32> to vector<32x256xbf16>
    %c0_29 = arith.constant 0 : index
    %c0_30 = arith.constant 0 : index
    %85 = vector.load %arg15[%c0_29, %c0_30] : memref<256x64xbf16, #tpu.memory_space<vmem>>, vector<256x64xbf16>
    %cst_31 = arith.constant dense<0.000000e+00> : vector<32x64xf32>
    %86 = tpu.matmul %84, %85, %cst_31 {dimension_numbers = #tpu.dot_dimension_numbers<[1], [0], [0], [1], [0, 0, 1, 1], [], []>} : vector<32x256xbf16>, vector<256x64xbf16>, vector<32x64xf32> -> vector<32x64xf32>
    %c9_i32 = arith.constant 9 : i32
    %87 = tpu.dynamic_rotate %86 by %c9_i32 dim 1 : vector<32x64xf32>, i32 -> vector<32x64xf32>
    %88 = vector.extract_strided_slice %1 {offsets = [0, 0], sizes = [1, 64], strides = [1, 1]} : vector<9x64xf32> to vector<1x64xf32>
    %89 = vector.broadcast %88 : vector<1x64xf32> to vector<32x64xf32>
    %90 = arith.mulf %87, %89 : vector<32x64xf32>
    %c8_i32 = arith.constant 8 : i32
    %91 = tpu.dynamic_rotate %86 by %c8_i32 dim 1 : vector<32x64xf32>, i32 -> vector<32x64xf32>
    %92 = vector.extract_strided_slice %1 {offsets = [1, 0], sizes = [1, 64], strides = [1, 1]} : vector<9x64xf32> to vector<1x64xf32>
    %93 = vector.broadcast %92 : vector<1x64xf32> to vector<32x64xf32>
    %94 = arith.mulf %91, %93 : vector<32x64xf32>
    %c7_i32 = arith.constant 7 : i32
    %95 = tpu.dynamic_rotate %86 by %c7_i32 dim 1 : vector<32x64xf32>, i32 -> vector<32x64xf32>
    %96 = vector.extract_strided_slice %1 {offsets = [2, 0], sizes = [1, 64], strides = [1, 1]} : vector<9x64xf32> to vector<1x64xf32>
    %97 = vector.broadcast %96 : vector<1x64xf32> to vector<32x64xf32>
    %98 = arith.mulf %95, %97 : vector<32x64xf32>
    %c1_i32_32 = arith.constant 1 : i32
    %99 = tpu.dynamic_rotate %86 by %c1_i32_32 dim 1 : vector<32x64xf32>, i32 -> vector<32x64xf32>
    %100 = vector.extract_strided_slice %1 {offsets = [3, 0], sizes = [1, 64], strides = [1, 1]} : vector<9x64xf32> to vector<1x64xf32>
    %101 = vector.broadcast %100 : vector<1x64xf32> to vector<32x64xf32>
    %102 = arith.mulf %99, %101 : vector<32x64xf32>
    %c63_i32 = arith.constant 63 : i32
    %103 = tpu.dynamic_rotate %86 by %c63_i32 dim 1 : vector<32x64xf32>, i32 -> vector<32x64xf32>
    %104 = vector.extract_strided_slice %1 {offsets = [5, 0], sizes = [1, 64], strides = [1, 1]} : vector<9x64xf32> to vector<1x64xf32>
    %105 = vector.broadcast %104 : vector<1x64xf32> to vector<32x64xf32>
    %106 = arith.mulf %103, %105 : vector<32x64xf32>
    %c57_i32 = arith.constant 57 : i32
    %107 = tpu.dynamic_rotate %86 by %c57_i32 dim 1 : vector<32x64xf32>, i32 -> vector<32x64xf32>
    %108 = vector.extract_strided_slice %1 {offsets = [6, 0], sizes = [1, 64], strides = [1, 1]} : vector<9x64xf32> to vector<1x64xf32>
    %109 = vector.broadcast %108 : vector<1x64xf32> to vector<32x64xf32>
    %110 = arith.mulf %107, %109 : vector<32x64xf32>
    %c56_i32 = arith.constant 56 : i32
    %111 = tpu.dynamic_rotate %86 by %c56_i32 dim 1 : vector<32x64xf32>, i32 -> vector<32x64xf32>
    %112 = vector.extract_strided_slice %1 {offsets = [7, 0], sizes = [1, 64], strides = [1, 1]} : vector<9x64xf32> to vector<1x64xf32>
    %113 = vector.broadcast %112 : vector<1x64xf32> to vector<32x64xf32>
    %114 = arith.mulf %111, %113 : vector<32x64xf32>
    %c55_i32 = arith.constant 55 : i32
    %115 = tpu.dynamic_rotate %86 by %c55_i32 dim 1 : vector<32x64xf32>, i32 -> vector<32x64xf32>
    %116 = vector.extract_strided_slice %1 {offsets = [8, 0], sizes = [1, 64], strides = [1, 1]} : vector<9x64xf32> to vector<1x64xf32>
    %117 = vector.broadcast %116 : vector<1x64xf32> to vector<32x64xf32>
    %118 = arith.mulf %115, %117 : vector<32x64xf32>
    %119 = tpu.concatenate %90, %94, %98, %102, %86, %106, %110, %114, %118, %4 in 0 : vector<32x64xf32>, vector<32x64xf32>, vector<32x64xf32>, vector<32x64xf32>, vector<32x64xf32>, vector<32x64xf32>, vector<32x64xf32>, vector<32x64xf32>, vector<32x64xf32>, vector<8x64xf32> -> vector<296x64xf32>
    %120 = arith.truncf %119 : vector<296x64xf32> to vector<296x64xbf16>
    %c0_33 = arith.constant 0 : index
    %c0_34 = arith.constant 0 : index
    %121 = vector.load %arg4[%c0_33, %c0_34] : memref<32x296xbf16, #tpu.memory_space<vmem>>, vector<32x296xbf16>
    %cst_35 = arith.constant dense<0.000000e+00> : vector<32x64xf32>
    %122 = tpu.matmul %121, %120, %cst_35 {dimension_numbers = #tpu.dot_dimension_numbers<[1], [0], [0], [1], [0, 0, 1, 1], [], []>} : vector<32x296xbf16>, vector<296x64xbf16>, vector<32x64xf32> -> vector<32x64xf32>
    %cst_36 = arith.constant 0.000000e+00 : f32
    %123 = vector.broadcast %cst_36 : f32 to vector<32x64xf32>
    %124 = arith.maximumf %122, %123 : vector<32x64xf32>
    %c9_i32_37 = arith.constant 9 : i32
    %125 = tpu.dynamic_rotate %124 by %c9_i32_37 dim 1 : vector<32x64xf32>, i32 -> vector<32x64xf32>
    %126 = vector.extract_strided_slice %1 {offsets = [0, 0], sizes = [1, 64], strides = [1, 1]} : vector<9x64xf32> to vector<1x64xf32>
    %127 = vector.broadcast %126 : vector<1x64xf32> to vector<32x64xf32>
    %128 = arith.mulf %125, %127 : vector<32x64xf32>
    %c8_i32_38 = arith.constant 8 : i32
    %129 = tpu.dynamic_rotate %124 by %c8_i32_38 dim 1 : vector<32x64xf32>, i32 -> vector<32x64xf32>
    %130 = vector.extract_strided_slice %1 {offsets = [1, 0], sizes = [1, 64], strides = [1, 1]} : vector<9x64xf32> to vector<1x64xf32>
    %131 = vector.broadcast %130 : vector<1x64xf32> to vector<32x64xf32>
    %132 = arith.mulf %129, %131 : vector<32x64xf32>
    %c7_i32_39 = arith.constant 7 : i32
    %133 = tpu.dynamic_rotate %124 by %c7_i32_39 dim 1 : vector<32x64xf32>, i32 -> vector<32x64xf32>
    %134 = vector.extract_strided_slice %1 {offsets = [2, 0], sizes = [1, 64], strides = [1, 1]} : vector<9x64xf32> to vector<1x64xf32>
    %135 = vector.broadcast %134 : vector<1x64xf32> to vector<32x64xf32>
    %136 = arith.mulf %133, %135 : vector<32x64xf32>
    %c1_i32_40 = arith.constant 1 : i32
    %137 = tpu.dynamic_rotate %124 by %c1_i32_40 dim 1 : vector<32x64xf32>, i32 -> vector<32x64xf32>
    %138 = vector.extract_strided_slice %1 {offsets = [3, 0], sizes = [1, 64], strides = [1, 1]} : vector<9x64xf32> to vector<1x64xf32>
    %139 = vector.broadcast %138 : vector<1x64xf32> to vector<32x64xf32>
    %140 = arith.mulf %137, %139 : vector<32x64xf32>
    %c63_i32_41 = arith.constant 63 : i32
    %141 = tpu.dynamic_rotate %124 by %c63_i32_41 dim 1 : vector<32x64xf32>, i32 -> vector<32x64xf32>
    %142 = vector.extract_strided_slice %1 {offsets = [5, 0], sizes = [1, 64], strides = [1, 1]} : vector<9x64xf32> to vector<1x64xf32>
    %143 = vector.broadcast %142 : vector<1x64xf32> to vector<32x64xf32>
    %144 = arith.mulf %141, %143 : vector<32x64xf32>
    %c57_i32_42 = arith.constant 57 : i32
    %145 = tpu.dynamic_rotate %124 by %c57_i32_42 dim 1 : vector<32x64xf32>, i32 -> vector<32x64xf32>
    %146 = vector.extract_strided_slice %1 {offsets = [6, 0], sizes = [1, 64], strides = [1, 1]} : vector<9x64xf32> to vector<1x64xf32>
    %147 = vector.broadcast %146 : vector<1x64xf32> to vector<32x64xf32>
    %148 = arith.mulf %145, %147 : vector<32x64xf32>
    %c56_i32_43 = arith.constant 56 : i32
    %149 = tpu.dynamic_rotate %124 by %c56_i32_43 dim 1 : vector<32x64xf32>, i32 -> vector<32x64xf32>
    %150 = vector.extract_strided_slice %1 {offsets = [7, 0], sizes = [1, 64], strides = [1, 1]} : vector<9x64xf32> to vector<1x64xf32>
    %151 = vector.broadcast %150 : vector<1x64xf32> to vector<32x64xf32>
    %152 = arith.mulf %149, %151 : vector<32x64xf32>
    %c55_i32_44 = arith.constant 55 : i32
    %153 = tpu.dynamic_rotate %124 by %c55_i32_44 dim 1 : vector<32x64xf32>, i32 -> vector<32x64xf32>
    %154 = vector.extract_strided_slice %1 {offsets = [8, 0], sizes = [1, 64], strides = [1, 1]} : vector<9x64xf32> to vector<1x64xf32>
    %155 = vector.broadcast %154 : vector<1x64xf32> to vector<32x64xf32>
    %156 = arith.mulf %153, %155 : vector<32x64xf32>
    %157 = tpu.concatenate %128, %132, %136, %140, %124, %144, %148, %152, %156, %4 in 0 : vector<32x64xf32>, vector<32x64xf32>, vector<32x64xf32>, vector<32x64xf32>, vector<32x64xf32>, vector<32x64xf32>, vector<32x64xf32>, vector<32x64xf32>, vector<32x64xf32>, vector<8x64xf32> -> vector<296x64xf32>
    %158 = arith.truncf %157 : vector<296x64xf32> to vector<296x64xbf16>
    %c0_45 = arith.constant 0 : index
    %c0_46 = arith.constant 0 : index
    %159 = vector.load %arg5[%c0_45, %c0_46] : memref<32x296xbf16, #tpu.memory_space<vmem>>, vector<32x296xbf16>
    %cst_47 = arith.constant dense<0.000000e+00> : vector<32x64xf32>
    %160 = tpu.matmul %159, %158, %cst_47 {dimension_numbers = #tpu.dot_dimension_numbers<[1], [0], [0], [1], [0, 0, 1, 1], [], []>} : vector<32x296xbf16>, vector<296x64xbf16>, vector<32x64xf32> -> vector<32x64xf32>
    %cst_48 = arith.constant 0.000000e+00 : f32
    %161 = vector.broadcast %cst_48 : f32 to vector<32x64xf32>
    %162 = arith.maximumf %160, %161 : vector<32x64xf32>
    %163 = arith.truncf %162 : vector<32x64xf32> to vector<32x64xbf16>
    %c0_49 = arith.constant 0 : index
    %c0_50 = arith.constant 0 : index
    %164 = vector.load %arg16[%c0_49, %c0_50] : memref<64x16xbf16, #tpu.memory_space<vmem>>, vector<64x16xbf16>
    %cst_51 = arith.constant dense<0.000000e+00> : vector<32x16xf32>
    %165 = tpu.matmul %163, %164, %cst_51 {dimension_numbers = #tpu.dot_dimension_numbers<[1], [0], [0], [1], [0, 0, 1, 1], [], []>} : vector<32x64xbf16>, vector<64x16xbf16>, vector<32x16xf32> -> vector<32x16xf32>
    %c5_i32 = arith.constant 5 : i32
    %166 = tpu.dynamic_rotate %165 by %c5_i32 dim 1 : vector<32x16xf32>, i32 -> vector<32x16xf32>
    %167 = vector.extract_strided_slice %2 {offsets = [0, 0], sizes = [1, 16], strides = [1, 1]} : vector<9x16xf32> to vector<1x16xf32>
    %168 = vector.broadcast %167 : vector<1x16xf32> to vector<32x16xf32>
    %169 = arith.mulf %166, %168 : vector<32x16xf32>
    %c4_i32 = arith.constant 4 : i32
    %170 = tpu.dynamic_rotate %165 by %c4_i32 dim 1 : vector<32x16xf32>, i32 -> vector<32x16xf32>
    %171 = vector.extract_strided_slice %2 {offsets = [1, 0], sizes = [1, 16], strides = [1, 1]} : vector<9x16xf32> to vector<1x16xf32>
    %172 = vector.broadcast %171 : vector<1x16xf32> to vector<32x16xf32>
    %173 = arith.mulf %170, %172 : vector<32x16xf32>
    %c3_i32 = arith.constant 3 : i32
    %174 = tpu.dynamic_rotate %165 by %c3_i32 dim 1 : vector<32x16xf32>, i32 -> vector<32x16xf32>
    %175 = vector.extract_strided_slice %2 {offsets = [2, 0], sizes = [1, 16], strides = [1, 1]} : vector<9x16xf32> to vector<1x16xf32>
    %176 = vector.broadcast %175 : vector<1x16xf32> to vector<32x16xf32>
    %177 = arith.mulf %174, %176 : vector<32x16xf32>
    %c1_i32_52 = arith.constant 1 : i32
    %178 = tpu.dynamic_rotate %165 by %c1_i32_52 dim 1 : vector<32x16xf32>, i32 -> vector<32x16xf32>
    %179 = vector.extract_strided_slice %2 {offsets = [3, 0], sizes = [1, 16], strides = [1, 1]} : vector<9x16xf32> to vector<1x16xf32>
    %180 = vector.broadcast %179 : vector<1x16xf32> to vector<32x16xf32>
    %181 = arith.mulf %178, %180 : vector<32x16xf32>
    %c15_i32_53 = arith.constant 15 : i32
    %182 = tpu.dynamic_rotate %165 by %c15_i32_53 dim 1 : vector<32x16xf32>, i32 -> vector<32x16xf32>
    %183 = vector.extract_strided_slice %2 {offsets = [5, 0], sizes = [1, 16], strides = [1, 1]} : vector<9x16xf32> to vector<1x16xf32>
    %184 = vector.broadcast %183 : vector<1x16xf32> to vector<32x16xf32>
    %185 = arith.mulf %182, %184 : vector<32x16xf32>
    %c13_i32 = arith.constant 13 : i32
    %186 = tpu.dynamic_rotate %165 by %c13_i32 dim 1 : vector<32x16xf32>, i32 -> vector<32x16xf32>
    %187 = vector.extract_strided_slice %2 {offsets = [6, 0], sizes = [1, 16], strides = [1, 1]} : vector<9x16xf32> to vector<1x16xf32>
    %188 = vector.broadcast %187 : vector<1x16xf32> to vector<32x16xf32>
    %189 = arith.mulf %186, %188 : vector<32x16xf32>
    %c12_i32 = arith.constant 12 : i32
    %190 = tpu.dynamic_rotate %165 by %c12_i32 dim 1 : vector<32x16xf32>, i32 -> vector<32x16xf32>
    %191 = vector.extract_strided_slice %2 {offsets = [7, 0], sizes = [1, 16], strides = [1, 1]} : vector<9x16xf32> to vector<1x16xf32>
    %192 = vector.broadcast %191 : vector<1x16xf32> to vector<32x16xf32>
    %193 = arith.mulf %190, %192 : vector<32x16xf32>
    %c11_i32 = arith.constant 11 : i32
    %194 = tpu.dynamic_rotate %165 by %c11_i32 dim 1 : vector<32x16xf32>, i32 -> vector<32x16xf32>
    %195 = vector.extract_strided_slice %2 {offsets = [8, 0], sizes = [1, 16], strides = [1, 1]} : vector<9x16xf32> to vector<1x16xf32>
    %196 = vector.broadcast %195 : vector<1x16xf32> to vector<32x16xf32>
    %197 = arith.mulf %194, %196 : vector<32x16xf32>
    %198 = tpu.concatenate %169, %173, %177, %181, %165, %185, %189, %193, %197, %5 in 0 : vector<32x16xf32>, vector<32x16xf32>, vector<32x16xf32>, vector<32x16xf32>, vector<32x16xf32>, vector<32x16xf32>, vector<32x16xf32>, vector<32x16xf32>, vector<32x16xf32>, vector<8x16xf32> -> vector<296x16xf32>
    %199 = arith.truncf %198 : vector<296x16xf32> to vector<296x16xbf16>
    %c0_54 = arith.constant 0 : index
    %c0_55 = arith.constant 0 : index
    %200 = vector.load %arg6[%c0_54, %c0_55] : memref<8x296xbf16, #tpu.memory_space<vmem>>, vector<8x296xbf16>
    %cst_56 = arith.constant dense<0.000000e+00> : vector<8x16xf32>
    %201 = tpu.matmul %200, %199, %cst_56 {dimension_numbers = #tpu.dot_dimension_numbers<[1], [0], [0], [1], [0, 0, 1, 1], [], []>} : vector<8x296xbf16>, vector<296x16xbf16>, vector<8x16xf32> -> vector<8x16xf32>
    %cst_57 = arith.constant 0.000000e+00 : f32
    %202 = vector.broadcast %cst_57 : f32 to vector<8x16xf32>
    %203 = arith.maximumf %201, %202 : vector<8x16xf32>
    %204 = arith.truncf %203 : vector<8x16xf32> to vector<8x16xbf16>
    %c0_58 = arith.constant 0 : index
    %c0_59 = arith.constant 0 : index
    %205 = vector.load %arg17[%c0_58, %c0_59] : memref<16x256xbf16, #tpu.memory_space<vmem>>, vector<16x256xbf16>
    %cst_60 = arith.constant dense<0.000000e+00> : vector<8x256xf32>
    %206 = tpu.matmul %204, %205, %cst_60 {dimension_numbers = #tpu.dot_dimension_numbers<[1], [0], [0], [1], [0, 0, 1, 1], [], []>} : vector<8x16xbf16>, vector<16x256xbf16>, vector<8x256xf32> -> vector<8x256xf32>
    %c17_i32_61 = arith.constant 17 : i32
    %207 = tpu.dynamic_rotate %206 by %c17_i32_61 dim 1 : vector<8x256xf32>, i32 -> vector<8x256xf32>
    %208 = vector.extract_strided_slice %0 {offsets = [0, 0], sizes = [1, 256], strides = [1, 1]} : vector<9x256xf32> to vector<1x256xf32>
    %209 = vector.broadcast %208 : vector<1x256xf32> to vector<8x256xf32>
    %210 = arith.mulf %207, %209 : vector<8x256xf32>
    %c16_i32_62 = arith.constant 16 : i32
    %211 = tpu.dynamic_rotate %206 by %c16_i32_62 dim 1 : vector<8x256xf32>, i32 -> vector<8x256xf32>
    %212 = vector.extract_strided_slice %0 {offsets = [1, 0], sizes = [1, 256], strides = [1, 1]} : vector<9x256xf32> to vector<1x256xf32>
    %213 = vector.broadcast %212 : vector<1x256xf32> to vector<8x256xf32>
    %214 = arith.mulf %211, %213 : vector<8x256xf32>
    %c15_i32_63 = arith.constant 15 : i32
    %215 = tpu.dynamic_rotate %206 by %c15_i32_63 dim 1 : vector<8x256xf32>, i32 -> vector<8x256xf32>
    %216 = vector.extract_strided_slice %0 {offsets = [2, 0], sizes = [1, 256], strides = [1, 1]} : vector<9x256xf32> to vector<1x256xf32>
    %217 = vector.broadcast %216 : vector<1x256xf32> to vector<8x256xf32>
    %218 = arith.mulf %215, %217 : vector<8x256xf32>
    %c1_i32_64 = arith.constant 1 : i32
    %219 = tpu.dynamic_rotate %206 by %c1_i32_64 dim 1 : vector<8x256xf32>, i32 -> vector<8x256xf32>
    %220 = vector.extract_strided_slice %0 {offsets = [3, 0], sizes = [1, 256], strides = [1, 1]} : vector<9x256xf32> to vector<1x256xf32>
    %221 = vector.broadcast %220 : vector<1x256xf32> to vector<8x256xf32>
    %222 = arith.mulf %219, %221 : vector<8x256xf32>
    %c255_i32_65 = arith.constant 255 : i32
    %223 = tpu.dynamic_rotate %206 by %c255_i32_65 dim 1 : vector<8x256xf32>, i32 -> vector<8x256xf32>
    %224 = vector.extract_strided_slice %0 {offsets = [5, 0], sizes = [1, 256], strides = [1, 1]} : vector<9x256xf32> to vector<1x256xf32>
    %225 = vector.broadcast %224 : vector<1x256xf32> to vector<8x256xf32>
    %226 = arith.mulf %223, %225 : vector<8x256xf32>
    %c241_i32_66 = arith.constant 241 : i32
    %227 = tpu.dynamic_rotate %206 by %c241_i32_66 dim 1 : vector<8x256xf32>, i32 -> vector<8x256xf32>
    %228 = vector.extract_strided_slice %0 {offsets = [6, 0], sizes = [1, 256], strides = [1, 1]} : vector<9x256xf32> to vector<1x256xf32>
    %229 = vector.broadcast %228 : vector<1x256xf32> to vector<8x256xf32>
    %230 = arith.mulf %227, %229 : vector<8x256xf32>
    %c240_i32_67 = arith.constant 240 : i32
    %231 = tpu.dynamic_rotate %206 by %c240_i32_67 dim 1 : vector<8x256xf32>, i32 -> vector<8x256xf32>
    %232 = vector.extract_strided_slice %0 {offsets = [7, 0], sizes = [1, 256], strides = [1, 1]} : vector<9x256xf32> to vector<1x256xf32>
    %233 = vector.broadcast %232 : vector<1x256xf32> to vector<8x256xf32>
    %234 = arith.mulf %231, %233 : vector<8x256xf32>
    %c239_i32_68 = arith.constant 239 : i32
    %235 = tpu.dynamic_rotate %206 by %c239_i32_68 dim 1 : vector<8x256xf32>, i32 -> vector<8x256xf32>
    %236 = vector.extract_strided_slice %0 {offsets = [8, 0], sizes = [1, 256], strides = [1, 1]} : vector<9x256xf32> to vector<1x256xf32>
    %237 = vector.broadcast %236 : vector<1x256xf32> to vector<8x256xf32>
    %238 = arith.mulf %235, %237 : vector<8x256xf32>
    %239 = tpu.concatenate %210, %214, %218, %222, %206, %226, %230, %234, %238, %3 in 0 : vector<8x256xf32>, vector<8x256xf32>, vector<8x256xf32>, vector<8x256xf32>, vector<8x256xf32>, vector<8x256xf32>, vector<8x256xf32>, vector<8x256xf32>, vector<8x256xf32>, vector<8x256xf32> -> vector<80x256xf32>
    %240 = arith.truncf %239 : vector<80x256xf32> to vector<80x256xbf16>
    %c0_69 = arith.constant 0 : index
    %c0_70 = arith.constant 0 : index
    %241 = vector.load %arg7[%c0_69, %c0_70] : memref<8x80xbf16, #tpu.memory_space<vmem>>, vector<8x80xbf16>
    %cst_71 = arith.constant dense<0.000000e+00> : vector<8x256xf32>
    %242 = tpu.matmul %241, %240, %cst_71 {dimension_numbers = #tpu.dot_dimension_numbers<[1], [0], [0], [1], [0, 0, 1, 1], [], []>} : vector<8x80xbf16>, vector<80x256xbf16>, vector<8x256xf32> -> vector<8x256xf32>
    %cst_72 = arith.constant 0.000000e+00 : f32
    %243 = vector.broadcast %cst_72 : f32 to vector<8x256xf32>
    %244 = arith.maximumf %242, %243 : vector<8x256xf32>
    %c17_i32_73 = arith.constant 17 : i32
    %245 = tpu.dynamic_rotate %244 by %c17_i32_73 dim 1 : vector<8x256xf32>, i32 -> vector<8x256xf32>
    %246 = vector.extract_strided_slice %0 {offsets = [0, 0], sizes = [1, 256], strides = [1, 1]} : vector<9x256xf32> to vector<1x256xf32>
    %247 = vector.broadcast %246 : vector<1x256xf32> to vector<8x256xf32>
    %248 = arith.mulf %245, %247 : vector<8x256xf32>
    %c16_i32_74 = arith.constant 16 : i32
    %249 = tpu.dynamic_rotate %244 by %c16_i32_74 dim 1 : vector<8x256xf32>, i32 -> vector<8x256xf32>
    %250 = vector.extract_strided_slice %0 {offsets = [1, 0], sizes = [1, 256], strides = [1, 1]} : vector<9x256xf32> to vector<1x256xf32>
    %251 = vector.broadcast %250 : vector<1x256xf32> to vector<8x256xf32>
    %252 = arith.mulf %249, %251 : vector<8x256xf32>
    %c15_i32_75 = arith.constant 15 : i32
    %253 = tpu.dynamic_rotate %244 by %c15_i32_75 dim 1 : vector<8x256xf32>, i32 -> vector<8x256xf32>
    %254 = vector.extract_strided_slice %0 {offsets = [2, 0], sizes = [1, 256], strides = [1, 1]} : vector<9x256xf32> to vector<1x256xf32>
    %255 = vector.broadcast %254 : vector<1x256xf32> to vector<8x256xf32>
    %256 = arith.mulf %253, %255 : vector<8x256xf32>
    %c1_i32_76 = arith.constant 1 : i32
    %257 = tpu.dynamic_rotate %244 by %c1_i32_76 dim 1 : vector<8x256xf32>, i32 -> vector<8x256xf32>
    %258 = vector.extract_strided_slice %0 {offsets = [3, 0], sizes = [1, 256], strides = [1, 1]} : vector<9x256xf32> to vector<1x256xf32>
    %259 = vector.broadcast %258 : vector<1x256xf32> to vector<8x256xf32>
    %260 = arith.mulf %257, %259 : vector<8x256xf32>
    %c255_i32_77 = arith.constant 255 : i32
    %261 = tpu.dynamic_rotate %244 by %c255_i32_77 dim 1 : vector<8x256xf32>, i32 -> vector<8x256xf32>
    %262 = vector.extract_strided_slice %0 {offsets = [5, 0], sizes = [1, 256], strides = [1, 1]} : vector<9x256xf32> to vector<1x256xf32>
    %263 = vector.broadcast %262 : vector<1x256xf32> to vector<8x256xf32>
    %264 = arith.mulf %261, %263 : vector<8x256xf32>
    %c241_i32_78 = arith.constant 241 : i32
    %265 = tpu.dynamic_rotate %244 by %c241_i32_78 dim 1 : vector<8x256xf32>, i32 -> vector<8x256xf32>
    %266 = vector.extract_strided_slice %0 {offsets = [6, 0], sizes = [1, 256], strides = [1, 1]} : vector<9x256xf32> to vector<1x256xf32>
    %267 = vector.broadcast %266 : vector<1x256xf32> to vector<8x256xf32>
    %268 = arith.mulf %265, %267 : vector<8x256xf32>
    %c240_i32_79 = arith.constant 240 : i32
    %269 = tpu.dynamic_rotate %244 by %c240_i32_79 dim 1 : vector<8x256xf32>, i32 -> vector<8x256xf32>
    %270 = vector.extract_strided_slice %0 {offsets = [7, 0], sizes = [1, 256], strides = [1, 1]} : vector<9x256xf32> to vector<1x256xf32>
    %271 = vector.broadcast %270 : vector<1x256xf32> to vector<8x256xf32>
    %272 = arith.mulf %269, %271 : vector<8x256xf32>
    %c239_i32_80 = arith.constant 239 : i32
    %273 = tpu.dynamic_rotate %244 by %c239_i32_80 dim 1 : vector<8x256xf32>, i32 -> vector<8x256xf32>
    %274 = vector.extract_strided_slice %0 {offsets = [8, 0], sizes = [1, 256], strides = [1, 1]} : vector<9x256xf32> to vector<1x256xf32>
    %275 = vector.broadcast %274 : vector<1x256xf32> to vector<8x256xf32>
    %276 = arith.mulf %273, %275 : vector<8x256xf32>
    %277 = tpu.concatenate %248, %252, %256, %260, %244, %264, %268, %272, %276, %3 in 0 : vector<8x256xf32>, vector<8x256xf32>, vector<8x256xf32>, vector<8x256xf32>, vector<8x256xf32>, vector<8x256xf32>, vector<8x256xf32>, vector<8x256xf32>, vector<8x256xf32>, vector<8x256xf32> -> vector<80x256xf32>
    %278 = arith.truncf %277 : vector<80x256xf32> to vector<80x256xbf16>
    %c0_81 = arith.constant 0 : index
    %c0_82 = arith.constant 0 : index
    %279 = vector.load %arg8[%c0_81, %c0_82] : memref<8x80xbf16, #tpu.memory_space<vmem>>, vector<8x80xbf16>
    %cst_83 = arith.constant dense<0.000000e+00> : vector<8x256xf32>
    %280 = tpu.matmul %279, %278, %cst_83 {dimension_numbers = #tpu.dot_dimension_numbers<[1], [0], [0], [1], [0, 0, 1, 1], [], []>} : vector<8x80xbf16>, vector<80x256xbf16>, vector<8x256xf32> -> vector<8x256xf32>
    %cst_84 = arith.constant 0.000000e+00 : f32
    %281 = vector.broadcast %cst_84 : f32 to vector<8x256xf32>
    %282 = arith.maximumf %280, %281 : vector<8x256xf32>
    %cst_85 = arith.constant 8.000000e-01 : f32
    %283 = vector.broadcast %cst_85 : f32 to vector<8x256xf32>
    %284 = arith.mulf %283, %206 : vector<8x256xf32>
    %cst_86 = arith.constant 2.000000e-01 : f32
    %285 = vector.broadcast %cst_86 : f32 to vector<8x256xf32>
    %286 = arith.mulf %285, %282 : vector<8x256xf32>
    %287 = arith.addf %284, %286 : vector<8x256xf32>
    %c0_87 = arith.constant 0 : index
    %c0_88 = arith.constant 0 : index
    %c0_89 = arith.constant 0 : index
    %288 = vector.load %arg18[%c0_87, %c0_88, %c0_89] : memref<1x8x256xf32, #tpu.memory_space<vmem>>, vector<1x8x256xf32>
    %289 = vector.shape_cast %288 : vector<1x8x256xf32> to vector<8x256xf32>
    %290 = vector.shape_cast %287 : vector<8x256xf32> to vector<1x8x256xf32>
    tpu.vector_store %arg18[%c0_87, %c0_88, %c0_89], %290 {strides = array<i32>} : memref<1x8x256xf32, #tpu.memory_space<vmem>>, vector<1x8x256xf32>,
    %c0_90 = arith.constant 0 : index
    %c0_91 = arith.constant 0 : index
    %c0_92 = arith.constant 0 : index
    %291 = vector.load %arg19[%c0_90, %c0_91, %c0_92] : memref<1x8x256xf32, #tpu.memory_space<vmem>>, vector<1x8x256xf32>
    %292 = vector.shape_cast %291 : vector<1x8x256xf32> to vector<8x256xf32>
    %293 = vector.shape_cast %206 : vector<8x256xf32> to vector<1x8x256xf32>
    tpu.vector_store %arg19[%c0_90, %c0_91, %c0_92], %293 {strides = array<i32>} : memref<1x8x256xf32, #tpu.memory_space<vmem>>, vector<1x8x256xf32>,
    %c0_93 = arith.constant 0 : index
    %c0_94 = arith.constant 0 : index
    %c0_95 = arith.constant 0 : index
    %294 = vector.load %arg20[%c0_93, %c0_94, %c0_95] : memref<1x8x256xf32, #tpu.memory_space<vmem>>, vector<1x8x256xf32>
    %295 = vector.shape_cast %294 : vector<1x8x256xf32> to vector<8x256xf32>
    %296 = vector.shape_cast %282 : vector<8x256xf32> to vector<1x8x256xf32>
    tpu.vector_store %arg20[%c0_93, %c0_94, %c0_95], %296 {strides = array<i32>} : memref<1x8x256xf32, #tpu.memory_space<vmem>>, vector<1x8x256xf32>,
    return
  }
  func.func @transform_0(%arg0: i32) -> (i32, i32, i32) {
    %c0_i32 = arith.constant 0 : i32
    %c0_i32_0 = arith.constant 0 : i32
    %c0_i32_1 = arith.constant 0 : i32
    return %arg0, %c0_i32, %c0_i32_0 : i32, i32, i32
  }
  func.func @transform_1(%arg0: i32) -> (i32, i32) {
    %c0_i32 = arith.constant 0 : i32
    %c0_i32_0 = arith.constant 0 : i32
    %c0_i32_1 = arith.constant 0 : i32
    return %c0_i32, %c0_i32_0 : i32, i32
  }
  func.func @transform_2(%arg0: i32) -> (i32, i32) {
    %c0_i32 = arith.constant 0 : i32
    %c0_i32_0 = arith.constant 0 : i32
    %c0_i32_1 = arith.constant 0 : i32
    return %c0_i32, %c0_i32_0 : i32, i32
  }
  func.func @transform_3(%arg0: i32) -> (i32, i32) {
    %c0_i32 = arith.constant 0 : i32
    %c0_i32_0 = arith.constant 0 : i32
    %c0_i32_1 = arith.constant 0 : i32
    return %c0_i32, %c0_i32_0 : i32, i32
  }
  func.func @transform_4(%arg0: i32) -> (i32, i32) {
    %c0_i32 = arith.constant 0 : i32
    %c0_i32_0 = arith.constant 0 : i32
    %c0_i32_1 = arith.constant 0 : i32
    return %c0_i32, %c0_i32_0 : i32, i32
  }
  func.func @transform_5(%arg0: i32) -> (i32, i32) {
    %c0_i32 = arith.constant 0 : i32
    %c0_i32_0 = arith.constant 0 : i32
    %c0_i32_1 = arith.constant 0 : i32
    return %c0_i32, %c0_i32_0 : i32, i32
  }
  func.func @transform_6(%arg0: i32) -> (i32, i32) {
    %c0_i32 = arith.constant 0 : i32
    %c0_i32_0 = arith.constant 0 : i32
    %c0_i32_1 = arith.constant 0 : i32
    return %c0_i32, %c0_i32_0 : i32, i32
  }
  func.func @transform_7(%arg0: i32) -> (i32, i32) {
    %c0_i32 = arith.constant 0 : i32
    %c0_i32_0 = arith.constant 0 : i32
    %c0_i32_1 = arith.constant 0 : i32
    return %c0_i32, %c0_i32_0 : i32, i32
  }
  func.func @transform_8(%arg0: i32) -> (i32, i32) {
    %c0_i32 = arith.constant 0 : i32
    %c0_i32_0 = arith.constant 0 : i32
    %c0_i32_1 = arith.constant 0 : i32
    return %c0_i32, %c0_i32_0 : i32, i32
  }
  func.func @transform_9(%arg0: i32) -> (i32, i32) {
    %c0_i32 = arith.constant 0 : i32
    %c0_i32_0 = arith.constant 0 : i32
    %c0_i32_1 = arith.constant 0 : i32
    return %c0_i32, %c0_i32_0 : i32, i32
  }
  func.func @transform_10(%arg0: i32) -> (i32, i32) {
    %c0_i32 = arith.constant 0 : i32
    %c0_i32_0 = arith.constant 0 : i32
    %c0_i32_1 = arith.constant 0 : i32
    return %c0_i32, %c0_i32_0 : i32, i32
  }
  func.func @transform_11(%arg0: i32) -> (i32, i32) {
    %c0_i32 = arith.constant 0 : i32
    %c0_i32_0 = arith.constant 0 : i32
    %c0_i32_1 = arith.constant 0 : i32
    return %c0_i32, %c0_i32_0 : i32, i32
  }
  func.func @transform_12(%arg0: i32) -> (i32, i32) {
    %c0_i32 = arith.constant 0 : i32
    %c0_i32_0 = arith.constant 0 : i32
    %c0_i32_1 = arith.constant 0 : i32
    return %c0_i32, %c0_i32_0 : i32, i32
  }
  func.func @transform_13(%arg0: i32) -> (i32, i32) {
    %c0_i32 = arith.constant 0 : i32
    %c0_i32_0 = arith.constant 0 : i32
    %c0_i32_1 = arith.constant 0 : i32
    return %c0_i32, %c0_i32_0 : i32, i32
  }
  func.func @transform_14(%arg0: i32) -> (i32, i32) {
    %c0_i32 = arith.constant 0 : i32
    %c0_i32_0 = arith.constant 0 : i32
    %c0_i32_1 = arith.constant 0 : i32
    return %c0_i32, %c0_i32_0 : i32, i32
  }
  func.func @transform_15(%arg0: i32) -> (i32, i32) {
    %c0_i32 = arith.constant 0 : i32
    %c0_i32_0 = arith.constant 0 : i32
    %c0_i32_1 = arith.constant 0 : i32
    return %c0_i32, %c0_i32_0 : i32, i32
  }
  func.func @transform_16(%arg0: i32) -> (i32, i32) {
    %c0_i32 = arith.constant 0 : i32
    %c0_i32_0 = arith.constant 0 : i32
    %c0_i32_1 = arith.constant 0 : i32
    return %c0_i32, %c0_i32_0 : i32, i32
  }
  func.func @transform_17(%arg0: i32) -> (i32, i32, i32) {
    %c0_i32 = arith.constant 0 : i32
    %c0_i32_0 = arith.constant 0 : i32
    %c0_i32_1 = arith.constant 0 : i32
    return %arg0, %c0_i32, %c0_i32_0 : i32, i32, i32
  }
  func.func @transform_18(%arg0: i32) -> (i32, i32, i32) {
    %c0_i32 = arith.constant 0 : i32
    %c0_i32_0 = arith.constant 0 : i32
    %c0_i32_1 = arith.constant 0 : i32
    return %arg0, %c0_i32, %c0_i32_0 : i32, i32, i32
  }
  func.func @transform_19(%arg0: i32) -> (i32, i32, i32) {
    %c0_i32 = arith.constant 0 : i32
    %c0_i32_0 = arith.constant 0 : i32
    %c0_i32_1 = arith.constant 0 : i32
    return %arg0, %c0_i32, %c0_i32_0 : i32, i32, i32
  }
}

</mosaic_0001>

<bundles_post_ra>
// kernel: _lambda_.1
= control target key start
LH: loop header
LB: loop body
LE: loop exit
PB: predicated region body
PF: predicated region fallthrough
CT: control target
= control target key end

     0   :  { %s5504_s0 = inlined_call_operand.vmem [shape: f32[2,8,256], index: 0, kind: input, shape index: {}]   ;;  %s5505_s1 = inlined_call_operand.vmem [shape: bf16[32,80], index: 1, kind: input, shape index: {}]   ;;  %s5506_s2 = inlined_call_operand.vmem [shape: bf16[32,296], index: 2, kind: input, shape index: {}]   ;;  %s5507_s3 = inlined_call_operand.vmem [shape: bf16[32,296], index: 3, kind: input, shape index: {}]   ;;  %s5508_s4 = inlined_call_operand.vmem [shape: bf16[32,296], index: 4, kind: input, shape index: {}]   ;;  %s5509_s5 = inlined_call_operand.vmem [shape: bf16[8,296], index: 5, kind: input, shape index: {}]   ;;  %s5510_s6 = inlined_call_operand.vmem [shape: bf16[8,80], index: 6, kind: input, shape index: {}]   ;;  %s5511_s7 = inlined_call_operand.vmem [shape: bf16[8,80], index: 7, kind: input, shape index: {}]   ;;  %s5512_s8 = inlined_call_operand.vmem [shape: f32[9,256], index: 8, kind: input, shape index: {}]   ;;  %s5513_s9 = inlined_call_operand.vmem [shape: f32[9,64], index: 9, kind: input, shape index: {}]   ;;  %s5514_s10 = inlined_call_operand.vmem [shape: f32[9,16], index: 10, kind: input, shape index: {}]   ;;  %s5515_s11 = inlined_call_operand.vmem [shape: f32[8,256], index: 11, kind: input, shape index: {}]   ;;  %s5516_s12 = inlined_call_operand.vmem [shape: f32[8,64], index: 12, kind: input, shape index: {}]   ;;  %s5517_s13 = inlined_call_operand.vmem [shape: f32[8,16], index: 13, kind: input, shape index: {}]   ;;  %s5518_s14 = inlined_call_operand.vmem [shape: bf16[256,64], index: 14, kind: input, shape index: {}]   ;;  %s5519_s15 = inlined_call_operand.vmem [shape: bf16[64,16], index: 15, kind: input, shape index: {}]   ;;  %s5520_s16 = inlined_call_operand.vmem [shape: bf16[16,256], index: 16, kind: input, shape index: {}]   ;;  %s5521_s17 = inlined_call_operand.vmem [shape: f32[2,8,256], index: 17, kind: output, shape index: {0}]   ;;  %s5522_s18 = inlined_call_operand.vmem [shape: f32[2,8,256], index: 18, kind: output, shape index: {1}]   ;;  %s5523_s19 = inlined_call_operand.vmem [shape: f32[2,8,256], index: 19, kind: output, shape index: {2}]  }
   0x1   :  { %5579 = sst [smem:[#allocation10_spill]] %s5504_s0  ;;  %s4144_s0 = smov 0  }
   0x2   :  { %5580 = sst [smem:[#allocation11_spill]] %s5505_s1 }
   0x3   :  { %5581 = sst [smem:[#allocation12_spill]] %s5506_s2 }
   0x4   :  { %5582 = sst [smem:[#allocation13_spill]] %s5507_s3 }
   0x5   :  { %5583 = sst [smem:[#allocation14_spill]] %s5508_s4 }
   0x6   :  { %5584 = sst [smem:[#allocation15_spill]] %s5509_s5 }
   0x7   :  { %5585 = sst [smem:[#allocation16_spill]] %s5513_s9 }
   0x8 LB: > { %s3399_s30 = sadd.s32 4294967295, %s4006_s0   ;;  %p3403_p0 = scmp.ge.s32.totalorder %s4006_s0, 1  ;;  %s4006_s0 = sphi %s4144_s0, %s30_s0  }
   0x9   : > { %p542_p1 = scmp.lt.s32.totalorder %s4006_s0, 3 }
   0xb   : > { %p543_p2 = pnand %p3403_p0, %p542_p1 }
   0xd   : > { %546 = sbr.rel (%p543_p2) target bundleno = 4431 (0x114f), region = 88 }
  0x14   : > { %p608_p3 = scmp.lt.s32.totalorder %s3399_s30, 1  ;;  %s5586_s22 = sld [smem:[#allocation10_spill]]  ;;  %v5537_v2 = vmov 0   ;;  %v647_v3 = vlaneseq  ;;  %v4204_v8 = vld [vmem:[%s5512_s8] sm:$0xff]  ;;  %v4209_v9 = vld [vmem:[%s5512_s8 + $0x8] sm:$0xff]  ;;  %vm805_vm8 = vcmask 654336  }
  0x15   : > { %s5554_s23 = smov 16   ;;  %s5533_s24 = smov 17   ;;  %844 = vmatprep.mubr.bf16.mxu0 %v5537_v2  ;;  %vm1212_vm9 = vcmask 1043456   ;;  %vm1205_vm10 = vcmask 326656   ;;  %vm1514_vm11 = vcmask 1048064   ;;  %vm2464_vm12 = vcmask 523264  }
  0x16   : > { %s5628_s30 = smov (!%p608_p3, %s3399_s30), 1  ;;  %s5535_s25 = smov 15   ;;  %v653_v4 = vshrl.u32 %v647_v3, 7  ;;  %v4195_v5 = vand.u32 127, %v647_v3  ;;  %vm2520_vm13 = vcmask 1047680   ;;  %vm4043_vm14 = vmmov 0  }
  0x17   : > { %s4152_s20 = sshll.u32 %s5628_s30, 4  ;;  %s5558_s3 = smov 1   ;;  %vm2979_vm15 = vcmask 130048  }
  0x18   : > { %s5556_s26 = smov 127   ;;  %s5531_s27 = smov 113   ;;  %v4197_v6 = vsub.s32 0, %v653_v4  ;;  %v4199_v7 = vsub.s32 1, %v653_v4  ;;  %vm666_vm0 = vcmp.lt.s32.totalorder %v4195_v5, 16  ;;  %vm649_vm1 = vcmp.lt.s32.totalorder %v4195_v5, 17 }
  0x19   : > { %s5529_s28 = smov 112   ;;  %s5527_s29 = smov 111   ;;  %v4229_v18 = vsub.s32 2, %v653_v4  ;;  %v4231_v19 = vsub.s32 3, %v653_v4  ;;  %vm683_vm2 = vcmp.lt.s32.totalorder %v4195_v5, 15  ;;  %vm700_vm3 = vcmp.lt.s32.totalorder %v4195_v5, 1 }
  0x1a   : > { %s612_s2 = scalar_lea.vmem %s5586_s22, %s4152_s20  ;;  %5587 = vst [vmem:[#allocation2_spill] sm:$0xff] %v4197_v6  ;;  %5588 = vst [vmem:[#allocation3_spill] sm:$0xff] %v4199_v7  ;;  %v4215_v12 = vrot.slane %v4209_v9, %v4197_v6  ;;  %v4219_v13 = vrot.slane %v4209_v9, %v4199_v7  ;;  %v4223_v14 = vrot.slane %v4204_v8, %v4197_v6  ;;  %v4247_v32 = vsub.s32 5, %v653_v4  ;;  %s5595_s1 = sld [smem:[#allocation11_spill]] }
  0x1b   : > { %v4158_v0 = vld [vmem:[%s612_s2] sm:$0xff]  ;;  %v4160_v1 = vld [vmem:[%s612_s2 + $0x8] sm:$0xff]  ;;  %v4227_v15 = vrot.slane %v4204_v8, %v4199_v7  ;;  %5589 = vst [vmem:[#allocation4_spill] sm:$0xff] %v4229_v18  ;;  %5590 = vst [vmem:[#allocation5_spill] sm:$0xff] %v4231_v19  ;;  %v4251_v33 = vrot.slane %v4204_v8, %v4229_v18  ;;  %v4255_v34 = vrot.slane %v4209_v9, %v4229_v18  ;;  %vm717_vm4 = vcmp.lt.s32.totalorder %v4195_v5, 127  ;;  %s5597_s22 = smov 111  }
  0x1c   : > { %662 = vrot.lane.b32.xlu1 %v4158_v0, %s5554_s23  ;;  %643 = vrot.lane.b32.xlu0 %v4158_v0, %s5533_s24  ;;  %5591 = vst [vmem:[#allocation6_spill] sm:$0xff] %v4247_v32  ;;  %v4259_v35 = vrot.slane %v4204_v8, %v4231_v19  ;;  %v4263_v36 = vrot.slane %v4209_v9, %v4231_v19  ;;  %v4290_v55 = vsub.s32 6, %v653_v4  ;;  %v4294_v58 = vsub.s32 7, %v653_v4  ;;  %s5600_s9 = sld [smem:[#allocation16_spill]]  ;;  %s5603_s21 = smov 1  }
  0x1d   : > { %v4276_v43 = vrot.slane %v4204_v8, %v4247_v32  ;;  %v4280_v44 = vrot.slane %v4209_v9, %v4247_v32  ;;  %vm734_vm5 = vcmp.lt.s32.totalorder %v4195_v5, 113  ;;  %vm751_vm6 = vcmp.lt.s32.totalorder %v4195_v5, 112  ;;  %s5560_s2 = smov 7   ;;  %s5609_s30 = smov 127  }
  0x1e   : > { %5592 = vst [vmem:[#allocation7_spill] sm:$0xff] %v4290_v55  ;;  %5593 = vst [vmem:[#allocation8_spill] sm:$0xff] %v4294_v58  ;;  %v4301_v63 = vrot.slane %v4204_v8, %v4290_v55  ;;  %v4305_v3 = vrot.slane %v4209_v9, %v4290_v55  ;;  %v4310_v4 = vrot.slane %v4204_v8, %v4294_v58  ;;  %vm768_vm7 = vcmp.lt.s32.totalorder %v4195_v5, 111  ;;  %s5618_s4 = sld [smem:[#allocation14_spill]]  ;;  %s5623_s5 = sld [smem:[#allocation15_spill]] }
  0x20   : > { %664 = vrot.lane.b32.xlu1 %v4160_v1, %s5554_s23  ;;  %645 = vrot.lane.b32.xlu0 %v4160_v1, %s5533_s24 }
  0x24   : > { %681 = vrot.lane.b32.xlu1 %v4160_v1, %s5535_s25  ;;  %679 = vrot.lane.b32.xlu0 %v4158_v0, %s5535_s25 }
  0x28   : > { %698 = vrot.lane.b32.xlu1 %v4160_v1, %s5558_s3  ;;  %696 = vrot.lane.b32.xlu0 %v4158_v0, %s5558_s3 }
  0x2c   : > { %715 = vrot.lane.b32.xlu1 %v4160_v1, %s5556_s26  ;;  %713 = vrot.lane.b32.xlu0 %v4158_v0, %s5556_s26 }
  0x30   : > { %732 = vrot.lane.b32.xlu1 %v4160_v1, %s5531_s27  ;;  %730 = vrot.lane.b32.xlu0 %v4158_v0, %s5531_s27 }
  0x34   : > { %749 = vrot.lane.b32.xlu1 %v4160_v1, %s5529_s28  ;;  %747 = vrot.lane.b32.xlu0 %v4158_v0, %s5529_s28 }
  0x38   : > { %766 = vrot.lane.b32.xlu1 %v4160_v1, %s5527_s29  ;;  %764 = vrot.lane.b32.xlu0 %v4158_v0, %s5527_s29  ;;  %s5596_s29 = sld [smem:[#allocation12_spill]] }
  0x8e   : > { %v663_v10 = vpop.permute.xlu1 %662  ;;  %v644_v11 = vpop.permute.xlu0 %643 }
  0x92   : > { %v665_v16 = vpop.permute.xlu1 %664  ;;  %v646_v17 = vpop.permute.xlu0 %645 }
  0x93   : > { %v668_v20 = vsel %vm666_vm0, %v665_v16, %v663_v10  ;;  %v651_v21 = vsel %vm649_vm1, %v646_v17, %v644_v11  ;;  %v650_v22 = vsel %vm649_vm1, %v644_v11, %v646_v17  ;;  %v667_v23 = vsel %vm666_vm0, %v663_v10, %v665_v16 }
  0x94   : > { %v661_v24 = vmul.f32 %v4215_v12, %v650_v22  ;;  %v678_v25 = vmul.f32 %v4219_v13, %v667_v23  ;;  %v660_v26 = vmul.f32 %v4223_v14, %v651_v21  ;;  %v677_v27 = vmul.f32 %v4227_v15, %v668_v20  ;;  %v4332_v23 = vld [vmem:[%s5512_s8 + $0x10] ss:$0 sm:$0xff] }
  0x96   : > { %v682_v28 = vpop.permute.xlu1 %681  ;;  %v680_v29 = vpop.permute.xlu0 %679  ;;  %v782_v30 = vpack.c.bf16 %v678_v25, %v661_v24  ;;  %v781_v31 = vpack.c.bf16 %v677_v27, %v660_v26  ;;  %v4337_v24 = vld [vmem:[%s5512_s8 + $0x18] ss:$0 sm:$0xff] }
  0x97   : > { %v684_v37 = vsel %vm683_vm2, %v680_v29, %v682_v28  ;;  %v685_v38 = vsel %vm683_vm2, %v682_v28, %v680_v29 }
  0x98   : > { %812 = vmatprep.subr.bf16.mxu0 %v782_v30  ;;  %v694_v45 = vmul.f32 %v4251_v33, %v685_v38  ;;  %v695_v46 = vmul.f32 %v4255_v34, %v684_v37  ;;  %v4351_v37 = vld [vmem:[%s5515_s11] sm:$0xff] }
  0x99   : > { %813 = vmatpush1.bf16.msra.mxu0 %v781_v31  ;;  %v4346_v31 = vld [vmem:[%s5515_s11 + $0x8] sm:$0xff]  ;;  %5594 = vst [vmem:[#allocation9_spill] sm:$0xff] %v4351_v37 }
  0x9a   : > { %v699_v39 = vpop.permute.xlu1 %698  ;;  %v697_v40 = vpop.permute.xlu0 %696 }
  0x9b   : > { %v701_v41 = vsel %vm700_vm3, %v697_v40, %v699_v39  ;;  %v702_v42 = vsel %vm700_vm3, %v699_v39, %v697_v40 }
  0x9c   : > { %v711_v47 = vmul.f32 %v4259_v35, %v702_v42  ;;  %v712_v48 = vmul.f32 %v4263_v36, %v701_v41  ;;  %v3944_v42 = vld [vmem:[%s5595_s1] sm:$0xff]  }
  0x9e   : > { %v716_v49 = vpop.permute.xlu1 %715  ;;  %v714_v50 = vpop.permute.xlu0 %713  ;;  %v784_v51 = vpack.c.bf16 %v712_v48, %v695_v46  ;;  %v783_v52 = vpack.c.bf16 %v711_v47, %v694_v45  ;;  %v3945_v45 = vld [vmem:[%s5595_s1 + $0x8] sm:$0xff]   ;;  %s4035_s1 = smov 4  }
  0x9f   : > { %v718_v53 = vsel %vm717_vm4, %v714_v50, %v716_v49  ;;  %v719_v54 = vsel %vm717_vm4, %v716_v49, %v714_v50 }
  0xa0   : > { %v728_v56 = vmul.f32 %v4276_v43, %v718_v53  ;;  %v729_v57 = vmul.f32 %v4280_v44, %v719_v54  ;;  %814 = vmatprep.subr.bf16.mxu0 %v784_v51 }
  0xa1   : > { %815 = vmatpush1.bf16.msra.mxu0 %v783_v52 }
  0xa2   : > { %v733_v59 = vpop.permute.xlu1 %732  ;;  %v731_v60 = vpop.permute.xlu0 %730  ;;  %v786_v61 = vpack.c.bf16 %v729_v57, %v4160_v1  ;;  %v785_v62 = vpack.c.bf16 %v728_v56, %v4158_v0  ;;  %v4314_v1 = vrot.slane %v4209_v9, %v4294_v58 }
  0xa3   : > { %v735_v0 = vsel %vm734_vm5, %v731_v60, %v733_v59  ;;  %v736_v10 = vsel %vm734_vm5, %v733_v59, %v731_v60 }
  0xa4   : > { %816 = vmatprep.subr.bf16.mxu0 %v786_v61  ;;  %v745_v9 = vmul.f32 %v4301_v63, %v735_v0  ;;  %v746_v20 = vmul.f32 %v4305_v3, %v736_v10  ;;  %v3948_v10 = vld [vmem:[%s5596_s29 + $0x4] ss:$12 sps:$4 sm:$0xff]  }
  0xa5   : > { %817 = vmatpush1.bf16.msra.mxu0 %v785_v62  ;;  %1251 = vmatprep.mubr.bf16.mxu1 %v3948_v10 }
  0xa6   : > { %v750_v11 = vpop.permute.xlu1 %749  ;;  %v748_v16 = vpop.permute.xlu0 %747 }
  0xa7   : > { %v752_v17 = vsel %vm751_vm6, %v748_v16, %v750_v11  ;;  %v753_v8 = vsel %vm751_vm6, %v750_v11, %v748_v16 }
  0xa8   : > { %v762_v21 = vmul.f32 %v4310_v4, %v752_v17  ;;  %v763_v22 = vmul.f32 %v4314_v1, %v753_v8 }
  0xaa   : > { %v767_v25 = vpop.permute.xlu1 %766  ;;  %v765_v26 = vpop.permute.xlu0 %764  ;;  %v788_v27 = vpack.c.bf16 %v763_v22, %v746_v20  ;;  %v787_v28 = vpack.c.bf16 %v762_v21, %v745_v9 }
  0xab   : > { %v769_v29 = vsel %vm768_vm7, %v765_v26, %v767_v25  ;;  %v770_v30 = vsel %vm768_vm7, %v767_v25, %v765_v26 }
  0xac   : > { %v779_v38 = vmul.f32 %v4332_v23, %v769_v29  ;;  %v780_v39 = vmul.f32 %v4337_v24, %v770_v30  ;;  %818 = vmatprep.subr.bf16.mxu0 %v788_v27  ;;  %v3955_v29 = vld [vmem:[%s5518_s14] sm:$0xff]   ;;  %v3956_v30 = vld [vmem:[%s5518_s14 + $0x48] sm:$0xff]  }
  0xad   : > { %819 = vmatpush1.bf16.msra.mxu0 %v787_v28  ;;  %v3954_v28 = vld [vmem:[%s5518_s14 + $0x40] sm:$0xff]  }
  0xae   : > { %v790_v40 = vpack.c.bf16 %v4346_v31, %v780_v39  ;;  %v789_v41 = vpack.c.bf16 %v4351_v37, %v779_v38 }
  0xb0   : > { %820 = vmatprep.subr.bf16.mxu0 %v790_v40 }
  0xb1   : > { %821 = vmatpush1.bf16.msra.mxu0 %v789_v41 }
  0xb2   : > { %3482 = vmatprep.subr.bf16.mxu0 %v3954_v28 }
  0xb4   : > { %3416 = vmatmul.mubr.msk.bf16.vlgmr.msra.gmra.mrb[0].mxu0 %vm805_vm8, %v3944_v42 }
  0xb5   : > { %854 = vmatprep.mubr.bf16.mxu0 %v5537_v2  ;;  %3483 = vmatpush3.bf16.msra.mxu0 %v3955_v29  ;;  %v3961_v29 = vld [vmem:[%s5518_s14 + $0x18] sm:$0xff]  }
  0xb6   : > { %3484 = vmatprep.subr.bf16.mxu0 %v3956_v30 }
  0xbc   : > { %3417 = vmatmul.mubr.msk.bf16.gmra.mrb[4].mxu0 %vm805_vm8, %v3945_v45  ;;  %v3957_v45 = vld [vmem:[%s5518_s14 + $0x8] sm:$0xff]  }
  0xbd   : > { %3485 = vmatpush3.bf16.msra.mxu0 %v3957_v45 }
 0x187   : > { %v846_v46 = vpop.f32.mrb[0].mxu0 }
 0x188   : > { %v4366_v47 = vmax.f32 %v846_v46, 0.0  ;;  %v848_v48 = vpop.f32.mrb[1].mxu0 }
 0x189   : > { %v850_v49 = vpop.f32.mrb[2].mxu0  ;;  %v4388_v57 = vmax.f32 %v848_v48, 0.0 }
 0x18a   : > { %v4368_v50 = vmax.f32 %v850_v49, 0.0  ;;  %873 = vrot.lane.b32.xlu0 %v4366_v47, %s5533_s24  ;;  %v852_v51 = vpop.f32.mrb[3].mxu0 }
 0x18b   : > { %v4392_v59 = vmax.f32 %v852_v51, 0.0 }
 0x18c   : > { %875 = vrot.lane.b32.xlu1 %v4368_v50, %s5533_s24 }
 0x18e   : > { %905 = vrot.lane.b32.xlu0 %v4366_v47, %s5554_s23 }
 0x18f   : > { %v856_v52 = vpop.f32.mrb[4].mxu0 }
 0x190   : > { %907 = vrot.lane.b32.xlu1 %v4368_v50, %s5554_s23  ;;  %v858_v53 = vpop.f32.mrb[5].mxu0  ;;  %v4410_v60 = vmax.f32 %v856_v52, 0.0 }
 0x191   : > { %v860_v54 = vpop.f32.mrb[6].mxu0  ;;  %v4432_v62 = vmax.f32 %v858_v53, 0.0  ;;  %v3958_v53 = vld [vmem:[%s5518_s14 + $0x50] sm:$0xff]  }
 0x192   : > { %937 = vrot.lane.b32.xlu0 %v4366_v47, %s5535_s25  ;;  %v862_v56 = vpop.f32.mrb[7].mxu0  ;;  %v4416_v61 = vmax.f32 %v860_v54, 0.0  ;;  %3486 = vmatprep.subr.bf16.mxu0 %v3958_v53 }
 0x193   : > { %v4436_v0 = vmax.f32 %v862_v56, 0.0 }
 0x194   : > { %939 = vrot.lane.b32.xlu1 %v4368_v50, %s5535_s25 }
 0x196   : > { %969 = vrot.lane.b32.xlu0 %v4366_v47, %s5558_s3 }
 0x198   : > { %971 = vrot.lane.b32.xlu1 %v4368_v50, %s5558_s3 }
 0x19a   : > { %1001 = vrot.lane.b32.xlu0 %v4366_v47, %s5556_s26 }
 0x19c   : > { %1003 = vrot.lane.b32.xlu1 %v4368_v50, %s5556_s26 }
 0x19e   : > { %881 = vrot.lane.b32.xlu0 %v4388_v57, %s5533_s24 }
 0x1a0   : > { %883 = vrot.lane.b32.xlu1 %v4392_v59, %s5533_s24 }
 0x1a2   : > { %913 = vrot.lane.b32.xlu0 %v4388_v57, %s5554_s23 }
 0x1a4   : > { %915 = vrot.lane.b32.xlu1 %v4392_v59, %s5554_s23 }
 0x1a6   : > { %945 = vrot.lane.b32.xlu0 %v4388_v57, %s5535_s25 }
 0x1a8   : > { %947 = vrot.lane.b32.xlu1 %v4392_v59, %s5535_s25 }
 0x1aa   : > { %977 = vrot.lane.b32.xlu0 %v4388_v57, %s5558_s3 }
 0x1ac   : > { %979 = vrot.lane.b32.xlu1 %v4392_v59, %s5558_s3 }
 0x1ae   : > { %1009 = vrot.lane.b32.xlu0 %v4388_v57, %s5556_s26 }
 0x1b0   : > { %1011 = vrot.lane.b32.xlu1 %v4392_v59, %s5556_s26 }
 0x1b2   : > { %877 = vrot.lane.b32.xlu0 %v4410_v60, %s5533_s24 }
 0x1b4   : > { %879 = vrot.lane.b32.xlu1 %v4416_v61, %s5533_s24 }
 0x1b6   : > { %909 = vrot.lane.b32.xlu0 %v4410_v60, %s5554_s23 }
 0x1b8   : > { %911 = vrot.lane.b32.xlu1 %v4416_v61, %s5554_s23 }
 0x1ba   : > { %941 = vrot.lane.b32.xlu0 %v4410_v60, %s5535_s25 }
 0x1bc   : > { %943 = vrot.lane.b32.xlu1 %v4416_v61, %s5535_s25 }
 0x1be   : > { %973 = vrot.lane.b32.xlu0 %v4410_v60, %s5558_s3 }
 0x1c0   : > { %975 = vrot.lane.b32.xlu1 %v4416_v61, %s5558_s3 }
 0x1c2   : > { %885 = vrot.lane.b32.xlu0 %v4432_v62, %s5533_s24 }
 0x1c4   : > { %887 = vrot.lane.b32.xlu1 %v4436_v0, %s5533_s24  ;;  %s4020_s24 = smov 57  }
 0x1c6   : > { %1005 = vrot.lane.b32.xlu0 %v4410_v60, %s5556_s26 }
 0x1c8   : > { %1007 = vrot.lane.b32.xlu1 %v4416_v61, %s5556_s26 }
 0x1ca   : > { %917 = vrot.lane.b32.xlu0 %v4432_v62, %s5554_s23 }
 0x1cc   : > { %919 = vrot.lane.b32.xlu1 %v4436_v0, %s5554_s23  ;;  %s4017_s23 = smov 64  }
 0x1ce   : > { %949 = vrot.lane.b32.xlu0 %v4432_v62, %s5535_s25 }
 0x1d0   : > { %1035 = vrot.lane.b32.xlu1 %v4368_v50, %s5531_s27 }
 0x1d2   : > { %981 = vrot.lane.b32.xlu0 %v4432_v62, %s5558_s3 }
 0x1d4   : > { %951 = vrot.lane.b32.xlu1 %v4436_v0, %s5535_s25  ;;  %s5564_s25 = smov 126  }
 0x1d6   : > { %1013 = vrot.lane.b32.xlu0 %v4432_v62, %s5556_s26 }
 0x1d8   : > { %1043 = vrot.lane.b32.xlu1 %v4392_v59, %s5531_s27 }
 0x1da   : > { %1033 = vrot.lane.b32.xlu0 %v4366_v47, %s5531_s27 }
 0x1dc   : > { %983 = vrot.lane.b32.xlu1 %v4436_v0, %s5558_s3  ;;  %s4022_s3 = smov 63  }
 0x1de   : > { %1041 = vrot.lane.b32.xlu0 %v4388_v57, %s5531_s27 }
 0x1e0   : > { %1039 = vrot.lane.b32.xlu1 %v4416_v61, %s5531_s27 }
 0x1e2   : > { %1037 = vrot.lane.b32.xlu0 %v4410_v60, %s5531_s27 }
 0x1e4   : > { %1067 = vrot.lane.b32.xlu1 %v4368_v50, %s5529_s28 }
 0x1e6   : > { %1045 = vrot.lane.b32.xlu0 %v4432_v62, %s5531_s27 }
 0x1e8   : > { %1075 = vrot.lane.b32.xlu1 %v4392_v59, %s5529_s28 }
 0x1ea   : > { %1065 = vrot.lane.b32.xlu0 %v4366_v47, %s5529_s28 }
 0x1ec   : > { %1015 = vrot.lane.b32.xlu1 %v4436_v0, %s5556_s26  ;;  %s4023_s26 = smov 9  }
 0x1ee   : > { %1073 = vrot.lane.b32.xlu0 %v4388_v57, %s5529_s28 }
 0x1f0   : > { %1071 = vrot.lane.b32.xlu1 %v4416_v61, %s5529_s28 }
 0x1f2   : > { %1069 = vrot.lane.b32.xlu0 %v4410_v60, %s5529_s28 }
 0x1f4   : > { %1047 = vrot.lane.b32.xlu1 %v4436_v0, %s5531_s27  ;;  %s5562_s27 = smov 8  }
 0x1f6   : > { %1077 = vrot.lane.b32.xlu0 %v4432_v62, %s5529_s28 }
 0x1f8   : > { %1099 = vrot.lane.b32.xlu1 %v4368_v50, %s5597_s22 }
 0x1fa   : > { %1097 = vrot.lane.b32.xlu0 %v4366_v47, %s5597_s22 }
 0x1fc   : > { %v874_v11 = vpop.permute.xlu0 %873  ;;  %1079 = vrot.lane.b32.xlu1 %v4436_v0, %s5529_s28  ;;  %s4018_s28 = smov 56  }
 0x1fe   : > { %v876_v16 = vpop.permute.xlu1 %875  ;;  %1105 = vrot.lane.b32.xlu0 %v4388_v57, %s5597_s22 }
 0x200   : > { %v4503_v17 = vpop.permute.xlu0 %905  ;;  %1107 = vrot.lane.b32.xlu1 %v4392_v59, %s5597_s22 }
 0x202   : > { %v4507_v8 = vpop.permute.xlu1 %907  ;;  %1101 = vrot.lane.b32.xlu0 %v4410_v60, %s5597_s22 }
 0x204   : > { %v4511_v9 = vpop.permute.xlu0 %937  ;;  %1103 = vrot.lane.b32.xlu1 %v4416_v61, %s5597_s22 }
 0x206   : > { %v4515_v20 = vpop.permute.xlu1 %939  ;;  %1109 = vrot.lane.b32.xlu0 %v4432_v62, %s5597_s22 }
 0x208   : > { %v4519_v21 = vpop.permute.xlu0 %969  ;;  %1111 = vrot.lane.b32.xlu1 %v4436_v0, %s5597_s22 }
 0x20a   : > { %v4523_v22 = vpop.permute.xlu1 %971 }
 0x20c   : > { %v4525_v25 = vpop.permute.xlu0 %1001 }
 0x20e   : > { %v4527_v26 = vpop.permute.xlu1 %1003 }
 0x210   : > { %v882_v27 = vpop.permute.xlu0 %881 }
 0x211   : > { %v893_v38 = vsel %vm649_vm1, %v882_v27, %v874_v11  ;;  %v889_v39 = vsel %vm649_vm1, %v874_v11, %v882_v27  ;;  %v3959_v11 = vld [vmem:[%s5518_s14 + $0x10] sm:$0xff]   ;;  %v3960_v27 = vld [vmem:[%s5518_s14 + $0x58] sm:$0xff]  }
 0x212   : > { %v884_v40 = vpop.permute.xlu1 %883  ;;  %v898_v48 = vmul.f32 %v889_v39, %v4215_v12  ;;  %v897_v51 = vmul.f32 %v893_v38, %v4223_v14  ;;  %3487 = vmatpush3.bf16.msra.mxu0 %v3959_v11  ;;  %v3962_v38 = vld [vmem:[%s5518_s14 + $0x60] sm:$0xff]  }
 0x213   : > { %v894_v41 = vsel %vm649_vm1, %v884_v40, %v876_v16  ;;  %v890_v42 = vsel %vm649_vm1, %v876_v16, %v884_v40  ;;  %3488 = vmatprep.subr.bf16.mxu0 %v3960_v27  ;;  %v3963_v40 = vld [vmem:[%s5518_s14 + $0x20] sm:$0xff]  }
 0x214   : > { %v914_v46 = vpop.permute.xlu0 %913  ;;  %v900_v49 = vmul.f32 %v890_v42, %v4215_v12  ;;  %v899_v52 = vmul.f32 %v894_v41, %v4223_v14  ;;  %v3964_v42 = vld [vmem:[%s5518_s14 + $0x68] sm:$0xff]  }
 0x216   : > { %v916_v54 = vpop.permute.xlu1 %915  ;;  %v1130_v56 = vpack.c.bf16 %v900_v49, %v898_v48  ;;  %v1129_v10 = vpack.c.bf16 %v899_v52, %v897_v51  ;;  %3489 = vmatpush3.bf16.msra.mxu0 %v3961_v29  ;;  %v3965_v48 = vld [vmem:[%s5518_s14 + $0x28] sm:$0xff]  }
 0x217   : > { %3490 = vmatprep.subr.bf16.mxu0 %v3962_v38  ;;  %v922_v29 = vsel %vm666_vm0, %v4507_v8, %v916_v54  ;;  %v926_v6 = vsel %vm666_vm0, %v916_v54, %v4507_v8  ;;  %v925_v8 = vsel %vm666_vm0, %v914_v46, %v4503_v17 }
 0x218   : > { %v4559_v16 = vpop.permute.xlu0 %945  ;;  %1219 = vmatprep.subr.bf16.mxu1 %v1130_v56  ;;  %v932_v19 = vmul.f32 %v922_v29, %v4219_v13  ;;  %v931_v29 = vmul.f32 %v926_v6, %v4227_v15 }
 0x219   : > { %1220 = vmatpush1.bf16.msra.mxu1 %v1129_v10  ;;  %v953_v6 = vsel %vm683_vm2, %v4511_v9, %v4559_v16 }
 0x21a   : > { %v948_v28 = vpop.permute.xlu1 %947  ;;  %3491 = vmatpush3.bf16.msra.mxu0 %v3963_v40 }
 0x21b   : > { %3492 = vmatprep.subr.bf16.mxu0 %v3964_v42 }
 0x21c   : > { %v4567_v30 = vpop.permute.xlu0 %977 }
 0x21e   : > { %v4572_v39 = vpop.permute.xlu1 %979  ;;  %3493 = vmatpush3.bf16.msra.mxu0 %v3965_v48  ;;  %v921_v48 = vsel %vm666_vm0, %v4503_v17, %v914_v46 }
 0x21f   : > { %v930_v54 = vmul.f32 %v921_v48, %v4219_v13  ;;  %v958_v48 = vsel %vm683_vm2, %v948_v28, %v4515_v20 }
 0x220   : > { %v4577_v41 = vpop.permute.xlu0 %1009 }
 0x222   : > { %v4582_v45 = vpop.permute.xlu1 %1011 }
 0x224   : > { %v878_v49 = vpop.permute.xlu0 %877 }
 0x226   : > { %v880_v51 = vpop.permute.xlu1 %879 }
 0x228   : > { %v910_v52 = vpop.permute.xlu0 %909 }
 0x22a   : > { %v912_v53 = vpop.permute.xlu1 %911 }
 0x22c   : > { %v942_v56 = vpop.permute.xlu0 %941 }
 0x22e   : > { %v4587_v10 = vpop.permute.xlu1 %943 }
 0x230   : > { %v4589_v11 = vpop.permute.xlu0 %973 }
 0x232   : > { %v4591_v27 = vpop.permute.xlu1 %975 }
 0x234   : > { %v886_v38 = vpop.permute.xlu0 %885 }
 0x235   : > { %v891_v40 = vsel %vm649_vm1, %v878_v49, %v886_v38  ;;  %v895_v42 = vsel %vm649_vm1, %v886_v38, %v878_v49 }
 0x236   : > { %v888_v2 = vpop.permute.xlu1 %887  ;;  %v901_v55 = vmul.f32 %v895_v42, %v4223_v14  ;;  %v902_v49 = vmul.f32 %v891_v40, %v4215_v12  ;;  %v929_v40 = vmul.f32 %v925_v8, %v4227_v15  ;;  %v1134_v42 = vpack.c.bf16 %v932_v19, %v930_v54 }
 0x237   : > { %v892_v58 = vsel %vm649_vm1, %v880_v51, %v888_v2  ;;  %v896_v18 = vsel %vm649_vm1, %v888_v2, %v880_v51 }
 0x238   : > { %v903_v38 = vmul.f32 %v896_v18, %v4223_v14  ;;  %v904_v7 = vmul.f32 %v892_v58, %v4215_v12  ;;  %v4615_v32 = vpop.permute.xlu0 %1005  ;;  %v954_v18 = vsel %vm683_vm2, %v4515_v20, %v948_v28  ;;  %v957_v20 = vsel %vm683_vm2, %v4559_v16, %v4511_v9 }
 0x239   : > { %v964_v19 = vmul.f32 %v954_v18, %v4255_v34  ;;  %v962_v28 = vmul.f32 %v953_v6, %v4255_v34  ;;  %v985_v6 = vsel %vm700_vm3, %v4519_v21, %v4567_v30 }
 0x23a   : > { %v4622_v37 = vpop.permute.xlu1 %1007  ;;  %v1132_v2 = vpack.c.bf16 %v904_v7, %v902_v49  ;;  %v1131_v51 = vpack.c.bf16 %v903_v38, %v901_v55  ;;  %v1133_v55 = vpack.c.bf16 %v931_v29, %v929_v40 }
 0x23c   : > { %v918_v58 = vpop.permute.xlu0 %917  ;;  %1221 = vmatprep.subr.bf16.mxu1 %v1132_v2 }
 0x23d   : > { %v923_v17 = vsel %vm666_vm0, %v910_v52, %v918_v58  ;;  %v927_v46 = vsel %vm666_vm0, %v918_v58, %v910_v52  ;;  %1222 = vmatpush1.bf16.msra.mxu1 %v1131_v51  ;;  %v963_v51 = vmul.f32 %v958_v48, %v4251_v33  ;;  %v961_v58 = vmul.f32 %v957_v20, %v4251_v33 }
 0x23e   : > { %1223 = vmatprep.subr.bf16.mxu1 %v1134_v42  ;;  %v920_v7 = vpop.permute.xlu1 %919  ;;  %v933_v38 = vmul.f32 %v927_v46, %v4227_v15  ;;  %v934_v8 = vmul.f32 %v923_v17, %v4219_v13  ;;  %v986_v42 = vsel %vm700_vm3, %v4523_v22, %v4572_v39  ;;  %v1138_v46 = vpack.c.bf16 %v964_v19, %v962_v28 }
 0x23f   : > { %v924_v49 = vsel %vm666_vm0, %v912_v53, %v920_v7  ;;  %v928_v52 = vsel %vm666_vm0, %v920_v7, %v912_v53  ;;  %v990_v48 = vsel %vm700_vm3, %v4572_v39, %v4523_v22  ;;  %v996_v19 = vmul.f32 %v986_v42, %v4263_v36 }
 0x240   : > { %v935_v54 = vmul.f32 %v928_v52, %v4227_v15  ;;  %v936_v29 = vmul.f32 %v924_v49, %v4219_v13  ;;  %v950_v2 = vpop.permute.xlu0 %949  ;;  %v989_v22 = vsel %vm700_vm3, %v4567_v30, %v4519_v21  ;;  %v994_v39 = vmul.f32 %v985_v6, %v4263_v36 }
 0x241   : > { %1224 = vmatpush1.bf16.msra.mxu1 %v1133_v55  ;;  %v955_v9 = vsel %vm683_vm2, %v942_v56, %v950_v2  ;;  %v959_v16 = vsel %vm683_vm2, %v950_v2, %v942_v56  ;;  %v1137_v55 = vpack.c.bf16 %v963_v51, %v961_v58  ;;  %v995_v28 = vmul.f32 %v990_v48, %v4259_v35 }
 0x242   : > { %v4654_v53 = vpop.permute.xlu1 %1035  ;;  %v1136_v40 = vpack.c.bf16 %v936_v29, %v934_v8  ;;  %v1135_v18 = vpack.c.bf16 %v935_v54, %v933_v38  ;;  %v965_v52 = vmul.f32 %v959_v16, %v4251_v33  ;;  %v966_v38 = vmul.f32 %v955_v9, %v4255_v34 }
 0x244   : > { %v982_v17 = vpop.permute.xlu0 %981  ;;  %1225 = vmatprep.subr.bf16.mxu1 %v1136_v40  ;;  %v1142_v40 = vpack.c.bf16 %v996_v19, %v994_v39  ;;  %v1017_v39 = vsel %vm717_vm4, %v4525_v25, %v4577_v41 }
 0x245   : > { %1226 = vmatpush1.bf16.msra.mxu1 %v1135_v18  ;;  %v993_v18 = vmul.f32 %v989_v22, %v4259_v35  ;;  %v987_v58 = vsel %vm700_vm3, %v4589_v11, %v982_v17  ;;  %v991_v21 = vsel %vm700_vm3, %v982_v17, %v4589_v11  ;;  %v1148_v22 = vpack.c.bf16 %v4436_v0, %v4432_v62 }
 0x246   : > { %1227 = vmatprep.subr.bf16.mxu1 %v1138_v46  ;;  %v952_v7 = vpop.permute.xlu1 %951  ;;  %v997_v16 = vmul.f32 %v991_v21, %v4259_v35  ;;  %v998_v6 = vmul.f32 %v987_v58, %v4263_v36  ;;  %v1025_v62 = vmul.f32 %v1017_v39, %v4276_v43 }
 0x247   : > { %v956_v56 = vsel %vm683_vm2, %v4587_v10, %v952_v7  ;;  %v960_v49 = vsel %vm683_vm2, %v952_v7, %v4587_v10  ;;  %v1141_v9 = vpack.c.bf16 %v995_v28, %v993_v18 }
 0x248   : > { %v967_v8 = vmul.f32 %v960_v49, %v4251_v33  ;;  %v968_v54 = vmul.f32 %v956_v56, %v4255_v34  ;;  %v1014_v29 = vpop.permute.xlu0 %1013  ;;  %v1022_v49 = vsel %vm717_vm4, %v4582_v45, %v4527_v26 }
 0x249   : > { %1228 = vmatpush1.bf16.msra.mxu1 %v1137_v55 }
 0x24a   : > { %v4689_v2 = vpop.permute.xlu1 %1043  ;;  %v1140_v10 = vpack.c.bf16 %v968_v54, %v966_v38  ;;  %v1139_v20 = vpack.c.bf16 %v967_v8, %v965_v52  ;;  %v1021_v38 = vsel %vm717_vm4, %v4577_v41, %v4525_v25  ;;  %v1018_v8 = vsel %vm717_vm4, %v4527_v26, %v4582_v45 }
 0x24b   : > { %v1023_v25 = vsel %vm717_vm4, %v1014_v29, %v4615_v32 }
 0x24c   : > { %v1034_v51 = vpop.permute.xlu0 %1033  ;;  %1229 = vmatprep.subr.bf16.mxu1 %v1140_v10  ;;  %v1026_v10 = vmul.f32 %v1021_v38, %v4280_v44  ;;  %v1030_v58 = vmul.f32 %v1023_v25, %v4280_v44 }
 0x24d   : > { %1230 = vmatpush1.bf16.msra.mxu1 %v1139_v20  ;;  %v1027_v20 = vmul.f32 %v1018_v8, %v4276_v43 }
 0x24e   : > { %1231 = vmatprep.subr.bf16.mxu1 %v1142_v40  ;;  %v984_v30 = vpop.permute.xlu1 %983 }
 0x24f   : > { %v988_v42 = vsel %vm700_vm3, %v4591_v27, %v984_v30  ;;  %v992_v46 = vsel %vm700_vm3, %v984_v30, %v4591_v27  ;;  %v1146_v27 = vpack.c.bf16 %v4392_v59, %v4388_v57  ;;  %v1145_v57 = vpack.c.bf16 %v4368_v50, %v4366_v47 }
 0x250   : > { %v999_v7 = vmul.f32 %v992_v46, %v4259_v35  ;;  %v1000_v11 = vmul.f32 %v988_v42, %v4263_v36  ;;  %v1042_v17 = vpop.permute.xlu0 %1041  ;;  %v1028_v59 = vmul.f32 %v1022_v49, %v4280_v44  ;;  %v1019_v47 = vsel %vm717_vm4, %v4615_v32, %v1014_v29 }
 0x251   : > { %1232 = vmatpush1.bf16.msra.mxu1 %v1141_v9  ;;  %v1147_v50 = vpack.c.bf16 %v4416_v61, %v4410_v60  ;;  %v1053_v41 = vsel %vm734_vm5, %v1042_v17, %v1034_v51  ;;  %v1029_v28 = vmul.f32 %v1019_v47, %v4276_v43  ;;  %v1149_v18 = vpack.c.bf16 %v1027_v20, %v1025_v62 }
 0x252   : > { %v4709_v55 = vpop.permute.xlu1 %1039  ;;  %v1144_v48 = vpack.c.bf16 %v1000_v11, %v998_v6  ;;  %v1143_v19 = vpack.c.bf16 %v999_v7, %v997_v16  ;;  %v1150_v45 = vpack.c.bf16 %v1028_v59, %v1026_v10  ;;  %v1054_v60 = vsel %vm734_vm5, %v4689_v2, %v4654_v53 }
 0x253   : > { %v1049_v61 = vsel %vm734_vm5, %v1034_v51, %v1042_v17  ;;  %v1058_v21 = vmul.f32 %v1053_v41, %v4305_v3  ;;  %v1050_v51 = vsel %vm734_vm5, %v4654_v53, %v4689_v2  ;;  %v1060_v9 = vmul.f32 %v1054_v60, %v4305_v3 }
 0x254   : > { %v1038_v56 = vpop.permute.xlu0 %1037  ;;  %1233 = vmatprep.subr.bf16.mxu1 %v1144_v48  ;;  %v1057_v16 = vmul.f32 %v1049_v61, %v4301_v63  ;;  %v1059_v17 = vmul.f32 %v1050_v51, %v4301_v63 }
 0x255   : > { %1234 = vmatpush1.bf16.msra.mxu1 %v1143_v19 }
 0x256   : > { %1235 = vmatprep.subr.bf16.mxu1 %v1146_v27  ;;  %v4717_v52 = vpop.permute.xlu1 %1067  ;;  %v1154_v27 = vpack.c.bf16 %v1060_v9, %v1058_v21  ;;  %v1153_v38 = vpack.c.bf16 %v1059_v17, %v1057_v16 }
 0x258   : > { %v1046_v54 = vpop.permute.xlu0 %1045 }
 0x259   : > { %1236 = vmatpush1.bf16.msra.mxu1 %v1145_v57  ;;  %v1051_v11 = vsel %vm734_vm5, %v1038_v56, %v1046_v54  ;;  %v1055_v48 = vsel %vm734_vm5, %v1046_v54, %v1038_v56 }
 0x25a   : > { %v1076_v26 = vpop.permute.xlu1 %1075  ;;  %1237 = vmatprep.subr.bf16.mxu1 %v1148_v22  ;;  %v1061_v2 = vmul.f32 %v1051_v11, %v4301_v63  ;;  %v1062_v8 = vmul.f32 %v1055_v48, %v4305_v3 }
 0x25b   : > { %v1086_v57 = vsel %vm751_vm6, %v1076_v26, %v4717_v52  ;;  %v1082_v47 = vsel %vm751_vm6, %v4717_v52, %v1076_v26 }
 0x25c   : > { %v1066_v0 = vpop.permute.xlu0 %1065 }
 0x25d   : > { %1238 = vmatpush1.bf16.msra.mxu1 %v1147_v50  ;;  %v1092_v50 = vmul.f32 %v1086_v57, %v4314_v1 }
 0x25e   : > { %v1016_v40 = vpop.permute.xlu1 %1015  ;;  %1239 = vmatprep.subr.bf16.mxu1 %v1150_v45 }
 0x25f   : > { %v1020_v32 = vsel %vm717_vm4, %v4622_v37, %v1016_v40  ;;  %v1024_v29 = vsel %vm717_vm4, %v1016_v40, %v4622_v37 }
 0x260   : > { %v1031_v30 = vmul.f32 %v1020_v32, %v4276_v43  ;;  %v1032_v42 = vmul.f32 %v1024_v29, %v4280_v44  ;;  %v1074_v46 = vpop.permute.xlu0 %1073 }
 0x261   : > { %1240 = vmatpush1.bf16.msra.mxu1 %v1149_v18  ;;  %v1085_v53 = vsel %vm751_vm6, %v1074_v46, %v1066_v0  ;;  %v1081_v54 = vsel %vm751_vm6, %v1066_v0, %v1074_v46 }
 0x262   : > { %v1072_v37 = vpop.permute.xlu1 %1071  ;;  %v1152_v6 = vpack.c.bf16 %v1032_v42, %v1030_v58  ;;  %v1151_v7 = vpack.c.bf16 %v1031_v30, %v1029_v28  ;;  %v1090_v22 = vmul.f32 %v1085_v53, %v4314_v1  ;;  %v1089_v25 = vmul.f32 %v1081_v54, %v4310_v4  ;;  %v3949_v53 = vld [vmem:[%s5596_s29 + $0x1c] ss:$12 sps:$4 sm:$0xff]  }
 0x263   : > { %v1091_v28 = vmul.f32 %v1082_v47, %v4310_v4 }
 0x264   : > { %v1070_v19 = vpop.permute.xlu0 %1069  ;;  %1241 = vmatprep.subr.bf16.mxu1 %v1152_v6  ;;  %v1158_v41 = vpack.c.bf16 %v1092_v50, %v1090_v22  ;;  %v3951_v50 = vld [vmem:[%s5596_s29 + $0x18] ss:$12 sps:$4 sm:$0xff]  }
 0x265   : > { %1242 = vmatpush1.bf16.msra.mxu1 %v1151_v7  ;;  %v1157_v61 = vpack.c.bf16 %v1091_v28, %v1089_v25  ;;  %v5598_v25 = vld [vmem:[#allocation9_spill] sm:$0xff]  ;;  %v3966_v28 = vld [vmem:[%s5518_s14 + $0x70] sm:$0xff]  }
 0x266   : > { %v1048_v49 = vpop.permute.xlu1 %1047  ;;  %1243 = vmatprep.subr.bf16.mxu1 %v1154_v27  ;;  %v3946_v27 = vld [vmem:[%s5596_s29] ss:$12 sps:$4 sm:$0xff]   ;;  %3494 = vmatprep.subr.bf16.mxu0 %v3966_v28 }
 0x267   : > { %v1052_v56 = vsel %vm734_vm5, %v4709_v55, %v1048_v49  ;;  %v1056_v59 = vsel %vm734_vm5, %v1048_v49, %v4709_v55  ;;  %v5604_v28 = vld [vmem:[#allocation7_spill] sm:$0xff] }
 0x268   : > { %v1063_v39 = vmul.f32 %v1052_v56, %v4301_v63  ;;  %v1064_v10 = vmul.f32 %v1056_v59, %v4305_v3  ;;  %v1078_v20 = vpop.permute.xlu0 %1077 }
 0x269   : > { %1244 = vmatpush1.bf16.msra.mxu1 %v1153_v38  ;;  %v1083_v40 = vsel %vm751_vm6, %v1070_v19, %v1078_v20  ;;  %v1087_v18 = vsel %vm751_vm6, %v1078_v20, %v1070_v19 }
 0x26a   : > { %v1100_v62 = vpop.permute.xlu1 %1099  ;;  %v1156_v45 = vpack.c.bf16 %v1064_v10, %v1062_v8  ;;  %v1155_v55 = vpack.c.bf16 %v1063_v39, %v1061_v2  ;;  %v1093_v32 = vmul.f32 %v1083_v40, %v4310_v4  ;;  %v1094_v29 = vmul.f32 %v1087_v18, %v4314_v1  ;;  %v3967_v40 = vld [vmem:[%s5518_s14 + $0x30] sm:$0xff]   ;;  %v3968_v18 = vld [vmem:[%s5518_s14 + $0x78] sm:$0xff]  }
 0x26b   : > { %3495 = vmatpush3.bf16.msra.mxu0 %v3967_v40 }
 0x26c   : > { %v1098_v0 = vpop.permute.xlu0 %1097  ;;  %1245 = vmatprep.subr.bf16.mxu1 %v1156_v45  ;;  %3496 = vmatprep.subr.bf16.mxu0 %v3968_v18 }
 0x26d   : > { %1246 = vmatpush1.bf16.msra.mxu1 %v1155_v55  ;;  %v1166_v55 = vpack.c.bf16 %v4346_v31, %v4346_v31  ;;  %v3953_v31 = vld [vmem:[%s5596_s29 + $0x20] ss:$12 sps:$4 sm:$0xff]  }
 0x26e   : > { %v1080_v52 = vpop.permute.xlu1 %1079  ;;  %1247 = vmatprep.subr.bf16.mxu1 %v1158_v41  ;;  %v5599_v41 = vmov 0  }
 0x26f   : > { %v1084_v26 = vsel %vm751_vm6, %v1072_v37, %v1080_v52  ;;  %v1088_v60 = vsel %vm751_vm6, %v1080_v52, %v1072_v37  ;;  %v3969_v52 = vld [vmem:[%s5518_s14 + $0x38] sm:$0xff]  }
 0x270   : > { %v1095_v58 = vmul.f32 %v1084_v26, %v4310_v4  ;;  %v1096_v21 = vmul.f32 %v1088_v60, %v4314_v1  ;;  %v1106_v30 = vpop.permute.xlu0 %1105  ;;  %3497 = vmatpush3.bf16.msra.mxu0 %v3969_v52  ;;  %v5605_v52 = vld [vmem:[#allocation4_spill] sm:$0xff] }
 0x271   : > { %v1113_v42 = vsel %vm768_vm7, %v1098_v0, %v1106_v30  ;;  %v1117_v46 = vsel %vm768_vm7, %v1106_v30, %v1098_v0  ;;  %1248 = vmatpush1.bf16.msra.mxu1 %v1157_v61  ;;  %v1165_v0 = vpack.c.bf16 %v5598_v25, %v5598_v25 }
 0x272   : > { %v1108_v51 = vpop.permute.xlu1 %1107  ;;  %v1160_v9 = vpack.c.bf16 %v1096_v21, %v1094_v29  ;;  %v1159_v16 = vpack.c.bf16 %v1095_v58, %v1093_v32  ;;  %v1121_v7 = vmul.f32 %v4332_v23, %v1113_v42  ;;  %v1122_v11 = vmul.f32 %v4337_v24, %v1117_v46 }
 0x273   : > { %v1114_v37 = vsel %vm768_vm7, %v1100_v62, %v1108_v51  ;;  %v1118_v6 = vsel %vm768_vm7, %v1108_v51, %v1100_v62 }
 0x274   : > { %v1123_v17 = vmul.f32 %v4332_v23, %v1114_v37  ;;  %v1124_v48 = vmul.f32 %v4337_v24, %v1118_v6  ;;  %v1102_v19 = vpop.permute.xlu0 %1101  ;;  %1249 = vmatprep.subr.bf16.mxu1 %v1160_v9 }
 0x275   : > { %1250 = vmatpush1.bf16.msra.mxu1 %v1159_v16 }
 0x276   : > { %v1161_v2 = vpack.c.bf16 %v1123_v17, %v1121_v7  ;;  %v1104_v49 = vpop.permute.xlu1 %1103  ;;  %v1162_v38 = vpack.c.bf16 %v1124_v48, %v1122_v11 }
 0x278   : > { %v1110_v8 = vpop.permute.xlu0 %1109  ;;  %1252 = vmatmul.mubr.bf16.vlgmr.msra.gmra.mrb[0].mxu1 %v3946_v27  ;;  %1272 = vmatprep.subr.bf16.mxu1 %v1162_v38 }
 0x279   : > { %v1115_v57 = vsel %vm768_vm7, %v1102_v19, %v1110_v8  ;;  %v1119_v56 = vsel %vm768_vm7, %v1110_v8, %v1102_v19  ;;  %1273 = vmatpush1.bf16.msra.mxu1 %v1161_v2  ;;  %1261 = vmatprep.mubr.bf16.mxu1 %v3949_v53 }
 0x27a   : > { %v1112_v59 = vpop.permute.xlu1 %1111  ;;  %v1125_v39 = vmul.f32 %v4332_v23, %v1115_v57  ;;  %v1126_v10 = vmul.f32 %v4337_v24, %v1119_v56 }
 0x27b   : > { %v1116_v54 = vsel %vm768_vm7, %v1104_v49, %v1112_v59  ;;  %v1120_v22 = vsel %vm768_vm7, %v1112_v59, %v1104_v49  ;;  %v633_v59 = vld [vmem:[%s5600_s9] sm:$0xff] }
 0x27c   : > { %v1127_v20 = vmul.f32 %v4332_v23, %v1116_v54  ;;  %v1128_v47 = vmul.f32 %v4337_v24, %v1120_v22  ;;  %v1214_v23 = vsel %vm1212_vm9, %v1165_v0, 0  ;;  %v3952_v24 = vld [vmem:[%s5596_s29 + $0x8] ss:$12 sps:$4 sm:$0xff]   ;;  %v1602_v40 = vrot.slane %v633_v59, %v5604_v28 }
 0x27e   : > { %v1163_v62 = vpack.c.bf16 %v1127_v20, %v1125_v39  ;;  %v1164_v45 = vpack.c.bf16 %v1128_v47, %v1126_v10  ;;  %v5601_v20 = vld [vmem:[#allocation6_spill] sm:$0xff] }
 0x27f   : > { %v1590_v47 = vrot.slane %v633_v59, %v5601_v20 }
 0x280   : > { %1262 = vmatmul.mubr.bf16.gmra.mrb[4].mxu1 %v3951_v50  ;;  %1274 = vmatprep.subr.bf16.mxu1 %v1164_v45  ;;  %v5602_v50 = vld [vmem:[#allocation3_spill] sm:$0xff] }
 0x281   : > { %1275 = vmatpush1.bf16.msra.mxu1 %v1163_v62  ;;  %1304 = vmatprep.mubr.bf16.mxu1 %v5599_v41  ;;  %v1554_v62 = vrot.slane %v633_v59, %v5602_v50 }
 0x282   : > { %3424 = vmatprep.subr.msk.bf16.mxu1 %vm1212_vm9, %v1166_v55 }
 0x285   : > { %1277 = vmatpush1.bf16.msra.mxu1 %v1214_v23 }
 0x288   : > { %3425 = vmatmul.mubr.msk.bf16.vlgmr.msra.gmra.mrb[0].mxu1 %vm1205_vm10, %v3952_v24 }
 0x289   : > { %1314 = vmatprep.mubr.bf16.mxu1 %v5599_v41 }
 0x290   : > { %3426 = vmatmul.mubr.msk.bf16.gmra.mrb[4].mxu1 %vm1205_vm10, %v3953_v31 }
 0x35b   : > { %v1306_v26 = vpop.f32.mrb[0].mxu1 }
 0x35c   : > { %v1308_v60 = vpop.f32.mrb[1].mxu1  ;;  %v1325_v32 = vmax.f32 %v1306_v26, 0.0  ;;  %v1566_v26 = vrot.slane %v633_v59, %v5605_v52 }
 0x35d   : > { %v1310_v61 = vpop.f32.mrb[2].mxu1  ;;  %v1326_v21 = vmax.f32 %v1308_v60, 0.0  ;;  %v5606_v60 = vld [vmem:[#allocation8_spill] sm:$0xff] }
 0x35e   : > { %v1327_v29 = vmax.f32 %v1310_v61, 0.0  ;;  %v1312_v58 = vpop.f32.mrb[3].mxu1  ;;  %v1614_v61 = vrot.slane %v633_v59, %v5606_v60 }
 0x35f   : > { %v1328_v30 = vmax.f32 %v1312_v58, 0.0  ;;  %v3443_v58 = vld [vmem:[%s5600_s9 + $0x8] ss:$0 sm:$0xff]  ;;  %s5619_s9 = smov 16  }
 0x360   : > { %v1333_v42 = vpack.c.bf16 %v1327_v29, %v1325_v32  ;;  %v5607_v32 = vld [vmem:[#allocation5_spill] sm:$0xff] }
 0x361   : > { %v1334_v46 = vpack.c.bf16 %v1328_v30, %v1326_v21  ;;  %v1578_v29 = vrot.slane %v633_v59, %v5607_v32  ;;  %v5608_v21 = vld [vmem:[#allocation2_spill] sm:$0xff] }
 0x362   : > { %v1542_v30 = vrot.slane %v633_v59, %v5608_v21 }
 0x363   : > { %v1316_v51 = vpop.f32.mrb[4].mxu1  ;;  %1497 = vmatprep.mubr.bf16.mxu0 %v1334_v46 }
 0x364   : > { %v1318_v9 = vpop.f32.mrb[5].mxu1  ;;  %1498 = vmatmul.mubr.bf16.vlgmr.msra.gmra.mrb[8].mxu0 %v1333_v42  ;;  %v1329_v37 = vmax.f32 %v1316_v51, 0.0 }
 0x365   : > { %v1320_v16 = vpop.f32.mrb[6].mxu1  ;;  %v1330_v11 = vmax.f32 %v1318_v9, 0.0 }
 0x366   : > { %v1331_v6 = vmax.f32 %v1320_v16, 0.0  ;;  %v1322_v7 = vpop.f32.mrb[7].mxu1 }
 0x367   : > { %v1332_v17 = vmax.f32 %v1322_v7, 0.0 }
 0x368   : > { %v1335_v48 = vpack.c.bf16 %v1331_v6, %v1329_v37 }
 0x369   : > { %v1336_v19 = vpack.c.bf16 %v1332_v17, %v1330_v11 }
 0x36b   : > { %1505 = vmatprep.mubr.bf16.mxu0 %v1336_v19 }
 0x36c   : > { %1506 = vmatmul.mubr.bf16.gmra.mrb[12].mxu0 %v1335_v48 }
 0x437   : > { %v3498_v27 = vpop.f32.mrb[8].mxu0 }
 0x438   : > { %v3499_v53 = vpop.f32.mrb[9].mxu0 }
 0x439   : > { %v3500_v2 = vadd.f32 %v3499_v53, %v3498_v27  ;;  %v3501_v49 = vpop.f32.mrb[10].mxu0 }
 0x43a   : > { %v3502_v38 = vpop.f32.mrb[11].mxu0 }
 0x43b   : > { %v3503_v8 = vadd.f32 %v3502_v38, %v3501_v49  ;;  %1515 = vrot.lane.b32.xlu0 %v3500_v2, %s4017_s23 }
 0x43d   : > { %1518 = vrot.lane.b32.xlu1 %v3503_v8, %s4017_s23  ;;  %v3704_v42 = vpack.i.bf16 %v3503_v8, %v3500_v2 }
 0x43f   : > { %v3504_v57 = vpop.f32.mrb[12].mxu0 }
 0x440   : > { %v3505_v56 = vpop.f32.mrb[13].mxu0 }
 0x441   : > { %v4879_v54 = vadd.f32 %v3505_v56, %v3504_v57  ;;  %v3507_v22 = vpop.f32.mrb[14].mxu0 }
 0x442   : > { %v3508_v39 = vpop.f32.mrb[15].mxu0 }
 0x443   : > { %v3509_v10 = vadd.f32 %v3508_v39, %v3507_v22  ;;  %1521 = vrot.lane.b32.xlu0 %v4879_v54, %s4017_s23 }
 0x445   : > { %1524 = vrot.lane.b32.xlu1 %v3509_v10, %s4017_s23  ;;  %v3709_v46 = vpack.i.bf16 %v3509_v10, %v4879_v54 }
 0x447   : > { %1592 = vrot.lane.b32.xlu0 %v1590_v47, %s5603_s21 }
 0x449   : > { %1556 = vrot.lane.b32.xlu1 %v1554_v62, %s4018_s28  ;;  %s4024_s28 = smov 55  }
 0x4ad   : > { %v1516_v45 = vpop.permute.xlu0 %1515 }
 0x4ae   : > { %v1517_v55 = vsel %vm1514_vm11, %v1516_v45, %v3500_v2 }
 0x4af   : > { %v1519_v25 = vpop.permute.xlu1 %1518  ;;  %1527 = vrot.lane.b32.xlu0 %v1517_v55, %s4017_s23 }
 0x4b0   : > { %v1520_v0 = vsel %vm1514_vm11, %v1519_v25, %v3503_v8 }
 0x4b1   : > { %1529 = vrot.lane.b32.xlu1 %v1520_v0, %s4017_s23 }
 0x4b5   : > { %v1522_v23 = vpop.permute.xlu0 %1521 }
 0x4b6   : > { %v1523_v24 = vsel %vm1514_vm11, %v1522_v23, %v4879_v54 }
 0x4b7   : > { %v1525_v31 = vpop.permute.xlu1 %1524  ;;  %1531 = vrot.lane.b32.xlu0 %v1523_v24, %s4017_s23 }
 0x4b8   : > { %v1526_v18 = vsel %vm1514_vm11, %v1525_v31, %v3509_v10 }
 0x4b9   : > { %1533 = vrot.lane.b32.xlu1 %v1526_v18, %s4017_s23  ;;  %v4910_v51 = vpop.permute.xlu0 %1592 }
 0x4bb   : > { %1604 = vrot.lane.b32.xlu0 %v1602_v40, %s5560_s2  ;;  %v4912_v9 = vpop.permute.xlu1 %1556  ;;  %s5568_s2 = smov 47  }
 0x4bd   : > { %1568 = vrot.lane.b32.xlu1 %v1566_v26, %s4020_s24  ;;  %s5574_s24 = smov 54  }
 0x4bf   : > { %1616 = vrot.lane.b32.xlu0 %v1614_v61, %s5562_s27  ;;  %s5570_s27 = smov 46  }
 0x4c1   : > { %1580 = vrot.lane.b32.xlu1 %v1578_v29, %s4022_s3  ;;  %s5566_s3 = smov 48  }
 0x4c3   : > { %1628 = vrot.lane.b32.xlu0 %v3443_v58, %s4023_s26  ;;  %s5572_s26 = smov 120  }
 0x4c5   : > { %1544 = vrot.lane.b32.xlu1 %v1542_v30, %s4024_s28 }
 0x4c7   : > { %3705 = vrot.lane.b32.xlu0 %v3704_v42, %s4024_s28 }
 0x4c9   : > { %3710 = vrot.lane.b32.xlu1 %v3709_v46, %s4024_s28 }
 0x521   : > { %v1528_v16 = vpop.permute.xlu0 %1527 }
 0x522   : > { %v4915_v37 = vsel %vm1514_vm11, %v1528_v16, %v3500_v2 }
 0x523   : > { %v1530_v6 = vpop.permute.xlu1 %1529  ;;  %v1595_v11 = vmul.f32 %v4910_v51, %v4915_v37  ;;  %v1559_v48 = vmul.f32 %v4912_v9, %v4915_v37 }
 0x524   : > { %v4918_v7 = vsel %vm1514_vm11, %v1530_v6, %v3503_v8 }
 0x525   : > { %v1596_v17 = vmul.f32 %v4910_v51, %v4918_v7  ;;  %v1560_v19 = vmul.f32 %v4912_v9, %v4918_v7 }
 0x527   : > { %v3714_v27 = vpack.i.bf16 %v1596_v17, %v1595_v11  ;;  %v3719_v53 = vpack.i.bf16 %v1560_v19, %v1559_v48 }
 0x529   : > { %3715 = vrot.lane.b32.xlu0 %v3714_v27, %s5574_s24  ;;  %3720 = vrot.lane.b32.xlu1 %v3719_v53, %s5609_s30  ;;  %v1532_v2 = vpop.permute.xlu0 %1531 }
 0x52a   : > { %v4932_v49 = vsel %vm1514_vm11, %v1532_v2, %v4879_v54 }
 0x52b   : > { %v1534_v38 = vpop.permute.xlu1 %1533  ;;  %v1597_v56 = vmul.f32 %v4910_v51, %v4932_v49  ;;  %v1561_v22 = vmul.f32 %v4912_v9, %v4932_v49 }
 0x52c   : > { %v4935_v8 = vsel %vm1514_vm11, %v1534_v38, %v3509_v10 }
 0x52d   : > { %v4937_v57 = vpop.permute.xlu0 %1604  ;;  %v1598_v59 = vmul.f32 %v4910_v51, %v4935_v8  ;;  %v1562_v39 = vmul.f32 %v4912_v9, %v4935_v8 }
 0x52e   : > { %v1607_v10 = vmul.f32 %v4937_v57, %v4915_v37  ;;  %v1608_v45 = vmul.f32 %v4937_v57, %v4918_v7  ;;  %v1609_v24 = vmul.f32 %v4937_v57, %v4932_v49  ;;  %v1610_v31 = vmul.f32 %v4937_v57, %v4935_v8 }
 0x52f   : > { %v4947_v54 = vpop.permute.xlu1 %1568  ;;  %v3724_v47 = vpack.i.bf16 %v1598_v59, %v1597_v56  ;;  %v3734_v62 = vpack.i.bf16 %v1562_v39, %v1561_v22 }
 0x530   : > { %v1571_v55 = vmul.f32 %v4947_v54, %v4915_v37  ;;  %v1572_v25 = vmul.f32 %v4947_v54, %v4918_v7  ;;  %v3729_v40 = vpack.i.bf16 %v1608_v45, %v1607_v10  ;;  %v1573_v18 = vmul.f32 %v4947_v54, %v4932_v49 }
 0x531   : > { %3725 = vrot.lane.b32.xlu0 %v3724_v47, %s5574_s24  ;;  %3735 = vrot.lane.b32.xlu1 %v3734_v62, %s5609_s30  ;;  %v4959_v0 = vpop.permute.xlu0 %1616  ;;  %v1574_v26 = vmul.f32 %v4947_v54, %v4935_v8  ;;  %v3744_v29 = vpack.i.bf16 %v1610_v31, %v1609_v24  ;;  %v639_v24 = vld [vmem:[%s5516_s12] sm:$0xff]  ;;  %s5615_s24 = smov 120  }
 0x532   : > { %v3739_v23 = vpack.i.bf16 %v1572_v25, %v1571_v55  ;;  %v1619_v58 = vmul.f32 %v4959_v0, %v4915_v37  ;;  %v1620_v16 = vmul.f32 %v4959_v0, %v4918_v7  ;;  %v1621_v11 = vmul.f32 %v4959_v0, %v4932_v49 }
 0x533   : > { %v4969_v61 = vpop.permute.xlu1 %1580  ;;  %v3754_v30 = vpack.i.bf16 %v1574_v26, %v1573_v18  ;;  %v1622_v17 = vmul.f32 %v4959_v0, %v4935_v8 }
 0x534   : > { %v1583_v42 = vmul.f32 %v4969_v61, %v4915_v37  ;;  %v1584_v46 = vmul.f32 %v4969_v61, %v4918_v7  ;;  %v3749_v19 = vpack.i.bf16 %v1620_v16, %v1619_v58  ;;  %v1585_v56 = vmul.f32 %v4969_v61, %v4932_v49 }
 0x535   : > { %3740 = vrot.lane.b32.xlu1 %v3739_v23, %s5564_s25  ;;  %3730 = vrot.lane.b32.xlu0 %v3729_v40, %s5566_s3  ;;  %v4981_v6 = vpop.permute.xlu0 %1628  ;;  %v3769_v38 = vpack.i.bf16 %v1622_v17, %v1621_v11  ;;  %v1586_v47 = vmul.f32 %v4969_v61, %v4935_v8 }
 0x536   : > { %v3759_v48 = vpack.i.bf16 %v1584_v46, %v1583_v42  ;;  %v1631_v27 = vmul.f32 %v4981_v6, %v4915_v37  ;;  %v1632_v53 = vmul.f32 %v4981_v6, %v4918_v7  ;;  %v1633_v22 = vmul.f32 %v4981_v6, %v4932_v49 }
 0x537   : > { %v4995_v2 = vpop.permute.xlu1 %1544  ;;  %v1634_v39 = vmul.f32 %v4981_v6, %v4935_v8  ;;  %v3774_v25 = vpack.i.bf16 %v1586_v47, %v1585_v56 }
 0x538   : > { %v3764_v59 = vpack.i.bf16 %v1632_v53, %v1631_v27  ;;  %v1547_v31 = vmul.f32 %v4995_v2, %v4915_v37  ;;  %v1549_v42 = vmul.f32 %v4995_v2, %v4932_v49  ;;  %v1550_v46 = vmul.f32 %v4995_v2, %v4935_v8 }
 0x539   : > { %3755 = vrot.lane.b32.xlu1 %v3754_v30, %s5564_s25  ;;  %3745 = vrot.lane.b32.xlu0 %v3744_v29, %s5566_s3  ;;  %v3706_v62 = vpop.permute.xlu0 %3705  ;;  %v3779_v55 = vpack.i.bf16 %v1634_v39, %v1633_v22  ;;  %v1548_v29 = vmul.f32 %v4995_v2, %v4918_v7  ;;  %s5614_s3 = smov 47   ;;  %s5617_s25 = smov 73  }
 0x53a   : > { %v3708_v10 = vunpack.i.h.bf16 %v3706_v62  ;;  %v3707_v45 = vunpack.i.l.bf16 %v3706_v62  ;;  %v1768_v37 = vpack.c.bf16 %v1550_v46, %v1549_v42 }
 0x53b   : > { %v3711_v23 = vpop.permute.xlu1 %3710  ;;  %v1767_v30 = vpack.c.bf16 %v1548_v29, %v1547_v31 }
 0x53c   : > { %v1775_v40 = vpack.c.bf16 %v3708_v10, %v3707_v45  ;;  %v3713_v18 = vunpack.i.h.bf16 %v3711_v23  ;;  %v3712_v26 = vunpack.i.l.bf16 %v3711_v23 }
 0x53d   : > { %3760 = vrot.lane.b32.xlu1 %v3759_v48, %s5572_s26  ;;  %3750 = vrot.lane.b32.xlu0 %v3749_v19, %s5568_s2 }
 0x53e   : > { %v1776_v58 = vpack.c.bf16 %v3713_v18, %v3712_v26 }
 0x541   : > { %3770 = vrot.lane.b32.xlu1 %v3769_v38, %s5568_s2  ;;  %3765 = vrot.lane.b32.xlu0 %v3764_v59, %s5570_s27  ;;  %s5576_s2 = smov 73  }
 0x545   : > { %3780 = vrot.lane.b32.xlu1 %v3779_v55, %s5570_s27  ;;  %3775 = vrot.lane.b32.xlu0 %v3774_v25, %s5572_s26  ;;  %s5610_s27 = sld [smem:[#allocation13_spill]]  ;;  %s5616_s26 = smov 46  }
 0x549   : > { %1764 = vrot.lane.b32.xlu0 %v639_v24, %s4024_s28  ;;  %1859 = vrot.lane.b32.xlu1 %v1775_v40, %s5576_s2 }
 0x54d   : > { %1843 = vrot.lane.b32.xlu0 %v1767_v30, %s5576_s2  ;;  %1861 = vrot.lane.b32.xlu1 %v1776_v58, %s5576_s2 }
 0x551   : > { %1845 = vrot.lane.b32.xlu0 %v1768_v37, %s5576_s2 }
 0x59b   : > { %v3721_v7 = vpop.permute.xlu1 %3720  ;;  %v3716_v16 = vpop.permute.xlu0 %3715 }
 0x59c   : > { %v3723_v11 = vunpack.i.h.bf16 %v3721_v7  ;;  %v3722_v17 = vunpack.i.l.bf16 %v3721_v7  ;;  %v3718_v48 = vunpack.i.h.bf16 %v3716_v16  ;;  %v3717_v19 = vunpack.i.l.bf16 %v3716_v16 }
 0x59e   : > { %v1769_v27 = vpack.c.bf16 %v3723_v11, %v3722_v17  ;;  %v1777_v53 = vpack.c.bf16 %v3718_v48, %v3717_v19  ;;  %v3972_v19 = vld [vmem:[%s5610_s27 + $0x4] ss:$12 sps:$4 sm:$0xff]  }
 0x59f   : > { %1940 = vmatprep.mubr.bf16.mxu0 %v3972_v19 }
 0x5a0   : > { %1847 = vrot.lane.b32.xlu0 %v1769_v27, %s5576_s2  ;;  %1863 = vrot.lane.b32.xlu1 %v1777_v53, %s5576_s2 }
 0x5a3   : > { %v3736_v49 = vpop.permute.xlu1 %3735  ;;  %v3726_v8 = vpop.permute.xlu0 %3725 }
 0x5a4   : > { %v3738_v38 = vunpack.i.h.bf16 %v3736_v49  ;;  %v3737_v56 = vunpack.i.l.bf16 %v3736_v49  ;;  %v3728_v59 = vunpack.i.h.bf16 %v3726_v8  ;;  %v3727_v22 = vunpack.i.l.bf16 %v3726_v8 }
 0x5a6   : > { %v1770_v39 = vpack.c.bf16 %v3738_v38, %v3737_v56  ;;  %v1778_v47 = vpack.c.bf16 %v3728_v59, %v3727_v22 }
 0x5a7   : > { %v3741_v62 = vpop.permute.xlu1 %3740  ;;  %v3731_v10 = vpop.permute.xlu0 %3730 }
 0x5a8   : > { %v3743_v45 = vunpack.i.h.bf16 %v3741_v62  ;;  %v3742_v55 = vunpack.i.l.bf16 %v3741_v62  ;;  %v3733_v25 = vunpack.i.h.bf16 %v3731_v10  ;;  %v3732_v23 = vunpack.i.l.bf16 %v3731_v10  ;;  %1849 = vrot.lane.b32.xlu0 %v1770_v39, %s5576_s2  ;;  %1865 = vrot.lane.b32.xlu1 %v1778_v47, %s5576_s2  ;;  %v3973_v39 = vld [vmem:[%s5610_s27 + $0x8] ss:$12 sps:$4 sm:$0xff]  }
 0x5a9   : > { %3614 = vmatprep.mubr.msk.bf16.mxu1 %vm1205_vm10, %v3973_v39 }
 0x5aa   : > { %v1771_v24 = vpack.c.bf16 %v3743_v45, %v3742_v55  ;;  %v1779_v31 = vpack.c.bf16 %v3733_v25, %v3732_v23 }
 0x5ab   : > { %v3756_v40 = vpop.permute.xlu1 %3755  ;;  %v3746_v18 = vpop.permute.xlu0 %3745 }
 0x5ac   : > { %v3758_v26 = vunpack.i.h.bf16 %v3756_v40  ;;  %v3757_v29 = vunpack.i.l.bf16 %v3756_v40  ;;  %v3748_v58 = vunpack.i.h.bf16 %v3746_v18  ;;  %v3747_v30 = vunpack.i.l.bf16 %v3746_v18  ;;  %1851 = vrot.lane.b32.xlu0 %v1771_v24, %s5576_s2  ;;  %1867 = vrot.lane.b32.xlu1 %v1779_v31, %s5576_s2 }
 0x5ae   : > { %v1772_v42 = vpack.c.bf16 %v3758_v26, %v3757_v29  ;;  %v1780_v46 = vpack.c.bf16 %v3748_v58, %v3747_v30 }
 0x5af   : > { %v3761_v37 = vpop.permute.xlu1 %3760  ;;  %v3751_v7 = vpop.permute.xlu0 %3750 }
 0x5b0   : > { %v3763_v16 = vunpack.i.h.bf16 %v3761_v37  ;;  %v3762_v11 = vunpack.i.l.bf16 %v3761_v37  ;;  %v3753_v17 = vunpack.i.h.bf16 %v3751_v7  ;;  %v3752_v48 = vunpack.i.l.bf16 %v3751_v7  ;;  %1853 = vrot.lane.b32.xlu0 %v1772_v42, %s5576_s2  ;;  %1869 = vrot.lane.b32.xlu1 %v1780_v46, %s5576_s2 }
 0x5b2   : > { %v1773_v27 = vpack.c.bf16 %v3763_v16, %v3762_v11  ;;  %v1781_v53 = vpack.c.bf16 %v3753_v17, %v3752_v48 }
 0x5b3   : > { %v3771_v49 = vpop.permute.xlu1 %3770  ;;  %v3766_v8 = vpop.permute.xlu0 %3765 }
 0x5b4   : > { %v3773_v38 = vunpack.i.h.bf16 %v3771_v49  ;;  %v3772_v56 = vunpack.i.l.bf16 %v3771_v49  ;;  %v3768_v59 = vunpack.i.h.bf16 %v3766_v8  ;;  %v3767_v22 = vunpack.i.l.bf16 %v3766_v8  ;;  %1855 = vrot.lane.b32.xlu0 %v1773_v27, %s5576_s2  ;;  %1871 = vrot.lane.b32.xlu1 %v1781_v53, %s5576_s2 }
 0x5b6   : > { %v1782_v47 = vpack.c.bf16 %v3773_v38, %v3772_v56  ;;  %v1783_v62 = vpack.c.bf16 %v3768_v59, %v3767_v22  ;;  %v3970_v59 = vld [vmem:[%s5610_s27] ss:$12 sps:$4 sm:$0xff]   ;;  %v3975_v22 = vld [vmem:[%s5610_s27 + $0x1c] ss:$12 sps:$4 sm:$0xff]  }
 0x5b7   : > { %v3781_v10 = vpop.permute.xlu1 %3780  ;;  %v3776_v45 = vpop.permute.xlu0 %3775 }
 0x5b8   : > { %v3783_v55 = vunpack.i.h.bf16 %v3781_v10  ;;  %v3782_v25 = vunpack.i.l.bf16 %v3781_v10  ;;  %v3778_v23 = vunpack.i.h.bf16 %v3776_v45  ;;  %v3777_v24 = vunpack.i.l.bf16 %v3776_v45  ;;  %1873 = vrot.lane.b32.xlu0 %v1782_v47, %s5576_s2  ;;  %1875 = vrot.lane.b32.xlu1 %v1783_v62, %s5576_s2  ;;  %v3974_v62 = vld [vmem:[%s5610_s27 + $0x20] ss:$12 sps:$4 sm:$0xff]   ;;  %v3977_v10 = vld [vmem:[%s5610_s27 + $0x18] ss:$12 sps:$4 sm:$0xff]  }
 0x5ba   : > { %v1784_v31 = vpack.c.bf16 %v3783_v55, %v3782_v25  ;;  %v1774_v40 = vpack.c.bf16 %v3778_v23, %v3777_v24 }
 0x5bb   : > { %v1765_v18 = vpop.permute.xlu0 %1764  ;;  %v1860_v26 = vpop.permute.xlu1 %1859 }
 0x5bc   : > { %v1785_v29 = vpack.c.bf16 %v1765_v18, %v1765_v18  ;;  %1877 = vrot.lane.b32.xlu0 %v1784_v31, %s5576_s2  ;;  %1857 = vrot.lane.b32.xlu1 %v1774_v40, %s5576_s2 }
 0x5bd   : > { %3510 = vmatprep.subr.bf16.mxu0 %v1860_v26 }
 0x5bf   : > { %v1844_v58 = vpop.permute.xlu0 %1843  ;;  %v1862_v30 = vpop.permute.xlu1 %1861 }
 0x5c0   : > { %1879 = vrot.lane.b32.xlu1 %v1785_v29, %s5576_s2  ;;  %3511 = vmatpush3.bf16.msra.mxu0 %v1844_v58  ;;  %s5612_s2 = smov 48  }
 0x5c1   : > { %3512 = vmatprep.subr.bf16.mxu0 %v1862_v30 }
 0x5c3   : > { %v1846_v42 = vpop.permute.xlu0 %1845 }
 0x5c4   : > { %3513 = vmatpush3.bf16.msra.mxu0 %v1846_v42 }
 0x612   : > { %v1848_v46 = vpop.permute.xlu0 %1847  ;;  %v1864_v37 = vpop.permute.xlu1 %1863 }
 0x613   : > { %3514 = vmatprep.subr.bf16.mxu0 %v1864_v37 }
 0x614   : > { %3515 = vmatpush3.bf16.msra.mxu0 %v1848_v46 }
 0x61a   : > { %v1850_v7 = vpop.permute.xlu0 %1849  ;;  %v1866_v16 = vpop.permute.xlu1 %1865 }
 0x61b   : > { %3516 = vmatprep.subr.bf16.mxu0 %v1866_v16 }
 0x61c   : > { %3517 = vmatpush3.bf16.msra.mxu0 %v1850_v7 }
 0x61e   : > { %v1852_v11 = vpop.permute.xlu0 %1851  ;;  %v1868_v17 = vpop.permute.xlu1 %1867 }
 0x61f   : > { %3518 = vmatprep.subr.bf16.mxu0 %v1868_v17 }
 0x620   : > { %3519 = vmatpush3.bf16.msra.mxu0 %v1852_v11 }
 0x622   : > { %v1854_v48 = vpop.permute.xlu0 %1853  ;;  %v1870_v19 = vpop.permute.xlu1 %1869 }
 0x623   : > { %3520 = vmatprep.subr.bf16.mxu0 %v1870_v19 }
 0x624   : > { %3521 = vmatpush3.bf16.msra.mxu0 %v1854_v48 }
 0x626   : > { %v1856_v27 = vpop.permute.xlu0 %1855  ;;  %v1872_v53 = vpop.permute.xlu1 %1871 }
 0x627   : > { %3522 = vmatprep.subr.bf16.mxu0 %v1872_v53 }
 0x628   : > { %3523 = vmatpush3.bf16.msra.mxu0 %v1856_v27 }
 0x62a   : > { %v1874_v49 = vpop.permute.xlu0 %1873  ;;  %v1876_v8 = vpop.permute.xlu1 %1875 }
 0x62b   : > { %3524 = vmatprep.subr.bf16.mxu0 %v1874_v49  ;;  %3608 = vmatprep.subr.bf16.mxu1 %v1876_v8 }
 0x62c   : > { %3609 = vmatpush3.bf16.msra.mxu1 %v1876_v8 }
 0x62e   : > { %v1878_v38 = vpop.permute.xlu0 %1877  ;;  %v1858_v56 = vpop.permute.xlu1 %1857 }
 0x62f   : > { %3525 = vmatpush3.bf16.msra.mxu0 %v1858_v56  ;;  %3610 = vmatprep.subr.bf16.mxu1 %v1878_v38 }
 0x630   : > { %3611 = vmatpush3.bf16.msra.mxu1 %v1878_v38 }
 0x632   : > { %1941 = vmatmul.mubr.bf16.vlgmr.msra.gmra.mrb[16].mxu0 %v3970_v59  ;;  %v5053_v39 = vpop.permute.xlu1 %1879 }
 0x633   : > { %3658 = vmatprep.subr.msk.bf16.mxu1 %vm1212_vm9, %v5053_v39  ;;  %v5059_v47 = vsel %vm1212_vm9, %v5053_v39, 0  ;;  %1948 = vmatprep.mubr.bf16.mxu0 %v3975_v22 }
 0x634   : > { %3613 = vmatpush3.bf16.msra.mxu1 %v5059_v47 }
 0x637   : > { %3615 = vmatmul.mubr.msk.bf16.vlgmr.msra.gmra.mrb[8].mxu1 %vm1205_vm10, %v3974_v62 }
 0x63a   : > { %1949 = vmatmul.mubr.bf16.gmra.mrb[20].mxu0 %v3977_v10 }
 0x705   : > { %v3526_v45 = vpop.f32.mrb[16].mxu0 }
 0x706   : > { %v3527_v55 = vpop.f32.mrb[17].mxu0 }
 0x707   : > { %v3528_v25 = vadd.f32 %v3527_v55, %v3526_v45  ;;  %v3529_v23 = vpop.f32.mrb[18].mxu0 }
 0x708   : > { %v3530_v24 = vpop.f32.mrb[19].mxu0 }
 0x709   : > { %v3531_v31 = vadd.f32 %v3530_v24, %v3529_v23 }
 0x70a   : > { %v3616_v40 = vpop.f32.mrb[8].mxu1 }
 0x70b   : > { %v1991_v18 = vpop.f32.mrb[9].mxu1 }
 0x70c   : > { %v1992_v26 = vadd.f32 %v3528_v25, %v1991_v18  ;;  %v3617_v29 = vpop.f32.mrb[10].mxu1 }
 0x70d   : > { %v3532_v58 = vpop.f32.mrb[20].mxu0  ;;  %v1994_v30 = vpop.f32.mrb[11].mxu1 }
 0x70e   : > { %v2006_v42 = vmax.f32 %v1992_v26, 0.0  ;;  %v1995_v46 = vadd.f32 %v3531_v31, %v1994_v30  ;;  %v3533_v37 = vpop.f32.mrb[21].mxu0 }
 0x70f   : > { %v3534_v7 = vadd.f32 %v3533_v37, %v3532_v58  ;;  %v3535_v16 = vpop.f32.mrb[22].mxu0 }
 0x710   : > { %v2007_v11 = vmax.f32 %v1995_v46, 0.0  ;;  %v3536_v17 = vpop.f32.mrb[23].mxu0  ;;  %2010 = vrot.lane.b32.xlu0 %v2006_v42, %s4017_s23 }
 0x711   : > { %v2000_v48 = vadd.f32 %v3616_v40, %v3534_v7  ;;  %v3537_v19 = vadd.f32 %v3536_v17, %v3535_v16 }
 0x712   : > { %2013 = vrot.lane.b32.xlu1 %v2007_v11, %s4017_s23  ;;  %v3784_v55 = vpack.i.bf16 %v2007_v11, %v2006_v42 }
 0x713   : > { %v2008_v27 = vmax.f32 %v2000_v48, 0.0  ;;  %v2003_v53 = vadd.f32 %v3617_v29, %v3537_v19 }
 0x715   : > { %v2009_v49 = vmax.f32 %v2003_v53, 0.0  ;;  %2016 = vrot.lane.b32.xlu0 %v2008_v27, %s4017_s23 }
 0x717   : > { %2019 = vrot.lane.b32.xlu1 %v2009_v49, %s4017_s23  ;;  %v3789_v25 = vpack.i.bf16 %v2009_v49, %v2008_v27 }
 0x782   : > { %v2011_v8 = vpop.permute.xlu0 %2010 }
 0x783   : > { %v2012_v38 = vsel %vm1514_vm11, %v2011_v8, %v2006_v42 }
 0x784   : > { %v2014_v56 = vpop.permute.xlu1 %2013  ;;  %2022 = vrot.lane.b32.xlu0 %v2012_v38, %s4017_s23 }
 0x785   : > { %v2015_v59 = vsel %vm1514_vm11, %v2014_v56, %v2007_v11 }
 0x786   : > { %2024 = vrot.lane.b32.xlu1 %v2015_v59, %s4017_s23 }
 0x787   : > { %v2017_v22 = vpop.permute.xlu0 %2016 }
 0x788   : > { %v2018_v62 = vsel %vm1514_vm11, %v2017_v22, %v2008_v27 }
 0x789   : > { %v2020_v10 = vpop.permute.xlu1 %2019  ;;  %2026 = vrot.lane.b32.xlu0 %v2018_v62, %s4017_s23 }
 0x78a   : > { %v2021_v45 = vsel %vm1514_vm11, %v2020_v10, %v2009_v49 }
 0x78b   : > { %2028 = vrot.lane.b32.xlu1 %v2021_v45, %s4017_s23  ;;  %s5611_s23 = smov 54  }
 0x78d   : > { %3785 = vrot.lane.b32.xlu0 %v3784_v55, %s4024_s28 }
 0x78f   : > { %3790 = vrot.lane.b32.xlu1 %v3789_v25, %s4024_s28  ;;  %s5613_s28 = smov 126  }
 0x7f6   : > { %v2023_v23 = vpop.permute.xlu0 %2022 }
 0x7f7   : > { %v5084_v24 = vsel %vm1514_vm11, %v2023_v23, %v2006_v42 }
 0x7f8   : > { %v2025_v31 = vpop.permute.xlu1 %2024  ;;  %v2050_v18 = vmul.f32 %v5084_v24, %v4910_v51  ;;  %v2038_v29 = vmul.f32 %v5084_v24, %v4912_v9  ;;  %v2054_v38 = vmul.f32 %v5084_v24, %v4937_v57 }
 0x7f9   : > { %v2031_v40 = vsel %vm1514_vm11, %v2025_v31, %v2007_v11  ;;  %v2058_v31 = vmul.f32 %v5084_v24, %v4959_v0 }
 0x7fa   : > { %v2051_v26 = vmul.f32 %v2031_v40, %v4910_v51  ;;  %v2039_v58 = vmul.f32 %v2031_v40, %v4912_v9  ;;  %v2055_v8 = vmul.f32 %v2031_v40, %v4937_v57  ;;  %v2059_v25 = vmul.f32 %v2031_v40, %v4959_v0 }
 0x7fb   : > { %v2027_v30 = vpop.permute.xlu0 %2026  ;;  %v2047_v23 = vmul.f32 %v2031_v40, %v4969_v61 }
 0x7fc   : > { %v5094_v46 = vsel %vm1514_vm11, %v2027_v30, %v2008_v27  ;;  %v3794_v37 = vpack.i.bf16 %v2051_v26, %v2050_v18  ;;  %v3799_v42 = vpack.i.bf16 %v2039_v58, %v2038_v29  ;;  %v3809_v56 = vpack.i.bf16 %v2055_v8, %v2054_v38 }
 0x7fd   : > { %v2029_v7 = vpop.permute.xlu1 %2028  ;;  %v2052_v11 = vmul.f32 %v5094_v46, %v4910_v51  ;;  %v2040_v48 = vmul.f32 %v5094_v46, %v4912_v9  ;;  %v2056_v62 = vmul.f32 %v5094_v46, %v4937_v57  ;;  %v2044_v10 = vmul.f32 %v5094_v46, %v4947_v54 }
 0x7fe   : > { %v2033_v16 = vsel %vm1514_vm11, %v2029_v7, %v2009_v49  ;;  %3795 = vrot.lane.b32.xlu0 %v3794_v37, %s5611_s23  ;;  %3800 = vrot.lane.b32.xlu1 %v3799_v42, %s5609_s30  ;;  %v2043_v49 = vmul.f32 %v2031_v40, %v4947_v54  ;;  %v2046_v18 = vmul.f32 %v5084_v24, %v4969_v61 }
 0x7ff   : > { %v2053_v17 = vmul.f32 %v2033_v16, %v4910_v51  ;;  %v2041_v19 = vmul.f32 %v2033_v16, %v4912_v9  ;;  %v2042_v51 = vmul.f32 %v5084_v24, %v4947_v54  ;;  %v2057_v9 = vmul.f32 %v2033_v16, %v4937_v57  ;;  %v3786_v37 = vpop.permute.xlu0 %3785 }
 0x800   : > { %v2045_v22 = vmul.f32 %v2033_v16, %v4947_v54  ;;  %v3829_v57 = vpack.i.bf16 %v2059_v25, %v2058_v31  ;;  %v3839_v26 = vpack.i.bf16 %v2047_v23, %v2046_v18  ;;  %v2061_v54 = vmul.f32 %v2033_v16, %v4959_v0 }
 0x801   : > { %v3804_v27 = vpack.i.bf16 %v2053_v17, %v2052_v11  ;;  %v3814_v53 = vpack.i.bf16 %v2041_v19, %v2040_v48  ;;  %v3819_v59 = vpack.i.bf16 %v2043_v49, %v2042_v51  ;;  %v3824_v45 = vpack.i.bf16 %v2057_v9, %v2056_v62  ;;  %v3791_v49 = vpop.permute.xlu1 %3790 }
 0x802   : > { %v3834_v55 = vpack.i.bf16 %v2045_v22, %v2044_v10  ;;  %v2049_v29 = vmul.f32 %v2033_v16, %v4969_v61  ;;  %v2060_v58 = vmul.f32 %v5094_v46, %v4959_v0  ;;  %v2048_v30 = vmul.f32 %v5094_v46, %v4969_v61 }
 0x803   : > { %3805 = vrot.lane.b32.xlu0 %v3804_v27, %s5611_s23  ;;  %3815 = vrot.lane.b32.xlu1 %v3814_v53, %s5609_s30  ;;  %v2063_v11 = vmul.f32 %v2031_v40, %v4981_v6  ;;  %v2065_v17 = vmul.f32 %v2033_v16, %v4981_v6  ;;  %v2062_v48 = vmul.f32 %v5084_v24, %v4981_v6  ;;  %v3788_v19 = vunpack.i.h.bf16 %v3786_v37  ;;  %s4036_s23 = smov 5  }
 0x804   : > { %v3844_v42 = vpack.i.bf16 %v2061_v54, %v2060_v58  ;;  %v3854_v7 = vpack.i.bf16 %v2049_v29, %v2048_v30  ;;  %v2064_v0 = vmul.f32 %v5094_v46, %v4981_v6  ;;  %v3787_v27 = vunpack.i.l.bf16 %v3786_v37 }
 0x805   : > { %v3849_v61 = vpack.i.bf16 %v2063_v11, %v2062_v48  ;;  %v2035_v8 = vmul.f32 %v2031_v40, %v4995_v2  ;;  %v2034_v38 = vmul.f32 %v5084_v24, %v4995_v2  ;;  %v2037_v6 = vmul.f32 %v2033_v16, %v4995_v2 }
 0x806   : > { %v3859_v53 = vpack.i.bf16 %v2065_v17, %v2064_v0  ;;  %v2202_v51 = vpack.c.bf16 %v3788_v19, %v3787_v27  ;;  %v2036_v40 = vmul.f32 %v5094_v46, %v4995_v2 }
 0x807   : > { %3810 = vrot.lane.b32.xlu0 %v3809_v56, %s5612_s2  ;;  %3820 = vrot.lane.b32.xlu1 %v3819_v59, %s5613_s28  ;;  %v3793_v56 = vunpack.i.h.bf16 %v3791_v49  ;;  %v3792_v59 = vunpack.i.l.bf16 %v3791_v49  ;;  %v2194_v9 = vpack.c.bf16 %v2035_v8, %v2034_v38 }
 0x808   : > { %v2195_v62 = vpack.c.bf16 %v2037_v6, %v2036_v40 }
 0x809   : > { %v2203_v22 = vpack.c.bf16 %v3793_v56, %v3792_v59 }
 0x80b   : > { %3825 = vrot.lane.b32.xlu0 %v3824_v45, %s5612_s2  ;;  %3835 = vrot.lane.b32.xlu1 %v3834_v55, %s5613_s28  ;;  %s4032_s2 = smov 12  }
 0x80f   : > { %3830 = vrot.lane.b32.xlu0 %v3829_v57, %s5614_s3  ;;  %3840 = vrot.lane.b32.xlu1 %v3839_v26, %s5615_s24 }
 0x813   : > { %3845 = vrot.lane.b32.xlu0 %v3844_v42, %s5614_s3  ;;  %3855 = vrot.lane.b32.xlu1 %v3854_v7, %s5615_s24  ;;  %s4033_s3 = smov 3   ;;  %s4034_s24 = smov 13  }
 0x817   : > { %3850 = vrot.lane.b32.xlu0 %v3849_v61, %s5616_s26  ;;  %3860 = vrot.lane.b32.xlu1 %v3859_v53, %s5616_s26  ;;  %s5622_s26 = smov 7  }
 0x81b   : > { %2268 = vrot.lane.b32.xlu1 %v2194_v9, %s5617_s25  ;;  %2284 = vrot.lane.b32.xlu0 %v2202_v51, %s5617_s25 }
 0x81f   : > { %2270 = vrot.lane.b32.xlu1 %v2195_v62, %s5617_s25  ;;  %2286 = vrot.lane.b32.xlu0 %v2203_v22, %s5617_s25  ;;  %v3980_v62 = vld [vmem:[%s5618_s4 + $0x4] ss:$12 sps:$4 sm:$0xff]  }
 0x820   : > { %2360 = vmatprep.mubr.bf16.mxu0 %v3980_v62 }
 0x870   : > { %v3801_v24 = vpop.permute.xlu1 %3800  ;;  %v3796_v10 = vpop.permute.xlu0 %3795 }
 0x871   : > { %v3803_v45 = vunpack.i.h.bf16 %v3801_v24  ;;  %v3802_v55 = vunpack.i.l.bf16 %v3801_v24  ;;  %v3798_v25 = vunpack.i.h.bf16 %v3796_v10  ;;  %v3797_v23 = vunpack.i.l.bf16 %v3796_v10 }
 0x873   : > { %v2196_v16 = vpack.c.bf16 %v3803_v45, %v3802_v55  ;;  %v2204_v31 = vpack.c.bf16 %v3798_v25, %v3797_v23 }
 0x875   : > { %v3816_v18 = vpop.permute.xlu1 %3815  ;;  %2272 = vrot.lane.b32.xlu1 %v2196_v16, %s5617_s25  ;;  %v3806_v57 = vpop.permute.xlu0 %3805  ;;  %2288 = vrot.lane.b32.xlu0 %v2204_v31, %s5617_s25 }
 0x876   : > { %v3818_v2 = vunpack.i.h.bf16 %v3816_v18  ;;  %v3817_v46 = vunpack.i.l.bf16 %v3816_v18  ;;  %v3808_v26 = vunpack.i.h.bf16 %v3806_v57  ;;  %v3807_v54 = vunpack.i.l.bf16 %v3806_v57 }
 0x878   : > { %v2197_v29 = vpack.c.bf16 %v3818_v2, %v3817_v46  ;;  %v2205_v58 = vpack.c.bf16 %v3808_v26, %v3807_v54 }
 0x879   : > { %v3821_v30 = vpop.permute.xlu1 %3820  ;;  %v3811_v37 = vpop.permute.xlu0 %3810 }
 0x87a   : > { %v3823_v42 = vunpack.i.h.bf16 %v3821_v30  ;;  %v3822_v7 = vunpack.i.l.bf16 %v3821_v30  ;;  %v3813_v11 = vunpack.i.h.bf16 %v3811_v37  ;;  %v3812_v17 = vunpack.i.l.bf16 %v3811_v37  ;;  %2274 = vrot.lane.b32.xlu1 %v2197_v29, %s5617_s25  ;;  %2290 = vrot.lane.b32.xlu0 %v2205_v58, %s5617_s25  ;;  %v3984_v30 = vld [vmem:[%s5618_s4 + $0x8] ss:$12 sps:$4 sm:$0xff]  }
 0x87b   : > { %3624 = vmatprep.mubr.msk.bf16.mxu1 %vm1205_vm10, %v3984_v30 }
 0x87c   : > { %v2198_v48 = vpack.c.bf16 %v3823_v42, %v3822_v7  ;;  %v2206_v0 = vpack.c.bf16 %v3813_v11, %v3812_v17 }
 0x87d   : > { %v3836_v19 = vpop.permute.xlu1 %3835  ;;  %v3826_v27 = vpop.permute.xlu0 %3825 }
 0x87e   : > { %v3838_v61 = vunpack.i.h.bf16 %v3836_v19  ;;  %v3837_v53 = vunpack.i.l.bf16 %v3836_v19  ;;  %v3828_v8 = vunpack.i.h.bf16 %v3826_v27  ;;  %v3827_v49 = vunpack.i.l.bf16 %v3826_v27  ;;  %2276 = vrot.lane.b32.xlu1 %v2198_v48, %s5617_s25  ;;  %2292 = vrot.lane.b32.xlu0 %v2206_v0, %s5617_s25 }
 0x880   : > { %v2199_v38 = vpack.c.bf16 %v3838_v61, %v3837_v53  ;;  %v2207_v51 = vpack.c.bf16 %v3828_v8, %v3827_v49 }
 0x881   : > { %v3841_v56 = vpop.permute.xlu1 %3840  ;;  %v3831_v59 = vpop.permute.xlu0 %3830 }
 0x882   : > { %v3843_v9 = vunpack.i.h.bf16 %v3841_v56  ;;  %v3842_v6 = vunpack.i.l.bf16 %v3841_v56  ;;  %v3833_v40 = vunpack.i.h.bf16 %v3831_v59  ;;  %v3832_v22 = vunpack.i.l.bf16 %v3831_v59  ;;  %2278 = vrot.lane.b32.xlu1 %v2199_v38, %s5617_s25  ;;  %2294 = vrot.lane.b32.xlu0 %v2207_v51, %s5617_s25 }
 0x884   : > { %v2200_v24 = vpack.c.bf16 %v3843_v9, %v3842_v6  ;;  %v2208_v10 = vpack.c.bf16 %v3833_v40, %v3832_v22  ;;  %v3978_v6 = vld [vmem:[%s5618_s4] ss:$12 sps:$4 sm:$0xff]   ;;  %v3981_v40 = vld [vmem:[%s5618_s4 + $0x1c] ss:$12 sps:$4 sm:$0xff]  }
 0x885   : > { %v3856_v45 = vpop.permute.xlu1 %3855  ;;  %v3846_v55 = vpop.permute.xlu0 %3845 }
 0x886   : > { %v3858_v25 = vunpack.i.h.bf16 %v3856_v45  ;;  %v3857_v23 = vunpack.i.l.bf16 %v3856_v45  ;;  %v3848_v16 = vunpack.i.h.bf16 %v3846_v55  ;;  %v3847_v31 = vunpack.i.l.bf16 %v3846_v55  ;;  %2280 = vrot.lane.b32.xlu1 %v2200_v24, %s5617_s25  ;;  %2296 = vrot.lane.b32.xlu0 %v2208_v10, %s5617_s25  ;;  %v3983_v24 = vld [vmem:[%s5618_s4 + $0x18] ss:$12 sps:$4 sm:$0xff]   ;;  %v3985_v10 = vld [vmem:[%s5618_s4 + $0x20] ss:$12 sps:$4 sm:$0xff]   ;;  %s4037_s4 = smov 11  }
 0x887   : > { %v3986_v45 = vld [vmem:[%s5519_s15] sm:$0xff]   ;;  %v3987_v55 = vld [vmem:[%s5519_s15 + $0x8] sm:$0xff]  }
 0x888   : > { %v2201_v18 = vpack.c.bf16 %v3858_v25, %v3857_v23  ;;  %v2209_v57 = vpack.c.bf16 %v3848_v16, %v3847_v31 }
 0x889   : > { %v3861_v2 = vpop.permute.xlu1 %3860  ;;  %v3851_v46 = vpop.permute.xlu0 %3850 }
 0x88a   : > { %v3863_v26 = vunpack.i.h.bf16 %v3861_v2  ;;  %v3862_v54 = vunpack.i.l.bf16 %v3861_v2  ;;  %v3853_v29 = vunpack.i.h.bf16 %v3851_v46  ;;  %v3852_v58 = vunpack.i.l.bf16 %v3851_v46  ;;  %2282 = vrot.lane.b32.xlu1 %v2201_v18, %s5617_s25  ;;  %2298 = vrot.lane.b32.xlu0 %v2209_v57, %s5617_s25 }
 0x88c   : > { %v2211_v37 = vpack.c.bf16 %v3863_v26, %v3862_v54  ;;  %v2210_v42 = vpack.c.bf16 %v3853_v29, %v3852_v58 }
 0x88d   : > { %v2269_v7 = vpop.permute.xlu1 %2268  ;;  %v2285_v11 = vpop.permute.xlu0 %2284 }
 0x88e   : > { %2302 = vrot.lane.b32.xlu1 %v2211_v37, %s5617_s25  ;;  %2300 = vrot.lane.b32.xlu0 %v2210_v42, %s5617_s25  ;;  %s4039_s25 = smov 6  }
 0x88f   : > { %3543 = vmatprep.subr.bf16.mxu0 %v2285_v11 }
 0x890   : > { %3544 = vmatpush3.bf16.msra.mxu0 %v2269_v7 }
 0x891   : > { %v2271_v17 = vpop.permute.xlu1 %2270  ;;  %v2287_v48 = vpop.permute.xlu0 %2286 }
 0x892   : > { %3545 = vmatprep.subr.bf16.mxu0 %v2287_v48 }
 0x894   : > { %3546 = vmatpush3.bf16.msra.mxu0 %v2271_v17 }
 0x8e7   : > { %v2273_v0 = vpop.permute.xlu1 %2272  ;;  %v2289_v19 = vpop.permute.xlu0 %2288 }
 0x8e8   : > { %3547 = vmatprep.subr.bf16.mxu0 %v2289_v19 }
 0x8e9   : > { %3548 = vmatpush3.bf16.msra.mxu0 %v2273_v0 }
 0x8ec   : > { %v2275_v27 = vpop.permute.xlu1 %2274  ;;  %v2291_v61 = vpop.permute.xlu0 %2290 }
 0x8ed   : > { %3549 = vmatprep.subr.bf16.mxu0 %v2291_v61 }
 0x8ee   : > { %3550 = vmatpush3.bf16.msra.mxu0 %v2275_v27 }
 0x8f0   : > { %v2277_v53 = vpop.permute.xlu1 %2276  ;;  %v2293_v8 = vpop.permute.xlu0 %2292 }
 0x8f1   : > { %3551 = vmatprep.subr.bf16.mxu0 %v2293_v8 }
 0x8f2   : > { %3552 = vmatpush3.bf16.msra.mxu0 %v2277_v53 }
 0x8f4   : > { %v2279_v49 = vpop.permute.xlu1 %2278  ;;  %v2295_v38 = vpop.permute.xlu0 %2294 }
 0x8f5   : > { %3553 = vmatprep.subr.bf16.mxu0 %v2295_v38 }
 0x8f6   : > { %3554 = vmatpush3.bf16.msra.mxu0 %v2279_v49 }
 0x8f8   : > { %v2281_v51 = vpop.permute.xlu1 %2280  ;;  %v2297_v56 = vpop.permute.xlu0 %2296 }
 0x8f9   : > { %3555 = vmatprep.subr.bf16.mxu0 %v2297_v56 }
 0x8fa   : > { %3556 = vmatpush3.bf16.msra.mxu0 %v2281_v51 }
 0x8fc   : > { %v2283_v59 = vpop.permute.xlu1 %2282  ;;  %v2299_v9 = vpop.permute.xlu0 %2298 }
 0x8fd   : > { %3557 = vmatprep.subr.bf16.mxu0 %v2299_v9 }
 0x8fe   : > { %3558 = vmatpush3.bf16.msra.mxu0 %v2283_v59 }
 0x900   : > { %v2301_v22 = vpop.permute.xlu0 %2300  ;;  %v2303_v62 = vpop.permute.xlu1 %2302 }
 0x901   : > { %3618 = vmatprep.subr.bf16.mxu1 %v2301_v22  ;;  %2361 = vmatmul.mubr.bf16.vlgmr.msra.gmra.mrb[24].mxu0 %v3978_v6  ;;  %v635_v6 = vld [vmem:[%s5514_s10] sm:$0xff] }
 0x902   : > { %3619 = vmatpush3.bf16.msra.mxu1 %v2301_v22  ;;  %2368 = vmatprep.mubr.bf16.mxu0 %v3981_v40  ;;  %v2596_v22 = vrot.slane %v635_v6, %v5601_v20 }
 0x903   : > { %3620 = vmatprep.subr.bf16.mxu1 %v2303_v62 }
 0x906   : > { %3621 = vmatpush3.bf16.msra.mxu1 %v2303_v62  ;;  %v2560_v62 = vrot.slane %v635_v6, %v5602_v50 }
 0x907   : > { %3659 = vmatprep.subr.msk.bf16.mxu1 %vm1212_vm9, %v5053_v39  ;;  %v3988_v39 = vld [vmem:[%s5519_s15 + $0x10] sm:$0xff]  }
 0x909   : > { %2369 = vmatmul.mubr.bf16.gmra.mrb[28].mxu0 %v3983_v24 }
 0x90a   : > { %3623 = vmatpush3.bf16.msra.mxu1 %v5059_v47  ;;  %v3989_v47 = vld [vmem:[%s5519_s15 + $0x18] sm:$0xff]  }
 0x90b   : > { %3628 = vmatprep.subr.bf16.mxu1 %v3986_v45 }
 0x90d   : > { %3625 = vmatmul.mubr.msk.bf16.vlgmr.msra.gmra.mrb[12].mxu1 %vm1205_vm10, %v3985_v10 }
 0x90e   : > { %3629 = vmatpush3.bf16.msra.mxu1 %v3986_v45 }
 0x90f   : > { %3630 = vmatprep.subr.bf16.mxu1 %v3987_v55 }
 0x912   : > { %3631 = vmatpush3.bf16.msra.mxu1 %v3987_v55 }
 0x913   : > { %3632 = vmatprep.subr.bf16.mxu1 %v3988_v39 }
 0x916   : > { %3633 = vmatpush3.bf16.msra.mxu1 %v3988_v39 }
 0x917   : > { %3634 = vmatprep.subr.bf16.mxu1 %v3989_v47 }
 0x91a   : > { %3635 = vmatpush3.bf16.msra.mxu1 %v3989_v47  ;;  %v2608_v47 = vrot.slane %v635_v6, %v5604_v28  ;;  %v2584_v28 = vrot.slane %v635_v6, %v5607_v32 }
 0x9d4   : > { %v3559_v25 = vpop.f32.mrb[24].mxu0 }
 0x9d5   : > { %v3560_v23 = vpop.f32.mrb[25].mxu0 }
 0x9d6   : > { %v3561_v16 = vadd.f32 %v3560_v23, %v3559_v25  ;;  %v3562_v31 = vpop.f32.mrb[26].mxu0  ;;  %v2572_v23 = vrot.slane %v635_v6, %v5605_v52 }
 0x9d7   : > { %v3563_v18 = vpop.f32.mrb[27].mxu0 }
 0x9d8   : > { %v3564_v57 = vadd.f32 %v3563_v18, %v3562_v31  ;;  %v3466_v31 = vld [vmem:[%s5514_s10 + $0x8] ss:$0 sm:$0xff]  ;;  %v2548_v18 = vrot.slane %v635_v6, %v5608_v21 }
 0x9dc   : > { %v3565_v2 = vpop.f32.mrb[28].mxu0 }
 0x9dd   : > { %v3566_v46 = vpop.f32.mrb[29].mxu0 }
 0x9de   : > { %v3567_v26 = vadd.f32 %v3566_v46, %v3565_v2  ;;  %v3568_v54 = vpop.f32.mrb[30].mxu0 }
 0x9df   : > { %v3569_v29 = vpop.f32.mrb[31].mxu0 }
 0x9e0   : > { %v3626_v58 = vpop.f32.mrb[12].mxu1  ;;  %v3570_v30 = vadd.f32 %v3569_v29, %v3568_v54 }
 0x9e1   : > { %v2420_v37 = vadd.f32 %v3626_v58, %v3567_v26  ;;  %v2411_v42 = vpop.f32.mrb[13].mxu1 }
 0x9e2   : > { %v2412_v7 = vadd.f32 %v3561_v16, %v2411_v42  ;;  %v3627_v11 = vpop.f32.mrb[14].mxu1  ;;  %v2620_v16 = vrot.slane %v635_v6, %v5606_v60 }
 0x9e3   : > { %v2423_v17 = vadd.f32 %v3627_v11, %v3570_v30  ;;  %v2414_v48 = vpop.f32.mrb[15].mxu1  ;;  %v2428_v19 = vmax.f32 %v2420_v37, 0.0 }
 0x9e4   : > { %v2415_v0 = vadd.f32 %v3564_v57, %v2414_v48  ;;  %v2426_v61 = vmax.f32 %v2412_v7, 0.0 }
 0x9e5   : > { %v2429_v27 = vmax.f32 %v2423_v17, 0.0 }
 0x9e6   : > { %v2427_v53 = vmax.f32 %v2415_v0, 0.0 }
 0x9e7   : > { %v2431_v8 = vpack.c.bf16 %v2429_v27, %v2428_v19 }
 0x9e8   : > { %v2430_v49 = vpack.c.bf16 %v2427_v53, %v2426_v61 }
 0x9ea   : > { %3636 = vmatprep.mubr.msk.bf16.mxu1 %vm2464_vm12, %v2430_v49 }
 0x9eb   : > { %3637 = vmatmul.mubr.msk.bf16.vlgmr.msra.gmra.mrb[16].mxu1 %vm2464_vm12, %v2431_v8 }
 0xabe   : > { %v3638_v38 = vpop.f32.mrb[16].mxu1 }
 0xabf   : > { %v2505_v51 = vpop.f32.mrb[17].mxu1 }
 0xac0   : > { %2521 = vrot.lane.b32.xlu0 %v2505_v51, %s5619_s9  ;;  %v3639_v56 = vpop.f32.mrb[18].mxu1 }
 0xac1   : > { %v3869_v59 = vpack.i.bf16 %v3639_v56, %v3638_v38  ;;  %v2508_v9 = vpop.f32.mrb[19].mxu1 }
 0xac2   : > { %v3864_v40 = vpack.i.bf16 %v2508_v9, %v2505_v51  ;;  %2524 = vrot.lane.b32.xlu1 %v2508_v9, %s5619_s9 }
 0xac4   : > { %2527 = vrot.lane.b32.xlu0 %v3638_v38, %s5619_s9 }
 0xac6   : > { %2530 = vrot.lane.b32.xlu1 %v3639_v56, %s5619_s9 }
 0xac8   : > { %2598 = vrot.lane.b32.xlu0 %v2596_v22, %s5603_s21 }
 0xaca   : > { %2562 = vrot.lane.b32.xlu1 %v2560_v62, %s4032_s2  ;;  %s5620_s2 = smov 15  }
 0xb32   : > { %v2522_v24 = vpop.permute.xlu0 %2521 }
 0xb33   : > { %v2523_v10 = vsel %vm2520_vm13, %v2522_v24, %v2505_v51 }
 0xb34   : > { %2533 = vrot.lane.b32.xlu0 %v2523_v10, %s5619_s9  ;;  %v2525_v45 = vpop.permute.xlu1 %2524 }
 0xb35   : > { %v2526_v55 = vsel %vm2520_vm13, %v2525_v45, %v2508_v9 }
 0xb36   : > { %v2528_v39 = vpop.permute.xlu0 %2527  ;;  %2535 = vrot.lane.b32.xlu1 %v2526_v55, %s5619_s9 }
 0xb37   : > { %v2529_v20 = vsel %vm2520_vm13, %v2528_v39, %v3638_v38 }
 0xb38   : > { %2537 = vrot.lane.b32.xlu0 %v2529_v20, %s5619_s9  ;;  %v2531_v50 = vpop.permute.xlu1 %2530 }
 0xb39   : > { %v2532_v25 = vsel %vm2520_vm13, %v2531_v50, %v3639_v56 }
 0xb3a   : > { %2539 = vrot.lane.b32.xlu1 %v2532_v25, %s5619_s9  ;;  %v2599_v52 = vpop.permute.xlu0 %2598 }
 0xb3c   : > { %2610 = vrot.lane.b32.xlu0 %v2608_v47, %s4033_s3  ;;  %v2563_v60 = vpop.permute.xlu1 %2562  ;;  %s4038_s3 = smov 10  }
 0xb3e   : > { %2574 = vrot.lane.b32.xlu1 %v2572_v23, %s4034_s24  ;;  %s5621_s24 = smov 8  }
 0xb40   : > { %2622 = vrot.lane.b32.xlu0 %v2620_v16, %s4035_s1  ;;  %s4040_s1 = smov 124  }
 0xb42   : > { %2634 = vrot.lane.b32.xlu1 %v3466_v31, %s4036_s23  ;;  %s5626_s23 = smov 112  }
 0xb44   : > { %2586 = vrot.lane.b32.xlu0 %v2584_v28, %s5620_s2 }
 0xb46   : > { %2550 = vrot.lane.b32.xlu1 %v2548_v18, %s4037_s4 }
 0xb48   : > { %3865 = vrot.lane.b32.xlu0 %v3864_v40, %s4037_s4 }
 0xb4a   : > { %3870 = vrot.lane.b32.xlu1 %v3869_v59, %s4037_s4 }
 0xba6   : > { %v2534_v57 = vpop.permute.xlu0 %2533 }
 0xba7   : > { %v2541_v2 = vsel %vm2520_vm13, %v2534_v57, %v2505_v51 }
 0xba8   : > { %v2536_v46 = vpop.permute.xlu1 %2535  ;;  %v2601_v54 = vmul.f32 %v2599_v52, %v2541_v2  ;;  %v2565_v29 = vmul.f32 %v2563_v60, %v2541_v2 }
 0xba9   : > { %v2542_v32 = vsel %vm2520_vm13, %v2536_v46, %v2508_v9 }
 0xbaa   : > { %v2538_v26 = vpop.permute.xlu0 %2537  ;;  %v2602_v21 = vmul.f32 %v2599_v52, %v2542_v32  ;;  %v2566_v58 = vmul.f32 %v2563_v60, %v2542_v32 }
 0xbab   : > { %v2543_v30 = vsel %vm2520_vm13, %v2538_v26, %v3638_v38 }
 0xbac   : > { %v2540_v37 = vpop.permute.xlu1 %2539  ;;  %v3884_v42 = vpack.i.bf16 %v2602_v21, %v2601_v54  ;;  %v3894_v7 = vpack.i.bf16 %v2566_v58, %v2565_v29  ;;  %v2603_v48 = vmul.f32 %v2599_v52, %v2543_v30  ;;  %v2567_v19 = vmul.f32 %v2563_v60, %v2543_v30 }
 0xbad   : > { %v2544_v11 = vsel %vm2520_vm13, %v2540_v37, %v3639_v56 }
 0xbae   : > { %v2611_v17 = vpop.permute.xlu0 %2610  ;;  %v2604_v0 = vmul.f32 %v2599_v52, %v2544_v11  ;;  %v2568_v27 = vmul.f32 %v2563_v60, %v2544_v11 }
 0xbaf   : > { %v2613_v61 = vmul.f32 %v2611_v17, %v2541_v2  ;;  %v2614_v53 = vmul.f32 %v2611_v17, %v2542_v32  ;;  %v2615_v8 = vmul.f32 %v2611_v17, %v2543_v30  ;;  %v2616_v49 = vmul.f32 %v2611_v17, %v2544_v11 }
 0xbb0   : > { %v2575_v51 = vpop.permute.xlu1 %2574  ;;  %v3874_v59 = vpack.i.bf16 %v2604_v0, %v2603_v48  ;;  %v3879_v9 = vpack.i.bf16 %v2568_v27, %v2567_v19  ;;  %v640_v27 = vld [vmem:[%s5517_s13] sm:$0xff] }
 0xbb1   : > { %v2577_v6 = vmul.f32 %v2575_v51, %v2541_v2  ;;  %v2578_v40 = vmul.f32 %v2575_v51, %v2542_v32  ;;  %v2579_v38 = vmul.f32 %v2575_v51, %v2543_v30  ;;  %v2580_v22 = vmul.f32 %v2575_v51, %v2544_v11 }
 0xbb2   : > { %v2623_v62 = vpop.permute.xlu0 %2622  ;;  %3875 = vrot.lane.b32.xlu0 %v3874_v59, %s4038_s3  ;;  %3880 = vrot.lane.b32.xlu1 %v3879_v9, %s5609_s30  ;;  %v3889_v56 = vpack.i.bf16 %v2616_v49, %v2615_v8  ;;  %v3904_v24 = vpack.i.bf16 %v2614_v53, %v2613_v61 }
 0xbb3   : > { %v2625_v10 = vmul.f32 %v2623_v62, %v2541_v2  ;;  %v2626_v45 = vmul.f32 %v2623_v62, %v2542_v32  ;;  %v2627_v55 = vmul.f32 %v2623_v62, %v2543_v30  ;;  %v2628_v39 = vmul.f32 %v2623_v62, %v2544_v11 }
 0xbb4   : > { %v2635_v20 = vpop.permute.xlu1 %2634  ;;  %v3899_v50 = vpack.i.bf16 %v2580_v22, %v2579_v38  ;;  %v3909_v47 = vpack.i.bf16 %v2578_v40, %v2577_v6 }
 0xbb5   : > { %v2637_v25 = vmul.f32 %v2635_v20, %v2541_v2  ;;  %v2638_v23 = vmul.f32 %v2635_v20, %v2542_v32  ;;  %v2639_v16 = vmul.f32 %v2635_v20, %v2543_v30  ;;  %v2640_v31 = vmul.f32 %v2635_v20, %v2544_v11 }
 0xbb6   : > { %v2587_v28 = vpop.permute.xlu0 %2586  ;;  %3885 = vrot.lane.b32.xlu0 %v3884_v42, %s4038_s3  ;;  %3895 = vrot.lane.b32.xlu1 %v3894_v7, %s5609_s30  ;;  %v3914_v18 = vpack.i.bf16 %v2626_v45, %v2625_v10  ;;  %v3924_v52 = vpack.i.bf16 %v2628_v39, %v2627_v55 }
 0xbb7   : > { %v2589_v60 = vmul.f32 %v2587_v28, %v2541_v2  ;;  %v2590_v57 = vmul.f32 %v2587_v28, %v2542_v32  ;;  %v2591_v46 = vmul.f32 %v2587_v28, %v2543_v30  ;;  %v2592_v26 = vmul.f32 %v2587_v28, %v2544_v11 }
 0xbb8   : > { %v2551_v54 = vpop.permute.xlu1 %2550  ;;  %v3919_v21 = vpack.i.bf16 %v2638_v23, %v2637_v25  ;;  %v3934_v29 = vpack.i.bf16 %v2640_v31, %v2639_v16 }
 0xbb9   : > { %v2553_v58 = vmul.f32 %v2551_v54, %v2541_v2  ;;  %v2554_v37 = vmul.f32 %v2551_v54, %v2542_v32  ;;  %v2555_v17 = vmul.f32 %v2551_v54, %v2543_v30  ;;  %v2556_v48 = vmul.f32 %v2551_v54, %v2544_v11 }
 0xbba   : > { %3890 = vrot.lane.b32.xlu0 %v3889_v56, %s5621_s24  ;;  %3900 = vrot.lane.b32.xlu1 %v3899_v50, %s5613_s28  ;;  %v3929_v42 = vpack.i.bf16 %v2590_v57, %v2589_v60  ;;  %v3939_v0 = vpack.i.bf16 %v2592_v26, %v2591_v46  ;;  %v3866_v2 = vpop.permute.xlu0 %3865 }
 0xbbb   : > { %v2774_v7 = vpack.c.bf16 %v2556_v48, %v2555_v17  ;;  %v2773_v19 = vpack.c.bf16 %v2554_v37, %v2553_v58  ;;  %v3868_v32 = vunpack.i.h.bf16 %v3866_v2  ;;  %v3867_v30 = vunpack.i.l.bf16 %v3866_v2 }
 0xbbc   : > { %v3871_v11 = vpop.permute.xlu1 %3870 }
 0xbbd   : > { %v2781_v61 = vpack.c.bf16 %v3868_v32, %v3867_v30  ;;  %v3873_v53 = vunpack.i.h.bf16 %v3871_v11  ;;  %v3872_v8 = vunpack.i.l.bf16 %v3871_v11 }
 0xbbe   : > { %3905 = vrot.lane.b32.xlu0 %v3904_v24, %s5621_s24  ;;  %3910 = vrot.lane.b32.xlu1 %v3909_v47, %s5613_s28  ;;  %s4041_s28 = smov 117   ;;  %v4042_v47 = vmov 0.0  }
 0xbbf   : > { %v2782_v49 = vpack.c.bf16 %v3873_v53, %v3872_v8  ;;  %3640 = vmatprep.subr.bf16.mxu1 %v4042_v47  ;;  %3646 = vmatprep.mubr.msk.bf16.mxu1 %vm4043_vm14, %v4042_v47 }
 0xbc2   : > { %3915 = vrot.lane.b32.xlu0 %v3914_v18, %s5622_s26  ;;  %3920 = vrot.lane.b32.xlu1 %v3919_v21, %s4039_s25 }
 0xbc6   : > { %3930 = vrot.lane.b32.xlu0 %v3929_v42, %s4040_s1  ;;  %3925 = vrot.lane.b32.xlu1 %v3924_v52, %s5622_s26  ;;  %s622_s26 = scalar_lea.vmem %s5522_s18, %s4152_s20 }
 0xbca   : > { %3935 = vrot.lane.b32.xlu0 %v3934_v29, %s4039_s25  ;;  %3940 = vrot.lane.b32.xlu1 %v3939_v0, %s4040_s1  ;;  %s5624_s25 = smov 17   ;;  %s5625_s1 = smov 113  }
 0xbce   : > { %2770 = vrot.lane.b32.xlu0 %v640_v27, %s4037_s4  ;;  %2839 = vrot.lane.b32.xlu1 %v2781_v61, %s4041_s28 }
 0xbd2   : > { %2825 = vrot.lane.b32.xlu0 %v2774_v7, %s4041_s28  ;;  %2841 = vrot.lane.b32.xlu1 %v2782_v49, %s4041_s28  ;;  %v2792_v49 = vld [vmem:[%s5623_s5] sm:$0xff] }
 0xbd6   : > { %2823 = vrot.lane.b32.xlu0 %v2773_v19, %s4041_s28 }
 0xc24   : > { %v3876_v51 = vpop.permute.xlu0 %3875  ;;  %v3881_v59 = vpop.permute.xlu1 %3880 }
 0xc25   : > { %v3878_v9 = vunpack.i.h.bf16 %v3876_v51  ;;  %v3877_v6 = vunpack.i.l.bf16 %v3876_v51  ;;  %v3883_v40 = vunpack.i.h.bf16 %v3881_v59  ;;  %v3882_v38 = vunpack.i.l.bf16 %v3881_v59 }
 0xc26   : > { %v3468_v51 = vcombine.high %v2792_v49, %v2792_v49 }
 0xc27   : > { %v2784_v22 = vpack.c.bf16 %v3878_v9, %v3877_v6  ;;  %v2776_v62 = vpack.c.bf16 %v3883_v40, %v3882_v38 }
 0xc28   : > { %v3886_v56 = vpop.permute.xlu0 %3885  ;;  %v3896_v24 = vpop.permute.xlu1 %3895  ;;  %2917 = vmatprep.mubr.bf16.mxu0 %v3468_v51 }
 0xc29   : > { %v3888_v10 = vunpack.i.h.bf16 %v3886_v56  ;;  %v3887_v45 = vunpack.i.l.bf16 %v3886_v56  ;;  %v3898_v55 = vunpack.i.h.bf16 %v3896_v24  ;;  %v3897_v39 = vunpack.i.l.bf16 %v3896_v24  ;;  %2829 = vrot.lane.b32.xlu0 %v2776_v62, %s4041_s28  ;;  %2845 = vrot.lane.b32.xlu1 %v2784_v22, %s4041_s28 }
 0xc2b   : > { %v2783_v20 = vpack.c.bf16 %v3888_v10, %v3887_v45  ;;  %v2775_v50 = vpack.c.bf16 %v3898_v55, %v3897_v39 }
 0xc2c   : > { %v3891_v25 = vpop.permute.xlu0 %3890  ;;  %v3901_v23 = vpop.permute.xlu1 %3900 }
 0xc2d   : > { %v3893_v16 = vunpack.i.h.bf16 %v3891_v25  ;;  %v3892_v31 = vunpack.i.l.bf16 %v3891_v25  ;;  %v3903_v28 = vunpack.i.h.bf16 %v3901_v23  ;;  %v3902_v18 = vunpack.i.l.bf16 %v3901_v23  ;;  %2827 = vrot.lane.b32.xlu0 %v2775_v50, %s4041_s28  ;;  %2843 = vrot.lane.b32.xlu1 %v2783_v20, %s4041_s28 }
 0xc2f   : > { %v2786_v52 = vpack.c.bf16 %v3893_v16, %v3892_v31  ;;  %v2778_v60 = vpack.c.bf16 %v3903_v28, %v3902_v18 }
 0xc30   : > { %v3906_v57 = vpop.permute.xlu0 %3905  ;;  %v3911_v46 = vpop.permute.xlu1 %3910 }
 0xc31   : > { %v3908_v26 = vunpack.i.h.bf16 %v3906_v57  ;;  %v3907_v54 = vunpack.i.l.bf16 %v3906_v57  ;;  %v3913_v21 = vunpack.i.h.bf16 %v3911_v46  ;;  %v3912_v29 = vunpack.i.l.bf16 %v3911_v46  ;;  %2833 = vrot.lane.b32.xlu0 %v2778_v60, %s4041_s28  ;;  %2849 = vrot.lane.b32.xlu1 %v2786_v52, %s4041_s28 }
 0xc33   : > { %v2785_v58 = vpack.c.bf16 %v3908_v26, %v3907_v54  ;;  %v2777_v37 = vpack.c.bf16 %v3913_v21, %v3912_v29 }
 0xc34   : > { %v3916_v17 = vpop.permute.xlu0 %3915  ;;  %v3921_v48 = vpop.permute.xlu1 %3920 }
 0xc35   : > { %v3918_v42 = vunpack.i.h.bf16 %v3916_v17  ;;  %v3917_v0 = vunpack.i.l.bf16 %v3916_v17  ;;  %v3923_v7 = vunpack.i.h.bf16 %v3921_v48  ;;  %v3922_v19 = vunpack.i.l.bf16 %v3921_v48  ;;  %2831 = vrot.lane.b32.xlu0 %v2777_v37, %s4041_s28  ;;  %2847 = vrot.lane.b32.xlu1 %v2785_v58, %s4041_s28 }
 0xc36   : > { %v3467_v37 = vcombine.low %v2792_v49, %v2792_v49 }
 0xc37   : > { %v2787_v2 = vpack.c.bf16 %v3918_v42, %v3917_v0  ;;  %v2789_v32 = vpack.c.bf16 %v3923_v7, %v3922_v19  ;;  %v3992_v42 = vld [vmem:[%s5623_s5 + $0x8] ss:$0 sps:$4 sm:$0xff]  }
 0xc38   : > { %v3931_v30 = vpop.permute.xlu0 %3930  ;;  %v3926_v11 = vpop.permute.xlu1 %3925  ;;  %v3993_v0 = vld [vmem:[%s5520_s16] ss:$8 sps:$4 sm:$0xff]  }
 0xc39   : > { %v3933_v27 = vunpack.i.h.bf16 %v3931_v30  ;;  %v3932_v61 = vunpack.i.l.bf16 %v3931_v30  ;;  %v3928_v53 = vunpack.i.h.bf16 %v3926_v11  ;;  %v3927_v8 = vunpack.i.l.bf16 %v3926_v11  ;;  %2855 = vrot.lane.b32.xlu0 %v2789_v32, %s4041_s28  ;;  %2851 = vrot.lane.b32.xlu1 %v2787_v2, %s4041_s28 }
 0xc3b   : > { %v2779_v59 = vpack.c.bf16 %v3933_v27, %v3932_v61  ;;  %v2788_v9 = vpack.c.bf16 %v3928_v53, %v3927_v8 }
 0xc3c   : > { %v3936_v6 = vpop.permute.xlu0 %3935  ;;  %v3941_v40 = vpop.permute.xlu1 %3940 }
 0xc3d   : > { %v3938_v38 = vunpack.i.h.bf16 %v3936_v6  ;;  %v3937_v22 = vunpack.i.l.bf16 %v3936_v6  ;;  %v3943_v62 = vunpack.i.h.bf16 %v3941_v40  ;;  %v3942_v56 = vunpack.i.l.bf16 %v3941_v40  ;;  %2853 = vrot.lane.b32.xlu0 %v2788_v9, %s4041_s28  ;;  %2835 = vrot.lane.b32.xlu1 %v2779_v59, %s4041_s28 }
 0xc3f   : > { %v2790_v24 = vpack.c.bf16 %v3938_v38, %v3937_v22  ;;  %v2780_v10 = vpack.c.bf16 %v3943_v62, %v3942_v56 }
 0xc40   : > { %v2771_v45 = vpop.permute.xlu0 %2770  ;;  %v2840_v55 = vpop.permute.xlu1 %2839 }
 0xc41   : > { %3582 = vmatprep.subr.bf16.mxu0 %v2840_v55  ;;  %2837 = vrot.lane.b32.xlu0 %v2780_v10, %s4041_s28  ;;  %v2791_v39 = vpack.c.bf16 %v2771_v45, %v2771_v45 }
 0xc42   : > { %2857 = vrot.lane.b32.xlu1 %v2790_v24, %s4041_s28 }
 0xc44   : > { %v2826_v20 = vpop.permute.xlu0 %2825  ;;  %v2842_v25 = vpop.permute.xlu1 %2841 }
 0xc46   : > { %2859 = vrot.lane.b32.xlu1 %v2791_v39, %s4041_s28 }
 0xc48   : > { %v2824_v50 = vpop.permute.xlu0 %2823 }
 0xc49   : > { %3583 = vmatpush3.bf16.msra.mxu0 %v2824_v50 }
 0xc4a   : > { %3584 = vmatprep.subr.bf16.mxu0 %v2842_v25 }
 0xc4d   : > { %3585 = vmatpush3.bf16.msra.mxu0 %v2826_v20 }
 0xc9b   : > { %v2830_v23 = vpop.permute.xlu0 %2829  ;;  %v2846_v16 = vpop.permute.xlu1 %2845 }
 0xc9f   : > { %v2828_v31 = vpop.permute.xlu0 %2827  ;;  %v2844_v28 = vpop.permute.xlu1 %2843 }
 0xca0   : > { %3586 = vmatprep.subr.bf16.mxu0 %v2844_v28 }
 0xca1   : > { %3587 = vmatpush3.bf16.msra.mxu0 %v2828_v31 }
 0xca2   : > { %3588 = vmatprep.subr.bf16.mxu0 %v2846_v16 }
 0xca3   : > { %v2834_v18 = vpop.permute.xlu0 %2833  ;;  %v2850_v52 = vpop.permute.xlu1 %2849 }
 0xca5   : > { %3589 = vmatpush3.bf16.msra.mxu0 %v2830_v23 }
 0xca7   : > { %v2832_v60 = vpop.permute.xlu0 %2831  ;;  %v2848_v57 = vpop.permute.xlu1 %2847 }
 0xca8   : > { %3590 = vmatprep.subr.bf16.mxu0 %v2848_v57 }
 0xca9   : > { %3591 = vmatpush3.bf16.msra.mxu0 %v2832_v60 }
 0xcaa   : > { %3592 = vmatprep.subr.bf16.mxu0 %v2850_v52 }
 0xcab   : > { %v2856_v46 = vpop.permute.xlu0 %2855  ;;  %v2852_v26 = vpop.permute.xlu1 %2851 }
 0xcac   : > { %3641 = vmatpush3.bf16.msra.mxu1 %v2856_v46 }
 0xcad   : > { %3593 = vmatpush3.bf16.msra.mxu0 %v2834_v18  ;;  %3642 = vmatprep.subr.bf16.mxu1 %v4042_v47 }
 0xcae   : > { %3594 = vmatprep.subr.bf16.mxu0 %v2852_v26 }
 0xcaf   : > { %v2854_v54 = vpop.permute.xlu0 %2853  ;;  %v2836_v21 = vpop.permute.xlu1 %2835 }
 0xcb1   : > { %3595 = vmatpush3.bf16.msra.mxu0 %v2836_v21 }
 0xcb2   : > { %3596 = vmatprep.subr.bf16.mxu0 %v2854_v54 }
 0xcb3   : > { %v2838_v29 = vpop.permute.xlu0 %2837 }
 0xcb4   : > { %v2858_v58 = vpop.permute.xlu1 %2857 }
 0xcb5   : > { %3643 = vmatpush3.bf16.msra.mxu1 %v2858_v58  ;;  %3597 = vmatpush3.bf16.msra.mxu0 %v2838_v29 }
 0xcb6   : > { %3644 = vmatprep.subr.bf16.mxu1 %v4042_v47  ;;  %v3995_v47 = vld [vmem:[%s5520_s16 + $0x4] ss:$8 sps:$4 sm:$0xff]  }
 0xcb8   : > { %v2860_v17 = vpop.permute.xlu1 %2859  ;;  %2918 = vmatmul.mubr.bf16.vlgmr.msra.gmra.mrb[32].mxu0 %v3467_v37 }
 0xcb9   : > { %v2883_v48 = vsel %vm1212_vm9, %v2860_v17, 0  ;;  %3255 = vmatprep.mubr.bf16.mxu0 %v5599_v41 }
 0xcba   : > { %3645 = vmatpush3.bf16.msra.mxu1 %v2883_v48 }
 0xcbb   : > { %2983 = vmatprep.subr.bf16.mxu1 %v3995_v47 }
 0xcbd   : > { %3647 = vmatmul.mubr.msk.bf16.vlgmr.msra.gmra.mrb[20].mxu1 %vm1205_vm10, %v3992_v42 }
 0xcbe   : > { %3015 = vmatprep.mubr.bf16.mxu1 %v5599_v41  ;;  %2984 = vmatpush1.bf16.msra.mxu1 %v3993_v0 }
 0xd8b   : > { %v3598_v7 = vpop.f32.mrb[32].mxu0 }
 0xd8c   : > { %v3599_v19 = vpop.f32.mrb[33].mxu0 }
 0xd8d   : > { %v3600_v2 = vadd.f32 %v3599_v19, %v3598_v7  ;;  %v3601_v32 = vpop.f32.mrb[34].mxu0 }
 0xd8e   : > { %v3602_v30 = vpop.f32.mrb[35].mxu0 }
 0xd90   : > { %v2959_v11 = vpop.f32.mrb[20].mxu1 }
 0xd91   : > { %v2960_v27 = vadd.f32 %v3600_v2, %v2959_v11  ;;  %v3648_v61 = vpop.f32.mrb[21].mxu1 }
 0xd92   : > { %v2962_v53 = vpop.f32.mrb[22].mxu1 }
 0xd93   : > { %v2965_v8 = vmax.f32 %v2960_v27, 0.0  ;;  %v3649_v49 = vpop.f32.mrb[23].mxu1 }
 0xd95   : > { %v2966_v51 = vpack.c.bf16 %v2965_v8, %v2965_v8 }
 0xd97   : > { %3473 = vmatmul.mubr.msk.bf16.vlgmr.msra.gmra.mrb[24].mxu1 %vm2979_vm15, %v2966_v51 }
 0xd98   : > { %3134 = vmatprep.mubr.bf16.mxu1 %v5599_v41 }
 0xe6a   : > { %v5296_v59 = vpop.f32.mrb[24].mxu1 }
 0xe6b   : > { %3274 = vst [vmem:[%s622_s26] sm:$0xff] %v5296_v59  ;;  %3024 = vrot.lane.b32.xlu0 %v5296_v59, %s5624_s25  ;;  %v5301_v9 = vpop.f32.mrb[25].mxu1 }
 0xe6c   : > { %3275 = vst [vmem:[%s622_s26 + $0x8] sm:$0xff] %v5301_v9  ;;  %3026 = vrot.lane.b32.xlu1 %v5301_v9, %s5624_s25  ;;  %v3021_v6 = vpop.f32.mrb[26].mxu1 }
 0xe6d   : > { %v3022_v41 = vpop.f32.mrb[27].mxu1 }
 0xe6f   : > { %3032 = vrot.lane.b32.xlu0 %v5296_v59, %s5619_s9 }
 0xe70   : > { %3034 = vrot.lane.b32.xlu1 %v5301_v9, %s5619_s9 }
 0xe73   : > { %3040 = vrot.lane.b32.xlu0 %v5296_v59, %s5620_s2 }
 0xe74   : > { %3042 = vrot.lane.b32.xlu1 %v5301_v9, %s5620_s2 }
 0xe77   : > { %3048 = vrot.lane.b32.xlu0 %v5296_v59, %s5603_s21 }
 0xe78   : > { %3050 = vrot.lane.b32.xlu1 %v5301_v9, %s5603_s21 }
 0xe7b   : > { %3056 = vrot.lane.b32.xlu0 %v5296_v59, %s5609_s30 }
 0xe7c   : > { %3058 = vrot.lane.b32.xlu1 %v5301_v9, %s5609_s30 }
 0xe7f   : > { %3064 = vrot.lane.b32.xlu0 %v5296_v59, %s5625_s1 }
 0xe80   : > { %3066 = vrot.lane.b32.xlu1 %v5301_v9, %s5625_s1 }
 0xe83   : > { %3072 = vrot.lane.b32.xlu0 %v5296_v59, %s5626_s23 }
 0xe84   : > { %3074 = vrot.lane.b32.xlu1 %v5301_v9, %s5626_s23 }
 0xe87   : > { %3080 = vrot.lane.b32.xlu0 %v5296_v59, %s5597_s22 }
 0xe88   : > { %3082 = vrot.lane.b32.xlu1 %v5301_v9, %s5597_s22 }
 0xedd   : > { %v3025_v40 = vpop.permute.xlu0 %3024 }
 0xede   : > { %v3027_v38 = vpop.permute.xlu1 %3026 }
 0xedf   : > { %v3028_v22 = vsel %vm649_vm1, %v3025_v40, %v3027_v38  ;;  %v3029_v62 = vsel %vm649_vm1, %v3027_v38, %v3025_v40 }
 0xee0   : > { %v3030_v55 = vmul.f32 %v3029_v62, %v4223_v14  ;;  %v3031_v39 = vmul.f32 %v3028_v22, %v4215_v12 }
 0xee1   : > { %v3033_v56 = vpop.permute.xlu0 %3032 }
 0xee2   : > { %v3035_v24 = vpop.permute.xlu1 %3034 }
 0xee3   : > { %v3036_v10 = vsel %vm666_vm0, %v3033_v56, %v3035_v24  ;;  %v3037_v45 = vsel %vm666_vm0, %v3035_v24, %v3033_v56 }
 0xee4   : > { %v3038_v20 = vmul.f32 %v3037_v45, %v4227_v15  ;;  %v3039_v50 = vmul.f32 %v3036_v10, %v4219_v13  ;;  %v5385_v45 = vld [vmem:[%s5512_s8 + $0x10] ss:$0 sm:$0xff] }
 0xee5   : > { %v3041_v25 = vpop.permute.xlu0 %3040 }
 0xee6   : > { %v3088_v23 = vpack.c.bf16 %v3038_v20, %v3030_v55  ;;  %v3043_v16 = vpop.permute.xlu1 %3042  ;;  %v3089_v31 = vpack.c.bf16 %v3039_v50, %v3031_v39  ;;  %v5391_v39 = vld [vmem:[%s5512_s8 + $0x18] ss:$0 sm:$0xff]  ;;  %v5397_v50 = vld [vmem:[%s5515_s11] sm:$0xff] }
 0xee7   : > { %v3044_v28 = vsel %vm683_vm2, %v3041_v25, %v3043_v16  ;;  %v3045_v18 = vsel %vm683_vm2, %v3043_v16, %v3041_v25 }
 0xee8   : > { %3102 = vmatprep.subr.bf16.mxu1 %v3089_v31  ;;  %v3046_v26 = vmul.f32 %v3045_v18, %v4251_v33  ;;  %v3047_v54 = vmul.f32 %v3044_v28, %v4255_v34  ;;  %v3098_v31 = vld [vmem:[%s5510_s6] sm:$0xf] }
 0xee9   : > { %v3049_v52 = vpop.permute.xlu0 %3048  ;;  %3103 = vmatpush1.bf16.msra.mxu1 %v3088_v23  ;;  %v5403_v23 = vld [vmem:[%s5515_s11 + $0x8] sm:$0xff] }
 0xeea   : > { %v3051_v60 = vpop.permute.xlu1 %3050 }
 0xeeb   : > { %v3052_v57 = vsel %vm700_vm3, %v3049_v52, %v3051_v60  ;;  %v3053_v46 = vsel %vm700_vm3, %v3051_v60, %v3049_v52 }
 0xeec   : > { %v3054_v21 = vmul.f32 %v3053_v46, %v4259_v35  ;;  %v3055_v29 = vmul.f32 %v3052_v57, %v4263_v36 }
 0xeed   : > { %v3057_v58 = vpop.permute.xlu0 %3056 }
 0xeee   : > { %v3090_v37 = vpack.c.bf16 %v3054_v21, %v3046_v26  ;;  %v3059_v17 = vpop.permute.xlu1 %3058  ;;  %v3091_v48 = vpack.c.bf16 %v3055_v29, %v3047_v54 }
 0xeef   : > { %v3060_v42 = vsel %vm717_vm4, %v3057_v58, %v3059_v17  ;;  %v3061_v0 = vsel %vm717_vm4, %v3059_v17, %v3057_v58 }
 0xef0   : > { %v3062_v47 = vmul.f32 %v3060_v42, %v4276_v43  ;;  %v3063_v7 = vmul.f32 %v3061_v0, %v4280_v44  ;;  %3104 = vmatprep.subr.bf16.mxu1 %v3091_v48 }
 0xef1   : > { %v3065_v19 = vpop.permute.xlu0 %3064  ;;  %3105 = vmatpush1.bf16.msra.mxu1 %v3090_v37 }
 0xef2   : > { %v3092_v2 = vpack.c.bf16 %v3062_v47, %v5296_v59  ;;  %v3067_v32 = vpop.permute.xlu1 %3066  ;;  %v3093_v30 = vpack.c.bf16 %v3063_v7, %v5301_v9 }
 0xef3   : > { %v3068_v11 = vsel %vm734_vm5, %v3065_v19, %v3067_v32  ;;  %v3069_v27 = vsel %vm734_vm5, %v3067_v32, %v3065_v19 }
 0xef4   : > { %3106 = vmatprep.subr.bf16.mxu1 %v3093_v30  ;;  %v3070_v51 = vmul.f32 %v3068_v11, %v4301_v63  ;;  %v3071_v6 = vmul.f32 %v3069_v27, %v4305_v3 }
 0xef5   : > { %v3073_v61 = vpop.permute.xlu0 %3072  ;;  %3107 = vmatpush1.bf16.msra.mxu1 %v3092_v2 }
 0xef6   : > { %v3075_v53 = vpop.permute.xlu1 %3074 }
 0xef7   : > { %v3076_v8 = vsel %vm751_vm6, %v3073_v61, %v3075_v53  ;;  %v3077_v49 = vsel %vm751_vm6, %v3075_v53, %v3073_v61 }
 0xef8   : > { %v3078_v41 = vmul.f32 %v3076_v8, %v4310_v4  ;;  %v3079_v40 = vmul.f32 %v3077_v49, %v4314_v1 }
 0xef9   : > { %v3081_v38 = vpop.permute.xlu0 %3080 }
 0xefa   : > { %v3094_v22 = vpack.c.bf16 %v3078_v41, %v3070_v51  ;;  %v3083_v62 = vpop.permute.xlu1 %3082  ;;  %v3095_v56 = vpack.c.bf16 %v3079_v40, %v3071_v6 }
 0xefb   : > { %v3084_v24 = vsel %vm768_vm7, %v3081_v38, %v3083_v62  ;;  %v3085_v10 = vsel %vm768_vm7, %v3083_v62, %v3081_v38 }
 0xefc   : > { %v3086_v55 = vmul.f32 %v5385_v45, %v3084_v24  ;;  %v3087_v20 = vmul.f32 %v5391_v39, %v3085_v10  ;;  %3108 = vmatprep.subr.bf16.mxu1 %v3095_v56 }
 0xefd   : > { %3109 = vmatpush1.bf16.msra.mxu1 %v3094_v22 }
 0xefe   : > { %v3096_v25 = vpack.c.bf16 %v5397_v50, %v3086_v55  ;;  %v3097_v16 = vpack.c.bf16 %v5403_v23, %v3087_v20 }
 0xf00   : > { %3110 = vmatprep.subr.bf16.mxu1 %v3097_v16 }
 0xf01   : > { %3111 = vmatpush1.bf16.msra.mxu1 %v3096_v25 }
 0xf04   : > { %3474 = vmatmul.mubr.msk.bf16.vlgmr.msra.gmra.mrb[28].mxu1 %vm805_vm8, %v3098_v31 }
 0xfd7   : > { %v3136_v28 = vpop.f32.mrb[28].mxu1 }
 0xfd8   : > { %v5410_v18 = vmax.f32 %v3136_v28, 0.0  ;;  %v3138_v52 = vpop.f32.mrb[29].mxu1 }
 0xfd9   : > { %v3144_v60 = vmax.f32 %v3138_v52, 0.0  ;;  %v3140_v57 = vpop.f32.mrb[30].mxu1 }
 0xfda   : > { %3145 = vrot.lane.b32.xlu0 %v5410_v18, %s5624_s25  ;;  %v3141_v46 = vpop.f32.mrb[31].mxu1 }
 0xfdb   : > { %3147 = vrot.lane.b32.xlu1 %v3144_v60, %s5624_s25 }
 0xfde   : > { %3153 = vrot.lane.b32.xlu0 %v5410_v18, %s5619_s9 }
 0xfdf   : > { %3155 = vrot.lane.b32.xlu1 %v3144_v60, %s5619_s9  ;;  %s627_s9 = scalar_lea.vmem %s5523_s19, %s4152_s20 }
 0xfe2   : > { %3161 = vrot.lane.b32.xlu0 %v5410_v18, %s5620_s2 }
 0xfe3   : > { %3163 = vrot.lane.b32.xlu1 %v3144_v60, %s5620_s2 }
 0xfe6   : > { %3169 = vrot.lane.b32.xlu0 %v5410_v18, %s5603_s21 }
 0xfe7   : > { %3171 = vrot.lane.b32.xlu1 %v3144_v60, %s5603_s21 }
 0xfea   : > { %3177 = vrot.lane.b32.xlu0 %v5410_v18, %s5609_s30 }
 0xfeb   : > { %3179 = vrot.lane.b32.xlu1 %v3144_v60, %s5609_s30 }
 0xfee   : > { %3185 = vrot.lane.b32.xlu0 %v5410_v18, %s5625_s1 }
 0xfef   : > { %3187 = vrot.lane.b32.xlu1 %v3144_v60, %s5625_s1  ;;  %s617_s1 = scalar_lea.vmem %s5521_s17, %s4152_s20 }
 0xff2   : > { %3193 = vrot.lane.b32.xlu0 %v5410_v18, %s5626_s23 }
 0xff3   : > { %3195 = vrot.lane.b32.xlu1 %v3144_v60, %s5626_s23 }
 0xff6   : > { %3201 = vrot.lane.b32.xlu0 %v5410_v18, %s5597_s22 }
 0xff7   : > { %3203 = vrot.lane.b32.xlu1 %v3144_v60, %s5597_s22 }
0x104c   : > { %v3146_v26 = vpop.permute.xlu0 %3145 }
0x104d   : > { %v3148_v54 = vpop.permute.xlu1 %3147 }
0x104e   : > { %v3149_v21 = vsel %vm649_vm1, %v3146_v26, %v3148_v54  ;;  %v3150_v29 = vsel %vm649_vm1, %v3148_v54, %v3146_v26 }
0x104f   : > { %v3151_v42 = vmul.f32 %v3150_v29, %v4223_v14  ;;  %v3152_v0 = vmul.f32 %v3149_v21, %v4215_v12  ;;  %v3266_v29 = vmul.f32 0.8, %v5296_v59 }
0x1050   : > { %v3154_v58 = vpop.permute.xlu0 %3153 }
0x1051   : > { %v3156_v37 = vpop.permute.xlu1 %3155 }
0x1052   : > { %v3157_v17 = vsel %vm666_vm0, %v3154_v58, %v3156_v37  ;;  %v3158_v48 = vsel %vm666_vm0, %v3156_v37, %v3154_v58  ;;  %v3267_v37 = vmul.f32 0.8, %v5301_v9 }
0x1053   : > { %v3159_v47 = vmul.f32 %v3158_v48, %v4227_v15  ;;  %v3160_v7 = vmul.f32 %v3157_v17, %v4219_v13 }
0x1054   : > { %v3162_v19 = vpop.permute.xlu0 %3161 }
0x1055   : > { %v3209_v2 = vpack.c.bf16 %v3159_v47, %v3151_v42  ;;  %v3164_v32 = vpop.permute.xlu1 %3163  ;;  %v3210_v30 = vpack.c.bf16 %v3160_v7, %v3152_v0 }
0x1056   : > { %v3165_v11 = vsel %vm683_vm2, %v3162_v19, %v3164_v32  ;;  %v3166_v27 = vsel %vm683_vm2, %v3164_v32, %v3162_v19 }
0x1057   : > { %3223 = vmatprep.subr.bf16.mxu0 %v3210_v30  ;;  %v3167_v15 = vmul.f32 %v3166_v27, %v4251_v33  ;;  %v3168_v53 = vmul.f32 %v3165_v11, %v4255_v34 }
0x1058   : > { %v3170_v61 = vpop.permute.xlu0 %3169  ;;  %3224 = vmatpush1.bf16.msra.mxu0 %v3209_v2 }
0x1059   : > { %v3172_v14 = vpop.permute.xlu1 %3171 }
0x105a   : > { %v3173_v12 = vsel %vm700_vm3, %v3170_v61, %v3172_v14  ;;  %v3174_v13 = vsel %vm700_vm3, %v3172_v14, %v3170_v61 }
0x105b   : > { %v3175_v8 = vmul.f32 %v3174_v13, %v4259_v35  ;;  %v3176_v49 = vmul.f32 %v3173_v12, %v4263_v36 }
0x105c   : > { %v3178_v51 = vpop.permute.xlu0 %3177 }
0x105d   : > { %v3211_v6 = vpack.c.bf16 %v3175_v8, %v3167_v15  ;;  %v3180_v41 = vpop.permute.xlu1 %3179  ;;  %v3212_v40 = vpack.c.bf16 %v3176_v49, %v3168_v53 }
0x105e   : > { %v3181_v38 = vsel %vm717_vm4, %v3178_v51, %v3180_v41  ;;  %v3182_v22 = vsel %vm717_vm4, %v3180_v41, %v3178_v51 }
0x105f   : > { %v3183_v62 = vmul.f32 %v3181_v38, %v4276_v43  ;;  %v3184_v33 = vmul.f32 %v3182_v22, %v4280_v44  ;;  %3225 = vmatprep.subr.bf16.mxu0 %v3212_v40 }
0x1060   : > { %v3186_v34 = vpop.permute.xlu0 %3185  ;;  %3226 = vmatpush1.bf16.msra.mxu0 %v3211_v6 }
0x1061   : > { %v3213_v35 = vpack.c.bf16 %v3183_v62, %v5410_v18  ;;  %v3188_v36 = vpop.permute.xlu1 %3187  ;;  %v3214_v56 = vpack.c.bf16 %v3184_v33, %v3144_v60 }
0x1062   : > { %v3189_v24 = vsel %vm734_vm5, %v3186_v34, %v3188_v36  ;;  %v3190_v10 = vsel %vm734_vm5, %v3188_v36, %v3186_v34 }
0x1063   : > { %3227 = vmatprep.subr.bf16.mxu0 %v3214_v56  ;;  %v3191_v25 = vmul.f32 %v3189_v24, %v4301_v63  ;;  %v3192_v16 = vmul.f32 %v3190_v10, %v4305_v3 }
0x1064   : > { %v3194_v55 = vpop.permute.xlu0 %3193  ;;  %3228 = vmatpush1.bf16.msra.mxu0 %v3213_v35 }
0x1065   : > { %v3196_v20 = vpop.permute.xlu1 %3195 }
0x1066   : > { %v3197_v43 = vsel %vm751_vm6, %v3194_v55, %v3196_v20  ;;  %v3198_v44 = vsel %vm751_vm6, %v3196_v20, %v3194_v55 }
0x1067   : > { %v3199_v31 = vmul.f32 %v3197_v43, %v4310_v4  ;;  %v3200_v28 = vmul.f32 %v3198_v44, %v4314_v1  ;;  %v3219_v1 = vld [vmem:[%s5511_s7] sm:$0xf] }
0x1068   : > { %v3202_v18 = vpop.permute.xlu0 %3201 }
0x1069   : > { %v3215_v52 = vpack.c.bf16 %v3199_v31, %v3191_v25  ;;  %v3204_v60 = vpop.permute.xlu1 %3203  ;;  %v3216_v57 = vpack.c.bf16 %v3200_v28, %v3192_v16 }
0x106a   : > { %v3205_v46 = vsel %vm768_vm7, %v3202_v18, %v3204_v60  ;;  %v3206_v26 = vsel %vm768_vm7, %v3204_v60, %v3202_v18 }
0x106b   : > { %v3207_v54 = vmul.f32 %v5385_v45, %v3205_v46  ;;  %v3208_v63 = vmul.f32 %v5391_v39, %v3206_v26  ;;  %3229 = vmatprep.subr.bf16.mxu0 %v3216_v57 }
0x106c   : > { %3230 = vmatpush1.bf16.msra.mxu0 %v3215_v52 }
0x106d   : > { %v3217_v3 = vpack.c.bf16 %v5397_v50, %v3207_v54  ;;  %v3218_v4 = vpack.c.bf16 %v5403_v23, %v3208_v63 }
0x106f   : > { %3231 = vmatprep.subr.bf16.mxu0 %v3218_v4 }
0x1070   : > { %3232 = vmatpush1.bf16.msra.mxu0 %v3217_v3 }
0x1073   : > { %3475 = vmatmul.mubr.msk.bf16.vlgmr.msra.gmra.mrb[36].mxu0 %vm805_vm8, %v3219_v1 }
0x1146   : > { %v3257_v5 = vpop.f32.mrb[36].mxu0 }
0x1147   : > { %v3264_v45 = vmax.f32 %v3257_v5, 0.0  ;;  %v3259_v39 = vpop.f32.mrb[37].mxu0 }
0x1148   : > { %v3265_v21 = vmax.f32 %v3259_v39, 0.0  ;;  %v3261_v50 = vpop.f32.mrb[38].mxu0 }
0x1149   : > { %v3268_v23 = vmul.f32 0.2, %v3264_v45  ;;  %3276 = vst [vmem:[%s627_s9] sm:$0xff] %v3264_v45  ;;  %v3262_v58 = vpop.f32.mrb[39].mxu0 }
0x114a   : > { %v3269_v17 = vmul.f32 0.2, %v3265_v21  ;;  %3277 = vst [vmem:[%s627_s9 + $0x8] sm:$0xff] %v3265_v21 }
0x114b   : > { %v3270_v48 = vadd.f32 %v3268_v23, %v3266_v29 }
0x114c   : > { %v3271_v42 = vadd.f32 %v3269_v17, %v3267_v37 }
0x114d   : > { %3272 = vst [vmem:[%s617_s1] sm:$0xff] %v3270_v48 }
0x114e   : > { %3273 = vst [vmem:[%s617_s1 + $0x8] sm:$0xff] %v3271_v42 }
0x114f PF: > { %s30_s0 = sadd.s32 1, %s4006_s0  }
0x1150   : > { %p27_p4 = scmp.ge.s32.totalorder %s30_s0, 4  }
0x1152   :  { %29 = sbr.rel (!%p27_p4) target bundleno = 8 (0x8), region = 142 }

</bundles_post_ra>
